<compile_context>
chip_gen: v7x
topology: tpu7x:2x2x1
jax: 0.10.0
libtpu: 0.0.40
codegen_flags: <defaults>
</compile_context>

<pallas_src>
import functools
import math

import numpy as np
import jax
import jax.numpy as jnp
from jax.experimental import pallas as pl
from jax.experimental.pallas import tpu as pltpu


# ---------------------------------------------------------------------------
# Fused forward kernel
# ---------------------------------------------------------------------------
def _componet_fused_kernel(
    x_ref,
    # fused layer-1 of everything that reads x: [obs, 6H], [1, 6H]
    w1_ref, b1_ref,
    # block-diagonal layers 2/3 of the 4 x-only MLPs (logstd + prev units)
    w2_ref, b2_ref, w3_ref, b3_ref,
    # state-encoder layer 2
    ew2_ref, eb2_ref,
    # zero-padded block projection for prev-unit keys, plain projection for int_pol
    wpc_ref, bpc_ref, wp_ref, bp_ref,
    # internal policy (layer-1 x-part lives in w1_ref; h_in part here)
    w1h_ref, pw2_ref, pb2_ref, pw3_ref, pb3_ref,
    # packed output: [:, :act] = mean, [:, act:] = logstd
    out_ref,
    *, n_prev, act_dim, hidden):
    f32 = jnp.float32
    bf16 = jnp.bfloat16
    H = hidden
    A = act_dim
    scale = 1.0 / float(math.sqrt(H))

    x = x_ref[...].astype(bf16)                               # [bm, obs]

    # ---- ONE wide layer-1 matmul for every x-consumer -----------------------
    z = jnp.dot(x, w1_ref[...], preferred_element_type=f32) + b1_ref[...]
    h1 = jnp.maximum(z[:, :4 * H], 0.0)            # 4 stacked x-MLP layer-1 outs
    s = jnp.maximum(z[:, 4 * H:5 * H], 0.0)        # encoder layer-1
    hx = z[:, 5 * H:]                              # internal-policy layer-1 (x part, pre-ReLU)

    # ---- x-MLP layers 2/3: block-diagonal weights, two pushes ---------------
    h2 = jnp.maximum(
        jnp.dot(h1.astype(bf16), w2_ref[...], preferred_element_type=f32)
        + b2_ref[...], 0.0)                                   # [bm, 4H]
    heads = (jnp.dot(h2.astype(bf16), w3_ref[...], preferred_element_type=f32)
             + b3_ref[...])                                   # [bm, 4A] lane-concat
    logstd = heads[:, :A]
    phi = [heads[:, (i + 1) * A:(i + 2) * A] for i in range(n_prev)]

    # ---- state encoder layer 2 ----------------------------------------------
    s = jnp.maximum(
        jnp.dot(s.astype(bf16), ew2_ref[...], preferred_element_type=f32)
        + eb2_ref[...], 0.0)                                  # [bm, H]

    # ---- prev-unit keys: one push through the zero-padded block projection --
    keys_all = (jnp.dot(heads.astype(bf16), wpc_ref[...],
                        preferred_element_type=f32) + bpc_ref[...])  # [bm, n_prev*H]
    keys = [keys_all[:, i * H:(i + 1) * H] for i in range(n_prev)]

    # ---- input attention head (values = projected keys) ---------------------
    sc_in = [jnp.sum(s * k, axis=-1, keepdims=True) * scale for k in keys]
    m_in = functools.reduce(jnp.maximum, sc_in)
    e_in = [jnp.exp(v - m_in) for v in sc_in]
    inv_in = pl.reciprocal(functools.reduce(jnp.add, e_in), approx=True)
    h_in = e_in[0] * keys[0]
    for i in range(1, n_prev):
        h_in = h_in + e_in[i] * keys[i]
    h_in = h_in * inv_in                                      # [bm, H]

    # ---- internal policy on [x, h_in] (concat-free: split layer-1) ----------
    hp = jnp.maximum(
        hx + jnp.dot(h_in.astype(bf16), w1h_ref[...], preferred_element_type=f32),
        0.0)
    hp = jnp.maximum(
        jnp.dot(hp.astype(bf16), pw2_ref[...], preferred_element_type=f32)
        + pb2_ref[...], 0.0)
    int_pol = (jnp.dot(hp.astype(bf16), pw3_ref[...], preferred_element_type=f32)
               + pb3_ref[...])                                # [bm, A]

    # ---- output attention head + residual ------------------------------------
    key_int = (jnp.dot(int_pol.astype(bf16), wp_ref[...],
                       preferred_element_type=f32) + bp_ref[...])
    sc_out = [jnp.sum(s * key_int, axis=-1, keepdims=True) * scale] + sc_in
    vals = [int_pol] + phi
    m_out = functools.reduce(jnp.maximum, sc_out)
    e_out = [jnp.exp(v - m_out) for v in sc_out]
    inv_out = pl.reciprocal(functools.reduce(jnp.add, e_out), approx=True)
    head = e_out[0] * vals[0]
    for i in range(1, len(vals)):
        head = head + e_out[i] * vals[i]
    mean = head * inv_out + int_pol                           # residual

    # single packed store (avoids two masked sub-128-lane partial writes)
    out_ref[...] = jnp.concatenate([mean, logstd], axis=-1).astype(out_ref.dtype)


# ---------------------------------------------------------------------------
# Tiling / wrapper
# ---------------------------------------------------------------------------
def _round_up(n, m):
    return -(-n // m) * m


def _max_bm():
    # v5e MXU is 128x128 -> cap at 128 there; v6e/v7x 256x256 -> 256.
    try:
        kind = jax.devices()[0].device_kind.lower()
        if "v5 lite" in kind or "v5e" in kind or "v5litepod" in kind:
            return 128
    except Exception:
        pass
    return 256


def _choose_tiling(B):
    cap = _max_bm()
    b8 = _round_up(max(B, 1), 8)
    if b8 >= 2 * cap:
        bm = cap
    else:
        bm = max(8, _round_up(b8, 16) // 2)      # aim for >=2 grid steps
        bm = min(bm, cap)
    b_pad = _round_up(b8, bm)
    if b_pad // bm < 2:
        b_pad += bm                               # >=2 parallel steps (v7x megacore)
    return bm, b_pad


def componet_agent_forward(params, x):
    """CompoNetAgent.forward (writer=None). Returns (mean, logstd)."""
    B, obs_dim = x.shape
    hidden = params["enc_w2"].shape[0]
    act_dim = params["wp"].shape[0]
    n_prev = params["wpc"].shape[1] // hidden

    bm, b_pad = _choose_tiling(B)
    if b_pad != B:
        x = jnp.pad(x, ((0, b_pad - B), (0, 0)))
    grid = (b_pad // bm,)

    def full(a):
        nd = a.ndim
        return pl.BlockSpec(a.shape, lambda i, nd=nd: (0,) * nd)

    weights = [
        params["w1_all"], params["b1_all"],
        params["w2_bd"], params["b2_cat"],
        params["w3_bd"], params["b3_cat"],
        params["enc_w2"], params["enc_b2"],
        params["wpc"], params["bpc"],
        params["wp"], params["bp"],
        params["ip_w1h"],
        params["ip_w2"], params["ip_b2"],
        params["ip_w3"], params["ip_b3"],
    ]

    kern = functools.partial(_componet_fused_kernel, n_prev=n_prev,
                             act_dim=act_dim, hidden=hidden)
    out = pl.pallas_call(
        kern,
        grid=grid,
        in_specs=[pl.BlockSpec((bm, obs_dim), lambda i: (i, 0))]
                 + [full(w) for w in weights],
        out_specs=pl.BlockSpec((bm, 2 * act_dim), lambda i: (i, 0)),
        out_shape=jax.ShapeDtypeStruct((b_pad, 2 * act_dim), jnp.float32),
        compiler_params=pltpu.CompilerParams(
            dimension_semantics=("parallel",)),
    )(x, *weights)
    return out[:B, :act_dim], out[:B, act_dim:]


# ---------------------------------------------------------------------------
# Deterministic parameter init (mirrors nn.Linear's uniform(-1/sqrt(fan_in)))
# and packing into the fused / block-diagonal layout used by the kernel.
# ---------------------------------------------------------------------------
def init_linear(key, d_in, d_out):
    kw, kb = jax.random.split(key)
    bound = 1.0 / float(np.sqrt(d_in))
    w = jax.random.uniform(kw, (d_in, d_out), jnp.float32, -bound, bound)
    b = jax.random.uniform(kb, (1, d_out), jnp.float32, -bound, bound)
    return w, b


def init_net(key, d_in, d_out, hidden=256):
    k1, k2, k3 = jax.random.split(key, 3)
    return (init_linear(k1, d_in, hidden),
            init_linear(k2, hidden, hidden),
            init_linear(k3, hidden, d_out))


def _block_diag(mats):
    mats = [np.asarray(m) for m in mats]
    r = sum(m.shape[0] for m in mats)
    c = sum(m.shape[1] for m in mats)
    out = np.zeros((r, c), np.float32)
    ro = co = 0
    for m in mats:
        out[ro:ro + m.shape[0], co:co + m.shape[1]] = m
        ro += m.shape[0]
        co += m.shape[1]
    return jnp.asarray(out)


def init_params(key, obs_dim, act_dim, hidden, n_prev):
    keys = jax.random.split(key, 5 + n_prev)
    net_logstd = init_net(keys[0], obs_dim, act_dim, hidden)
    prev_units = [init_net(keys[1 + i], obs_dim, act_dim, hidden)
                  for i in range(n_prev)]
    enc1 = init_linear(keys[1 + n_prev], obs_dim, hidden)
    enc2 = init_linear(keys[2 + n_prev], hidden, hidden)
    proj = init_linear(keys[3 + n_prev], act_dim, hidden)
    ip = init_net(keys[4 + n_prev], obs_dim + hidden, act_dim, hidden)

    nets = [net_logstd] + prev_units          # [0] = logstd head, [1:] = prev units
    (ip_w1, ip_b1), (ip_w2, ip_b2), (ip_w3, ip_b3) = ip
    bf16 = jnp.bfloat16

    # ONE wide layer-1 for every x-consumer: [obs, 6H]
    w1_all = jnp.concatenate([n[0][0] for n in nets]
                             + [enc1[0], ip_w1[:obs_dim]], axis=1)
    b1_all = jnp.concatenate([n[0][1] for n in nets]
                             + [enc1[1], ip_b1], axis=1)

    # block-diagonal layers 2/3 of the 4 x-only MLPs
    w2_bd = _block_diag([n[1][0] for n in nets])              # [4H, 4H]
    b2_cat = jnp.concatenate([n[1][1] for n in nets], axis=1)  # [1, 4H]
    w3_bd = _block_diag([n[2][0] for n in nets])              # [4H, 4*act]
    b3_cat = jnp.concatenate([n[2][1] for n in nets], axis=1)  # [1, 4*act]

    # zero-padded block projection: lane-concat [logstd|phi_1..P] -> [key_1|..|key_P]
    wpc = np.zeros(((1 + n_prev) * act_dim, n_prev * hidden), np.float32)
    pw = np.asarray(proj[0])
    for i in range(n_prev):
        wpc[(i + 1) * act_dim:(i + 2) * act_dim,
            i * hidden:(i + 1) * hidden] = pw
    bpc = jnp.tile(proj[1], (1, n_prev))

    return {
        "w1_all": w1_all.astype(bf16), "b1_all": b1_all,
        "w2_bd": w2_bd.astype(bf16), "b2_cat": b2_cat,
        "w3_bd": w3_bd.astype(bf16), "b3_cat": b3_cat,
        "enc_w2": enc2[0].astype(bf16), "enc_b2": enc2[1],
        "wpc": jnp.asarray(wpc).astype(bf16), "bpc": bpc,
        "wp": proj[0].astype(bf16), "bp": proj[1],
        "ip_w1h": ip_w1[obs_dim:].astype(bf16),
        "ip_w2": ip_w2.astype(bf16), "ip_b2": ip_b2,
        "ip_w3": ip_w3.astype(bf16), "ip_b3": ip_b3,
    }


if __name__ == "__main__":
    B, OBS_DIM, ACT_DIM, HIDDEN, N_PREV = 8, 16, 8, 256, 3

    root = jax.random.PRNGKey(0)
    kp, kx = jax.random.split(root)
    params = init_params(kp, OBS_DIM, ACT_DIM, HIDDEN, N_PREV)
    x = jax.random.normal(kx, (B, OBS_DIM), jnp.float32)

    fwd = jax.jit(componet_agent_forward)
    mean, logstd = fwd(params, x)
    jax.block_until_ready(mean)
    jax.block_until_ready(logstd)

    assert mean.shape == (B, ACT_DIM) and logstd.shape == (B, ACT_DIM)
    assert mean.dtype == jnp.float32 and logstd.dtype == jnp.float32
    assert bool(jnp.all(jnp.isfinite(mean))) and bool(jnp.all(jnp.isfinite(logstd)))
    print("KERNEL_OK")
</pallas_src>

<mosaic_0001>
module attributes {stable_mosaic.version = 11 : i64} {
  func.func @_componet_fused_kernel(%arg0: i32, %arg1: memref<8x16xf32, #tpu.memory_space<vmem>>, %arg2: memref<16x1536xbf16, #tpu.memory_space<vmem>>, %arg3: memref<1x1536xf32, #tpu.memory_space<vmem>>, %arg4: memref<1024x1024xbf16, #tpu.memory_space<vmem>>, %arg5: memref<1x1024xf32, #tpu.memory_space<vmem>>, %arg6: memref<1024x32xbf16, #tpu.memory_space<vmem>>, %arg7: memref<1x32xf32, #tpu.memory_space<vmem>>, %arg8: memref<256x256xbf16, #tpu.memory_space<vmem>>, %arg9: memref<1x256xf32, #tpu.memory_space<vmem>>, %arg10: memref<32x768xbf16, #tpu.memory_space<vmem>>, %arg11: memref<1x768xf32, #tpu.memory_space<vmem>>, %arg12: memref<8x256xbf16, #tpu.memory_space<vmem>>, %arg13: memref<1x256xf32, #tpu.memory_space<vmem>>, %arg14: memref<256x256xbf16, #tpu.memory_space<vmem>>, %arg15: memref<256x256xbf16, #tpu.memory_space<vmem>>, %arg16: memref<1x256xf32, #tpu.memory_space<vmem>>, %arg17: memref<256x8xbf16, #tpu.memory_space<vmem>>, %arg18: memref<1x8xf32, #tpu.memory_space<vmem>>, %arg19: memref<8x16xf32, #tpu.memory_space<vmem>>) attributes {dimension_semantics = [#tpu.dimension_semantics<parallel>], iteration_bounds = array<i64: 2>, scalar_prefetch = 0 : i64, scratch_operands = 0 : i64, tpu.core_type = #tpu.core_type<tc>, window_params = [{transform_indices = @transform_0, window_bounds = array<i64: 8, 16>}, {pipeline_mode = #tpu.pipeline_mode<synchronous>, transform_indices = @transform_1, window_bounds = array<i64: 16, 1536>}, {pipeline_mode = #tpu.pipeline_mode<synchronous>, transform_indices = @transform_2, window_bounds = array<i64: 1, 1536>}, {pipeline_mode = #tpu.pipeline_mode<synchronous>, transform_indices = @transform_3, window_bounds = array<i64: 1024, 1024>}, {pipeline_mode = #tpu.pipeline_mode<synchronous>, transform_indices = @transform_4, window_bounds = array<i64: 1, 1024>}, {pipeline_mode = #tpu.pipeline_mode<synchronous>, transform_indices = @transform_5, window_bounds = array<i64: 1024, 32>}, {pipeline_mode = #tpu.pipeline_mode<synchronous>, transform_indices = @transform_6, window_bounds = array<i64: 1, 32>}, {pipeline_mode = #tpu.pipeline_mode<synchronous>, transform_indices = @transform_7, window_bounds = array<i64: 256, 256>}, {pipeline_mode = #tpu.pipeline_mode<synchronous>, transform_indices = @transform_8, window_bounds = array<i64: 1, 256>}, {pipeline_mode = #tpu.pipeline_mode<synchronous>, transform_indices = @transform_9, window_bounds = array<i64: 32, 768>}, {pipeline_mode = #tpu.pipeline_mode<synchronous>, transform_indices = @transform_10, window_bounds = array<i64: 1, 768>}, {pipeline_mode = #tpu.pipeline_mode<synchronous>, transform_indices = @transform_11, window_bounds = array<i64: 8, 256>}, {pipeline_mode = #tpu.pipeline_mode<synchronous>, transform_indices = @transform_12, window_bounds = array<i64: 1, 256>}, {pipeline_mode = #tpu.pipeline_mode<synchronous>, transform_indices = @transform_13, window_bounds = array<i64: 256, 256>}, {pipeline_mode = #tpu.pipeline_mode<synchronous>, transform_indices = @transform_14, window_bounds = array<i64: 256, 256>}, {pipeline_mode = #tpu.pipeline_mode<synchronous>, transform_indices = @transform_15, window_bounds = array<i64: 1, 256>}, {pipeline_mode = #tpu.pipeline_mode<synchronous>, transform_indices = @transform_16, window_bounds = array<i64: 256, 8>}, {pipeline_mode = #tpu.pipeline_mode<synchronous>, transform_indices = @transform_17, window_bounds = array<i64: 1, 8>}, {transform_indices = @transform_18, window_bounds = array<i64: 8, 16>}]} {
    %c0 = arith.constant 0 : index
    %c0_0 = arith.constant 0 : index
    %0 = vector.load %arg1[%c0, %c0_0] : memref<8x16xf32, #tpu.memory_space<vmem>>, vector<8x16xf32>
    %1 = arith.truncf %0 : vector<8x16xf32> to vector<8x16xbf16>
    %c0_1 = arith.constant 0 : index
    %c0_2 = arith.constant 0 : index
    %2 = vector.load %arg2[%c0_1, %c0_2] : memref<16x1536xbf16, #tpu.memory_space<vmem>>, vector<16x1536xbf16>
    %cst = arith.constant dense<0.000000e+00> : vector<8x1536xf32>
    %3 = tpu.matmul %1, %2, %cst {dimension_numbers = #tpu.dot_dimension_numbers<[1], [0], [0], [1], [0, 0, 1, 1], [], []>} : vector<8x16xbf16>, vector<16x1536xbf16>, vector<8x1536xf32> -> vector<8x1536xf32>
    %c0_3 = arith.constant 0 : index
    %c0_4 = arith.constant 0 : index
    %4 = vector.load %arg3[%c0_3, %c0_4] : memref<1x1536xf32, #tpu.memory_space<vmem>>, vector<1x1536xf32>
    %5 = vector.broadcast %4 : vector<1x1536xf32> to vector<8x1536xf32>
    %6 = arith.addf %3, %5 : vector<8x1536xf32>
    %7 = vector.extract_strided_slice %6 {offsets = [0, 0], sizes = [8, 1024], strides = [1, 1]} : vector<8x1536xf32> to vector<8x1024xf32>
    %cst_5 = arith.constant 0.000000e+00 : f32
    %8 = vector.broadcast %cst_5 : f32 to vector<8x1024xf32>
    %9 = arith.maximumf %7, %8 : vector<8x1024xf32>
    %10 = vector.extract_strided_slice %6 {offsets = [0, 1024], sizes = [8, 256], strides = [1, 1]} : vector<8x1536xf32> to vector<8x256xf32>
    %cst_6 = arith.constant 0.000000e+00 : f32
    %11 = vector.broadcast %cst_6 : f32 to vector<8x256xf32>
    %12 = arith.maximumf %10, %11 : vector<8x256xf32>
    %13 = vector.extract_strided_slice %6 {offsets = [0, 1280], sizes = [8, 256], strides = [1, 1]} : vector<8x1536xf32> to vector<8x256xf32>
    %14 = arith.truncf %9 : vector<8x1024xf32> to vector<8x1024xbf16>
    %c0_7 = arith.constant 0 : index
    %c0_8 = arith.constant 0 : index
    %15 = vector.load %arg4[%c0_7, %c0_8] : memref<1024x1024xbf16, #tpu.memory_space<vmem>>, vector<1024x1024xbf16>
    %cst_9 = arith.constant dense<0.000000e+00> : vector<8x1024xf32>
    %16 = tpu.matmul %14, %15, %cst_9 {dimension_numbers = #tpu.dot_dimension_numbers<[1], [0], [0], [1], [0, 0, 1, 1], [], []>} : vector<8x1024xbf16>, vector<1024x1024xbf16>, vector<8x1024xf32> -> vector<8x1024xf32>
    %c0_10 = arith.constant 0 : index
    %c0_11 = arith.constant 0 : index
    %17 = vector.load %arg5[%c0_10, %c0_11] : memref<1x1024xf32, #tpu.memory_space<vmem>>, vector<1x1024xf32>
    %18 = vector.broadcast %17 : vector<1x1024xf32> to vector<8x1024xf32>
    %19 = arith.addf %16, %18 : vector<8x1024xf32>
    %cst_12 = arith.constant 0.000000e+00 : f32
    %20 = vector.broadcast %cst_12 : f32 to vector<8x1024xf32>
    %21 = arith.maximumf %19, %20 : vector<8x1024xf32>
    %22 = arith.truncf %21 : vector<8x1024xf32> to vector<8x1024xbf16>
    %c0_13 = arith.constant 0 : index
    %c0_14 = arith.constant 0 : index
    %23 = vector.load %arg6[%c0_13, %c0_14] : memref<1024x32xbf16, #tpu.memory_space<vmem>>, vector<1024x32xbf16>
    %cst_15 = arith.constant dense<0.000000e+00> : vector<8x32xf32>
    %24 = tpu.matmul %22, %23, %cst_15 {dimension_numbers = #tpu.dot_dimension_numbers<[1], [0], [0], [1], [0, 0, 1, 1], [], []>} : vector<8x1024xbf16>, vector<1024x32xbf16>, vector<8x32xf32> -> vector<8x32xf32>
    %c0_16 = arith.constant 0 : index
    %c0_17 = arith.constant 0 : index
    %25 = vector.load %arg7[%c0_16, %c0_17] : memref<1x32xf32, #tpu.memory_space<vmem>>, vector<1x32xf32>
    %26 = vector.broadcast %25 : vector<1x32xf32> to vector<8x32xf32>
    %27 = arith.addf %24, %26 : vector<8x32xf32>
    %28 = vector.extract_strided_slice %27 {offsets = [0, 0], sizes = [8, 8], strides = [1, 1]} : vector<8x32xf32> to vector<8x8xf32>
    %29 = vector.extract_strided_slice %27 {offsets = [0, 8], sizes = [8, 8], strides = [1, 1]} : vector<8x32xf32> to vector<8x8xf32>
    %30 = vector.extract_strided_slice %27 {offsets = [0, 16], sizes = [8, 8], strides = [1, 1]} : vector<8x32xf32> to vector<8x8xf32>
    %31 = vector.extract_strided_slice %27 {offsets = [0, 24], sizes = [8, 8], strides = [1, 1]} : vector<8x32xf32> to vector<8x8xf32>
    %32 = arith.truncf %12 : vector<8x256xf32> to vector<8x256xbf16>
    %c0_18 = arith.constant 0 : index
    %c0_19 = arith.constant 0 : index
    %33 = vector.load %arg8[%c0_18, %c0_19] : memref<256x256xbf16, #tpu.memory_space<vmem>>, vector<256x256xbf16>
    %cst_20 = arith.constant dense<0.000000e+00> : vector<8x256xf32>
    %34 = tpu.matmul %32, %33, %cst_20 {dimension_numbers = #tpu.dot_dimension_numbers<[1], [0], [0], [1], [0, 0, 1, 1], [], []>} : vector<8x256xbf16>, vector<256x256xbf16>, vector<8x256xf32> -> vector<8x256xf32>
    %c0_21 = arith.constant 0 : index
    %c0_22 = arith.constant 0 : index
    %35 = vector.load %arg9[%c0_21, %c0_22] : memref<1x256xf32, #tpu.memory_space<vmem>>, vector<1x256xf32>
    %36 = vector.broadcast %35 : vector<1x256xf32> to vector<8x256xf32>
    %37 = arith.addf %34, %36 : vector<8x256xf32>
    %cst_23 = arith.constant 0.000000e+00 : f32
    %38 = vector.broadcast %cst_23 : f32 to vector<8x256xf32>
    %39 = arith.maximumf %37, %38 : vector<8x256xf32>
    %40 = arith.truncf %27 : vector<8x32xf32> to vector<8x32xbf16>
    %c0_24 = arith.constant 0 : index
    %c0_25 = arith.constant 0 : index
    %41 = vector.load %arg10[%c0_24, %c0_25] : memref<32x768xbf16, #tpu.memory_space<vmem>>, vector<32x768xbf16>
    %cst_26 = arith.constant dense<0.000000e+00> : vector<8x768xf32>
    %42 = tpu.matmul %40, %41, %cst_26 {dimension_numbers = #tpu.dot_dimension_numbers<[1], [0], [0], [1], [0, 0, 1, 1], [], []>} : vector<8x32xbf16>, vector<32x768xbf16>, vector<8x768xf32> -> vector<8x768xf32>
    %c0_27 = arith.constant 0 : index
    %c0_28 = arith.constant 0 : index
    %43 = vector.load %arg11[%c0_27, %c0_28] : memref<1x768xf32, #tpu.memory_space<vmem>>, vector<1x768xf32>
    %44 = vector.broadcast %43 : vector<1x768xf32> to vector<8x768xf32>
    %45 = arith.addf %42, %44 : vector<8x768xf32>
    %46 = vector.extract_strided_slice %45 {offsets = [0, 0], sizes = [8, 256], strides = [1, 1]} : vector<8x768xf32> to vector<8x256xf32>
    %47 = vector.extract_strided_slice %45 {offsets = [0, 256], sizes = [8, 256], strides = [1, 1]} : vector<8x768xf32> to vector<8x256xf32>
    %48 = vector.extract_strided_slice %45 {offsets = [0, 512], sizes = [8, 256], strides = [1, 1]} : vector<8x768xf32> to vector<8x256xf32>
    %49 = arith.mulf %39, %46 : vector<8x256xf32>
    %cst_29 = arith.constant dense<0.000000e+00> : vector<8xf32>
    %50 = vector.multi_reduction <add>, %49, %cst_29 [1] : vector<8x256xf32> to vector<8xf32>
    %51 = vector.shape_cast %50 : vector<8xf32> to vector<8x1xf32>
    %cst_30 = arith.constant 6.250000e-02 : f32
    %52 = vector.broadcast %cst_30 : f32 to vector<8x1xf32>
    %53 = arith.mulf %51, %52 : vector<8x1xf32>
    %54 = arith.mulf %39, %47 : vector<8x256xf32>
    %cst_31 = arith.constant dense<0.000000e+00> : vector<8xf32>
    %55 = vector.multi_reduction <add>, %54, %cst_31 [1] : vector<8x256xf32> to vector<8xf32>
    %56 = vector.shape_cast %55 : vector<8xf32> to vector<8x1xf32>
    %cst_32 = arith.constant 6.250000e-02 : f32
    %57 = vector.broadcast %cst_32 : f32 to vector<8x1xf32>
    %58 = arith.mulf %56, %57 : vector<8x1xf32>
    %59 = arith.mulf %39, %48 : vector<8x256xf32>
    %cst_33 = arith.constant dense<0.000000e+00> : vector<8xf32>
    %60 = vector.multi_reduction <add>, %59, %cst_33 [1] : vector<8x256xf32> to vector<8xf32>
    %61 = vector.shape_cast %60 : vector<8xf32> to vector<8x1xf32>
    %cst_34 = arith.constant 6.250000e-02 : f32
    %62 = vector.broadcast %cst_34 : f32 to vector<8x1xf32>
    %63 = arith.mulf %61, %62 : vector<8x1xf32>
    %64 = arith.maximumf %53, %58 : vector<8x1xf32>
    %65 = arith.maximumf %64, %63 : vector<8x1xf32>
    %66 = arith.subf %53, %65 : vector<8x1xf32>
    %67 = math.exp %66 : vector<8x1xf32>
    %68 = arith.subf %58, %65 : vector<8x1xf32>
    %69 = math.exp %68 : vector<8x1xf32>
    %70 = arith.subf %63, %65 : vector<8x1xf32>
    %71 = math.exp %70 : vector<8x1xf32>
    %72 = arith.addf %67, %69 : vector<8x1xf32>
    %73 = arith.addf %72, %71 : vector<8x1xf32>
    %74 = tpu.reciprocal %73 {approx = true} : vector<8x1xf32> -> vector<8x1xf32>
    %75 = vector.broadcast %67 : vector<8x1xf32> to vector<8x256xf32>
    %76 = arith.mulf %75, %46 : vector<8x256xf32>
    %77 = vector.broadcast %69 : vector<8x1xf32> to vector<8x256xf32>
    %78 = arith.mulf %77, %47 : vector<8x256xf32>
    %79 = arith.addf %76, %78 : vector<8x256xf32>
    %80 = vector.broadcast %71 : vector<8x1xf32> to vector<8x256xf32>
    %81 = arith.mulf %80, %48 : vector<8x256xf32>
    %82 = arith.addf %79, %81 : vector<8x256xf32>
    %83 = vector.broadcast %74 : vector<8x1xf32> to vector<8x256xf32>
    %84 = arith.mulf %82, %83 : vector<8x256xf32>
    %85 = arith.truncf %84 : vector<8x256xf32> to vector<8x256xbf16>
    %c0_35 = arith.constant 0 : index
    %c0_36 = arith.constant 0 : index
    %86 = vector.load %arg14[%c0_35, %c0_36] : memref<256x256xbf16, #tpu.memory_space<vmem>>, vector<256x256xbf16>
    %cst_37 = arith.constant dense<0.000000e+00> : vector<8x256xf32>
    %87 = tpu.matmul %85, %86, %cst_37 {dimension_numbers = #tpu.dot_dimension_numbers<[1], [0], [0], [1], [0, 0, 1, 1], [], []>} : vector<8x256xbf16>, vector<256x256xbf16>, vector<8x256xf32> -> vector<8x256xf32>
    %88 = arith.addf %13, %87 : vector<8x256xf32>
    %cst_38 = arith.constant 0.000000e+00 : f32
    %89 = vector.broadcast %cst_38 : f32 to vector<8x256xf32>
    %90 = arith.maximumf %88, %89 : vector<8x256xf32>
    %91 = arith.truncf %90 : vector<8x256xf32> to vector<8x256xbf16>
    %c0_39 = arith.constant 0 : index
    %c0_40 = arith.constant 0 : index
    %92 = vector.load %arg15[%c0_39, %c0_40] : memref<256x256xbf16, #tpu.memory_space<vmem>>, vector<256x256xbf16>
    %cst_41 = arith.constant dense<0.000000e+00> : vector<8x256xf32>
    %93 = tpu.matmul %91, %92, %cst_41 {dimension_numbers = #tpu.dot_dimension_numbers<[1], [0], [0], [1], [0, 0, 1, 1], [], []>} : vector<8x256xbf16>, vector<256x256xbf16>, vector<8x256xf32> -> vector<8x256xf32>
    %c0_42 = arith.constant 0 : index
    %c0_43 = arith.constant 0 : index
    %94 = vector.load %arg16[%c0_42, %c0_43] : memref<1x256xf32, #tpu.memory_space<vmem>>, vector<1x256xf32>
    %95 = vector.broadcast %94 : vector<1x256xf32> to vector<8x256xf32>
    %96 = arith.addf %93, %95 : vector<8x256xf32>
    %cst_44 = arith.constant 0.000000e+00 : f32
    %97 = vector.broadcast %cst_44 : f32 to vector<8x256xf32>
    %98 = arith.maximumf %96, %97 : vector<8x256xf32>
    %99 = arith.truncf %98 : vector<8x256xf32> to vector<8x256xbf16>
    %c0_45 = arith.constant 0 : index
    %c0_46 = arith.constant 0 : index
    %100 = vector.load %arg17[%c0_45, %c0_46] : memref<256x8xbf16, #tpu.memory_space<vmem>>, vector<256x8xbf16>
    %cst_47 = arith.constant dense<0.000000e+00> : vector<8x8xf32>
    %101 = tpu.matmul %99, %100, %cst_47 {dimension_numbers = #tpu.dot_dimension_numbers<[1], [0], [0], [1], [0, 0, 1, 1], [], []>} : vector<8x256xbf16>, vector<256x8xbf16>, vector<8x8xf32> -> vector<8x8xf32>
    %c0_48 = arith.constant 0 : index
    %c0_49 = arith.constant 0 : index
    %102 = vector.load %arg18[%c0_48, %c0_49] : memref<1x8xf32, #tpu.memory_space<vmem>>, vector<1x8xf32>
    %103 = vector.broadcast %102 : vector<1x8xf32> to vector<8x8xf32>
    %104 = arith.addf %101, %103 : vector<8x8xf32>
    %105 = arith.truncf %104 : vector<8x8xf32> to vector<8x8xbf16>
    %c0_50 = arith.constant 0 : index
    %c0_51 = arith.constant 0 : index
    %106 = vector.load %arg12[%c0_50, %c0_51] : memref<8x256xbf16, #tpu.memory_space<vmem>>, vector<8x256xbf16>
    %cst_52 = arith.constant dense<0.000000e+00> : vector<8x256xf32>
    %107 = tpu.matmul %105, %106, %cst_52 {dimension_numbers = #tpu.dot_dimension_numbers<[1], [0], [0], [1], [0, 0, 1, 1], [], []>} : vector<8x8xbf16>, vector<8x256xbf16>, vector<8x256xf32> -> vector<8x256xf32>
    %c0_53 = arith.constant 0 : index
    %c0_54 = arith.constant 0 : index
    %108 = vector.load %arg13[%c0_53, %c0_54] : memref<1x256xf32, #tpu.memory_space<vmem>>, vector<1x256xf32>
    %109 = vector.broadcast %108 : vector<1x256xf32> to vector<8x256xf32>
    %110 = arith.addf %107, %109 : vector<8x256xf32>
    %111 = arith.mulf %39, %110 : vector<8x256xf32>
    %cst_55 = arith.constant dense<0.000000e+00> : vector<8xf32>
    %112 = vector.multi_reduction <add>, %111, %cst_55 [1] : vector<8x256xf32> to vector<8xf32>
    %113 = vector.shape_cast %112 : vector<8xf32> to vector<8x1xf32>
    %cst_56 = arith.constant 6.250000e-02 : f32
    %114 = vector.broadcast %cst_56 : f32 to vector<8x1xf32>
    %115 = arith.mulf %113, %114 : vector<8x1xf32>
    %116 = arith.maximumf %115, %53 : vector<8x1xf32>
    %117 = arith.maximumf %116, %58 : vector<8x1xf32>
    %118 = arith.maximumf %117, %63 : vector<8x1xf32>
    %119 = arith.subf %115, %118 : vector<8x1xf32>
    %120 = math.exp %119 : vector<8x1xf32>
    %121 = arith.subf %53, %118 : vector<8x1xf32>
    %122 = math.exp %121 : vector<8x1xf32>
    %123 = arith.subf %58, %118 : vector<8x1xf32>
    %124 = math.exp %123 : vector<8x1xf32>
    %125 = arith.subf %63, %118 : vector<8x1xf32>
    %126 = math.exp %125 : vector<8x1xf32>
    %127 = arith.addf %120, %122 : vector<8x1xf32>
    %128 = arith.addf %127, %124 : vector<8x1xf32>
    %129 = arith.addf %128, %126 : vector<8x1xf32>
    %130 = tpu.reciprocal %129 {approx = true} : vector<8x1xf32> -> vector<8x1xf32>
    %131 = vector.broadcast %120 : vector<8x1xf32> to vector<8x8xf32>
    %132 = arith.mulf %131, %104 : vector<8x8xf32>
    %133 = vector.broadcast %122 : vector<8x1xf32> to vector<8x8xf32>
    %134 = arith.mulf %133, %29 : vector<8x8xf32>
    %135 = arith.addf %132, %134 : vector<8x8xf32>
    %136 = vector.broadcast %124 : vector<8x1xf32> to vector<8x8xf32>
    %137 = arith.mulf %136, %30 : vector<8x8xf32>
    %138 = arith.addf %135, %137 : vector<8x8xf32>
    %139 = vector.broadcast %126 : vector<8x1xf32> to vector<8x8xf32>
    %140 = arith.mulf %139, %31 : vector<8x8xf32>
    %141 = arith.addf %138, %140 : vector<8x8xf32>
    %142 = vector.broadcast %130 : vector<8x1xf32> to vector<8x8xf32>
    %143 = arith.mulf %141, %142 : vector<8x8xf32>
    %144 = arith.addf %143, %104 : vector<8x8xf32>
    %145 = tpu.concatenate %144, %28 in 1 : vector<8x8xf32>, vector<8x8xf32> -> vector<8x16xf32>
    %c0_57 = arith.constant 0 : index
    %c0_58 = arith.constant 0 : index
    %146 = vector.load %arg19[%c0_57, %c0_58] : memref<8x16xf32, #tpu.memory_space<vmem>>, vector<8x16xf32>
    tpu.vector_store %arg19[%c0_57, %c0_58], %145 {strides = array<i32>} : memref<8x16xf32, #tpu.memory_space<vmem>>, vector<8x16xf32>,
    return
  }
  func.func @transform_0(%arg0: i32) -> (i32, i32) {
    %c0_i32 = arith.constant 0 : i32
    %c0_i32_0 = arith.constant 0 : i32
    return %arg0, %c0_i32 : i32, i32
  }
  func.func @transform_1(%arg0: i32) -> (i32, i32) {
    %c0_i32 = arith.constant 0 : i32
    %c0_i32_0 = arith.constant 0 : i32
    %c0_i32_1 = arith.constant 0 : i32
    return %c0_i32, %c0_i32_0 : i32, i32
  }
  func.func @transform_2(%arg0: i32) -> (i32, i32) {
    %c0_i32 = arith.constant 0 : i32
    %c0_i32_0 = arith.constant 0 : i32
    %c0_i32_1 = arith.constant 0 : i32
    return %c0_i32, %c0_i32_0 : i32, i32
  }
  func.func @transform_3(%arg0: i32) -> (i32, i32) {
    %c0_i32 = arith.constant 0 : i32
    %c0_i32_0 = arith.constant 0 : i32
    %c0_i32_1 = arith.constant 0 : i32
    return %c0_i32, %c0_i32_0 : i32, i32
  }
  func.func @transform_4(%arg0: i32) -> (i32, i32) {
    %c0_i32 = arith.constant 0 : i32
    %c0_i32_0 = arith.constant 0 : i32
    %c0_i32_1 = arith.constant 0 : i32
    return %c0_i32, %c0_i32_0 : i32, i32
  }
  func.func @transform_5(%arg0: i32) -> (i32, i32) {
    %c0_i32 = arith.constant 0 : i32
    %c0_i32_0 = arith.constant 0 : i32
    %c0_i32_1 = arith.constant 0 : i32
    return %c0_i32, %c0_i32_0 : i32, i32
  }
  func.func @transform_6(%arg0: i32) -> (i32, i32) {
    %c0_i32 = arith.constant 0 : i32
    %c0_i32_0 = arith.constant 0 : i32
    %c0_i32_1 = arith.constant 0 : i32
    return %c0_i32, %c0_i32_0 : i32, i32
  }
  func.func @transform_7(%arg0: i32) -> (i32, i32) {
    %c0_i32 = arith.constant 0 : i32
    %c0_i32_0 = arith.constant 0 : i32
    %c0_i32_1 = arith.constant 0 : i32
    return %c0_i32, %c0_i32_0 : i32, i32
  }
  func.func @transform_8(%arg0: i32) -> (i32, i32) {
    %c0_i32 = arith.constant 0 : i32
    %c0_i32_0 = arith.constant 0 : i32
    %c0_i32_1 = arith.constant 0 : i32
    return %c0_i32, %c0_i32_0 : i32, i32
  }
  func.func @transform_9(%arg0: i32) -> (i32, i32) {
    %c0_i32 = arith.constant 0 : i32
    %c0_i32_0 = arith.constant 0 : i32
    %c0_i32_1 = arith.constant 0 : i32
    return %c0_i32, %c0_i32_0 : i32, i32
  }
  func.func @transform_10(%arg0: i32) -> (i32, i32) {
    %c0_i32 = arith.constant 0 : i32
    %c0_i32_0 = arith.constant 0 : i32
    %c0_i32_1 = arith.constant 0 : i32
    return %c0_i32, %c0_i32_0 : i32, i32
  }
  func.func @transform_11(%arg0: i32) -> (i32, i32) {
    %c0_i32 = arith.constant 0 : i32
    %c0_i32_0 = arith.constant 0 : i32
    %c0_i32_1 = arith.constant 0 : i32
    return %c0_i32, %c0_i32_0 : i32, i32
  }
  func.func @transform_12(%arg0: i32) -> (i32, i32) {
    %c0_i32 = arith.constant 0 : i32
    %c0_i32_0 = arith.constant 0 : i32
    %c0_i32_1 = arith.constant 0 : i32
    return %c0_i32, %c0_i32_0 : i32, i32
  }
  func.func @transform_13(%arg0: i32) -> (i32, i32) {
    %c0_i32 = arith.constant 0 : i32
    %c0_i32_0 = arith.constant 0 : i32
    %c0_i32_1 = arith.constant 0 : i32
    return %c0_i32, %c0_i32_0 : i32, i32
  }
  func.func @transform_14(%arg0: i32) -> (i32, i32) {
    %c0_i32 = arith.constant 0 : i32
    %c0_i32_0 = arith.constant 0 : i32
    %c0_i32_1 = arith.constant 0 : i32
    return %c0_i32, %c0_i32_0 : i32, i32
  }
  func.func @transform_15(%arg0: i32) -> (i32, i32) {
    %c0_i32 = arith.constant 0 : i32
    %c0_i32_0 = arith.constant 0 : i32
    %c0_i32_1 = arith.constant 0 : i32
    return %c0_i32, %c0_i32_0 : i32, i32
  }
  func.func @transform_16(%arg0: i32) -> (i32, i32) {
    %c0_i32 = arith.constant 0 : i32
    %c0_i32_0 = arith.constant 0 : i32
    %c0_i32_1 = arith.constant 0 : i32
    return %c0_i32, %c0_i32_0 : i32, i32
  }
  func.func @transform_17(%arg0: i32) -> (i32, i32) {
    %c0_i32 = arith.constant 0 : i32
    %c0_i32_0 = arith.constant 0 : i32
    %c0_i32_1 = arith.constant 0 : i32
    return %c0_i32, %c0_i32_0 : i32, i32
  }
  func.func @transform_18(%arg0: i32) -> (i32, i32) {
    %c0_i32 = arith.constant 0 : i32
    %c0_i32_0 = arith.constant 0 : i32
    return %arg0, %c0_i32 : i32, i32
  }
}

</mosaic_0001>

<bundles_post_ra>
// kernel: componet_agent_forward.1
= control target key start
LH: loop header
LB: loop body
LE: loop exit
PB: predicated region body
PF: predicated region fallthrough
CT: control target
= control target key end

     0   :  { %s10024_s0 = inlined_call_operand.vmem [shape: f32[16,16], index: 0, kind: input, shape index: {}]   ;;  %s10025_s1 = inlined_call_operand.hbm [shape: bf16[16,1536], index: 1, kind: input, shape index: {}]   ;;  %s10026_s2 = inlined_call_operand.hbm [shape: f32[1,1536], index: 2, kind: input, shape index: {}]   ;;  %s10027_s3 = inlined_call_operand.hbm [shape: bf16[1024,1024], index: 3, kind: input, shape index: {}]   ;;  %s10028_s4 = inlined_call_operand.hbm [shape: f32[1,1024], index: 4, kind: input, shape index: {}]   ;;  %s10029_s5 = inlined_call_operand.vmem [shape: bf16[1024,32], index: 5, kind: input, shape index: {}]   ;;  %s10030_s6 = inlined_call_operand.hbm [shape: f32[1,32], index: 6, kind: input, shape index: {}]   ;;  %s10031_s7 = inlined_call_operand.hbm [shape: bf16[256,256], index: 7, kind: input, shape index: {}]   ;;  %s10032_s8 = inlined_call_operand.hbm [shape: f32[1,256], index: 8, kind: input, shape index: {}]   ;;  %s10033_s9 = inlined_call_operand.hbm [shape: bf16[32,768], index: 9, kind: input, shape index: {}]   ;;  %s10034_s10 = inlined_call_operand.hbm [shape: f32[1,768], index: 10, kind: input, shape index: {}]   ;;  %s10035_s11 = inlined_call_operand.hbm [shape: bf16[8,256], index: 11, kind: input, shape index: {}]   ;;  %s10036_s12 = inlined_call_operand.hbm [shape: f32[1,256], index: 12, kind: input, shape index: {}]   ;;  %s10037_s13 = inlined_call_operand.hbm [shape: bf16[256,256], index: 13, kind: input, shape index: {}]   ;;  %s10038_s14 = inlined_call_operand.hbm [shape: bf16[256,256], index: 14, kind: input, shape index: {}]   ;;  %s10039_s15 = inlined_call_operand.hbm [shape: f32[1,256], index: 15, kind: input, shape index: {}]   ;;  %s10040_s16 = inlined_call_operand.vmem [shape: bf16[256,8], index: 16, kind: input, shape index: {}]   ;;  %s10041_s17 = inlined_call_operand.hbm [shape: f32[1,8], index: 17, kind: input, shape index: {}]   ;;  %s10042_s18 = inlined_call_operand.vmem [shape: f32[16,16], index: 18, kind: output, shape index: {}]  }
   0x1   :  { %10055 = sst [smem:[#allocation34_spill]] %s10024_s0 }
   0x2   :  { %10056 = sst [smem:[#allocation35_spill]] %s10025_s1 }
   0x3   :  { %10057 = sst [smem:[#allocation36_spill]] %s10026_s2 }
   0x4   :  { %10058 = sst [smem:[#allocation37_spill]] %s10028_s4 }
   0x5   :  { %10059 = sst [smem:[#allocation38_spill]] %s10029_s5 }
   0x6   :  { %10060 = sst [smem:[#allocation39_spill]] %s10031_s7 }
   0x7   :  { %10061 = sst [smem:[#allocation40_spill]] %s10033_s9 }
   0x8   :  { %10062 = sst [smem:[#allocation41_spill]] %s10040_s16 }
   0x9   :  { %10063 = sst [smem:[#allocation42_spill]] %s10042_s18 }
   0xa   :  { %23 = vsyncpa [#allocation3], 0 }
   0xb   :  { %24 = vsyncpa [#allocation5], 0 }
   0xc   :  { %25 = vsyncpa [#allocation8], 0 }
   0xd   :  { %26 = vsyncpa [#allocation11], 0 }
   0xe   :  { %27 = vsyncpa [#allocation14], 0 }
   0xf   :  { %28 = vsyncpa [#allocation17], 0 }
  0x10   :  { %29 = vsyncpa [#allocation20], 0 }
  0x11   :  { %30 = vsyncpa [#allocation23], 0  ;;  %s9128_s27 = smov 0  }
  0x12 LB: > { %10064 = sst [smem:[#allocation33_spill]] %s9003_s27  ;;  %s9005_s28 = smov [#allocation4]   ;;  %s9003_s27 = sphi %s9128_s27, %s36_s27  }
  0x13   : > { %s476_s29 = sshll.u32 %s9005_s28, 4  ;;  %s9134_s30 = sadd.s32 4294967295, %s9003_s27   ;;  %s9139_s29 = int_to_ptr.vmem [resolvable:$true] %s476_s29 }
  0x14   : > { %p7156_p0 = scmp.ge.s32.totalorder %s9003_s27, 1  ;;  %p450_p1 = scmp.lt.s32.totalorder %s9003_s27, 3 }
  0x15   : > { %p10048_p2 = scmp.eq.s32.totalorder %s9134_s30, 0  ;;  %s9006_s19 = smov [#allocation7]  }
  0x16   : > { %p9141_p3 = pnand %p7156_p0, %p450_p1  ;;  %s500_s1 = sshll.u32 %s9006_s19, 4  ;;  %s9147_s1 = int_to_ptr.vmem [resolvable:$true] %s500_s1 }
  0x17   : > { %s9007_s20 = smov [#allocation10]   ;;  %s9008_s2 = smov [#allocation13]  }
  0x18   : > { %s10065_s0 = scalar_select %p9141_p3, 1, 0 }
  0x19   : > { %p8152_p4 = pneg %p9141_p3  ;;  %s524_s21 = sshll.u32 %s9007_s20, 4  ;;  %s9155_s21 = int_to_ptr.vmem [resolvable:$true] %s524_s21 }
  0x1a   : > { %s9157_s23 = sshll.u32 %s9008_s2, 4  ;;  %s10067_s26 = sld [smem:[#allocation36_spill]]  ;;  %s549_s23 = int_to_ptr.vmem [resolvable:$true] %s9157_s23 }
  0x1b   : > { %p9151_p5 = pnand %p10048_p2, %p8152_p4 }
  0x1d   : > { %p9167_p7 = pneg %p9151_p5 }
  0x20   : > { %s8545_s28 = scalar_lea.hbm %s10067_s26, 192 }
  0x21   : > { %p8546_p6 = scmp.ne.s32.totalorder %s10067_s26, %s8545_s28  ;;  %p8552_p10 = scmp.lt.u32.totalorder %s8545_s28, %s10067_s26 }
  0x23   : > { %p8548_p8 = pnand %p9167_p7, %p8546_p6 }
  0x25   : > { %p8549_p9 = pneg %p8548_p8 }
  0x27   : > { %p8554_p11 = pnand %p8552_p10, %p8549_p9 }
  0x29   : > { %8557 = shalt.err (!%p8554_p11)
}
  0x2a   : > { %s8558_s27 = scalar_lea.vmem %s9139_s29, 192  ;;  %p8566_p1 = scmp.lt.s32.totalorder %s9139_s29, %s9139_s29 }
  0x2b   : > { %p8559_p12 = scmp.ne.s32.totalorder %s9139_s29, %s8558_s27  ;;  %p8567_p4 = scmp.lt.s32.totalorder %s8558_s27, %s8558_s27 }
  0x2d   : > { %p8561_p13 = pnand %p8559_p12, %p9167_p7  ;;  %p8568_p6 = por %p8567_p4, %p8566_p1 }
  0x2f   : > { %p8562_p0 = pneg %p8561_p13 }
  0x31   : > { %p8569_p8 = pnand %p8568_p6, %p8562_p0 }
  0x33   : > { %8572 = shalt.err (!%p8569_p8)
}
  0x34   : > { %8158 = dma.hbm_to_vmem [thread:$0]  (!%p9151_p5), %s10067_s26, 192, %s9139_s29, [#allocation5]  }
  0x35   : > { %s10069_s4 = sld [smem:[#allocation37_spill]] }
  0x3b   : > { %s8573_s19 = scalar_lea.hbm %s10069_s4, 128 }
  0x3c   : > { %p8574_p9 = scmp.ne.s32.totalorder %s10069_s4, %s8573_s19  ;;  %p8580_p12 = scmp.lt.u32.totalorder %s8573_s19, %s10069_s4 }
  0x3e   : > { %p8576_p10 = pnand %p8574_p9, %p9167_p7 }
  0x40   : > { %p8577_p11 = pneg %p8576_p10 }
  0x42   : > { %p8582_p13 = pnand %p8580_p12, %p8577_p11 }
  0x44   : > { %8585 = shalt.err (!%p8582_p13)
}
  0x45   : > { %s8586_s29 = scalar_lea.vmem %s9147_s1, 128  ;;  %p8594_p6 = scmp.lt.s32.totalorder %s9147_s1, %s9147_s1 }
  0x46   : > { %p8587_p0 = scmp.ne.s32.totalorder %s9147_s1, %s8586_s29  ;;  %p8595_p8 = scmp.lt.s32.totalorder %s8586_s29, %s8586_s29 }
  0x48   : > { %p8589_p1 = pnand %p8587_p0, %p9167_p7  ;;  %p8596_p9 = por %p8595_p8, %p8594_p6 }
  0x4a   : > { %p8590_p4 = pneg %p8589_p1 }
  0x4c   : > { %p8597_p10 = pnand %p8596_p9, %p8590_p4 }
  0x4e   : > { %8600 = shalt.err (!%p8597_p10)
}
  0x4f   : > { %8164 = dma.hbm_to_vmem [thread:$0]  (!%p9151_p5), %s10069_s4, 128, %s9147_s1, [#allocation8]  }
  0x50   : > { %s10070_s7 = sld [smem:[#allocation39_spill]] }
  0x56   : > { %s8601_s25 = scalar_lea.hbm %s10070_s7, 4096 }
  0x57   : > { %p8602_p11 = scmp.ne.s32.totalorder %s10070_s7, %s8601_s25  ;;  %p8608_p0 = scmp.lt.u32.totalorder %s8601_s25, %s10070_s7 }
  0x59   : > { %p8604_p12 = pnand %p8602_p11, %p9167_p7 }
  0x5b   : > { %p8605_p13 = pneg %p8604_p12 }
  0x5d   : > { %p8610_p1 = pnand %p8608_p0, %p8605_p13 }
  0x5f   : > { %8613 = shalt.err (!%p8610_p1)
}
  0x60   : > { %s8614_s1 = scalar_lea.vmem %s9155_s21, 4096  ;;  %p8622_p9 = scmp.lt.s32.totalorder %s9155_s21, %s9155_s21 }
  0x61   : > { %p8615_p4 = scmp.ne.s32.totalorder %s9155_s21, %s8614_s1  ;;  %p8623_p10 = scmp.lt.s32.totalorder %s8614_s1, %s8614_s1 }
  0x63   : > { %p8617_p6 = pnand %p8615_p4, %p9167_p7  ;;  %p8624_p11 = por %p8623_p10, %p8622_p9 }
  0x65   : > { %p8618_p8 = pneg %p8617_p6 }
  0x67   : > { %p8625_p12 = pnand %p8624_p11, %p8618_p8 }
  0x69   : > { %8628 = shalt.err (!%p8625_p12)
}
  0x6a   : > { %s10050_s29 = smov 128   ;;  %s10052_s5 = smov 8  }
  0x6b   : > { %8170 = dma.hbm_to_vmem [thread:$0]  (!%p9151_p5), %s10070_s7, 4096, %s9155_s21, [#allocation11], %s10050_s29, %s10050_s29, %s10052_s5  }
  0x6c   : > { %s10071_s9 = sld [smem:[#allocation40_spill]] }
  0x72   : > { %s8629_s28 = scalar_lea.hbm %s10071_s9, 1536 }
  0x73   : > { %p8630_p13 = scmp.ne.s32.totalorder %s10071_s9, %s8629_s28  ;;  %p8636_p4 = scmp.lt.u32.totalorder %s8629_s28, %s10071_s9 }
  0x75   : > { %p8632_p0 = pnand %p8630_p13, %p9167_p7 }
  0x77   : > { %p8633_p1 = pneg %p8632_p0 }
  0x79   : > { %p8638_p6 = pnand %p8636_p4, %p8633_p1 }
  0x7b   : > { %8641 = shalt.err (!%p8638_p6)
}
  0x7c   : > { %s8642_s16 = scalar_lea.vmem %s549_s23, 1536  ;;  %p8650_p11 = scmp.lt.s32.totalorder %s549_s23, %s549_s23 }
  0x7d   : > { %p8643_p8 = scmp.ne.s32.totalorder %s549_s23, %s8642_s16  ;;  %p8651_p12 = scmp.lt.s32.totalorder %s8642_s16, %s8642_s16 }
  0x7f   : > { %p8645_p9 = pnand %p8643_p8, %p9167_p7  ;;  %p8652_p2 = por %p8651_p12, %p8650_p11 }
  0x81   : > { %p8646_p10 = pneg %p8645_p9 }
  0x83   : > { %p8653_p3 = pnand %p8652_p2, %p8646_p10 }
  0x85   : > { %8656 = shalt.err (!%p8653_p3)
}
  0x86   : > { %s9011_s21 = smov 384   ;;  %s9012_s18 = smov 24  }
  0x87   : > { %8176 = dma.hbm_to_vmem [thread:$0]  (!%p9151_p5), %s10071_s9, 1536, %s549_s23, [#allocation14], %s9011_s21, %s9011_s21, %s9012_s18  }
  0x88   : > { %s9013_s28 = smov [#allocation16]   ;;  %s9014_s2 = smov [#allocation19]  }
  0x89   : > { %s573_s19 = sshll.u32 %s9013_s28, 4  ;;  %s594_s27 = sshll.u32 %s9014_s2, 4  ;;  %s574_s19 = int_to_ptr.vmem [resolvable:$true] %s573_s19  ;;  %s595_s27 = int_to_ptr.vmem [resolvable:$true] %s594_s27 }
  0x8a   : > { %s8657_s16 = scalar_lea.hbm %s10035_s11, 128 }
  0x8b   : > { %p8658_p2 = scmp.ne.s32.totalorder %s10035_s11, %s8657_s16  ;;  %p8664_p0 = scmp.lt.u32.totalorder %s8657_s16, %s10035_s11 }
  0x8d   : > { %p8660_p3 = pnand %p8658_p2, %p9167_p7 }
  0x8f   : > { %p8661_p13 = pneg %p8660_p3 }
  0x91   : > { %p8666_p1 = pnand %p8664_p0, %p8661_p13 }
  0x93   : > { %8669 = shalt.err (!%p8666_p1)
}
  0x94   : > { %s8670_s23 = scalar_lea.vmem %s574_s19, 128  ;;  %p8678_p9 = scmp.lt.s32.totalorder %s574_s19, %s574_s19 }
  0x95   : > { %p8671_p4 = scmp.ne.s32.totalorder %s574_s19, %s8670_s23  ;;  %p8679_p10 = scmp.lt.s32.totalorder %s8670_s23, %s8670_s23 }
  0x97   : > { %p8673_p6 = pnand %p8671_p4, %p9167_p7  ;;  %p8680_p11 = por %p8679_p10, %p8678_p9 }
  0x99   : > { %p8674_p8 = pneg %p8673_p6 }
  0x9b   : > { %p8681_p12 = pnand %p8680_p11, %p8674_p8 }
  0x9d   : > { %8684 = shalt.err (!%p8681_p12)
}
  0x9e   : > { %8182 = dma.hbm_to_vmem [thread:$0]  (!%p9151_p5), %s10035_s11, 128, %s574_s19, [#allocation17]  }
  0x9f   : > { %s8685_s5 = scalar_lea.hbm %s10037_s13, 4096 }
  0xa0   : > { %p8686_p2 = scmp.ne.s32.totalorder %s10037_s13, %s8685_s5  ;;  %p8692_p0 = scmp.lt.u32.totalorder %s8685_s5, %s10037_s13 }
  0xa2   : > { %p8688_p3 = pnand %p8686_p2, %p9167_p7 }
  0xa4   : > { %p8689_p13 = pneg %p8688_p3 }
  0xa6   : > { %p8694_p1 = pnand %p8692_p0, %p8689_p13 }
  0xa8   : > { %8697 = shalt.err (!%p8694_p1)
}
  0xa9   : > { %s8698_s28 = scalar_lea.vmem %s595_s27, 4096  ;;  %p8706_p9 = scmp.lt.s32.totalorder %s595_s27, %s595_s27 }
  0xaa   : > { %p8699_p4 = scmp.ne.s32.totalorder %s595_s27, %s8698_s28  ;;  %p8707_p10 = scmp.lt.s32.totalorder %s8698_s28, %s8698_s28 }
  0xac   : > { %p8701_p6 = pnand %p8699_p4, %p9167_p7  ;;  %p8708_p11 = por %p8707_p10, %p8706_p9 }
  0xae   : > { %p8702_p8 = pneg %p8701_p6 }
  0xb0   : > { %p8709_p12 = pnand %p8708_p11, %p8702_p8 }
  0xb2   : > { %8712 = shalt.err (!%p8709_p12)
}
  0xb3   : > { %s10072_s19 = smov 8   ;;  %s10073_s2 = smov 128  }
  0xb4   : > { %8188 = dma.hbm_to_vmem [thread:$0]  (!%p9151_p5), %s10037_s13, 4096, %s595_s27, [#allocation20], %s10073_s2, %s10073_s2, %s10072_s19  }
  0xb5   : > { %s9015_s23 = smov [#allocation22]   ;;  %s9016_s29 = smov [#allocation2]  }
  0xb6   : > { %s621_s4 = sshll.u32 %s9015_s23, 4  ;;  %s462_s7 = sshll.u32 %s9016_s29, 4  ;;  %s622_s4 = int_to_ptr.vmem [resolvable:$true] %s621_s4  ;;  %s463_s7 = int_to_ptr.vmem [resolvable:$true] %s462_s7 }
  0xb7   : > { %s8713_s21 = scalar_lea.hbm %s10039_s15, 32 }
  0xb8   : > { %p8714_p2 = scmp.ne.s32.totalorder %s10039_s15, %s8713_s21  ;;  %p8720_p0 = scmp.lt.u32.totalorder %s8713_s21, %s10039_s15 }
  0xba   : > { %p8716_p3 = pnand %p8714_p2, %p9167_p7 }
  0xbc   : > { %p8717_p13 = pneg %p8716_p3 }
  0xbe   : > { %p8722_p1 = pnand %p8720_p0, %p8717_p13 }
  0xc0   : > { %8725 = shalt.err (!%p8722_p1)
}
  0xc1   : > { %s8726_s27 = scalar_lea.vmem %s622_s4, 32  ;;  %p8734_p9 = scmp.lt.s32.totalorder %s622_s4, %s622_s4 }
  0xc2   : > { %p8727_p4 = scmp.ne.s32.totalorder %s622_s4, %s8726_s27  ;;  %p8735_p10 = scmp.lt.s32.totalorder %s8726_s27, %s8726_s27 }
  0xc4   : > { %p8729_p6 = pnand %p8727_p4, %p9167_p7  ;;  %p8736_p11 = por %p8735_p10, %p8734_p9 }
  0xc6   : > { %p8730_p8 = pneg %p8729_p6 }
  0xc8   : > { %p8737_p12 = pnand %p8736_p11, %p8730_p8 }
  0xca   : > { %8740 = shalt.err (!%p8737_p12)
}
  0xcb   : > { %8194 = dma.hbm_to_vmem [thread:$0]  (!%p9151_p5), %s10039_s15, 32, %s622_s4, [#allocation23]  }
  0xcc   : > { %s10074_s26 = sld [smem:[#allocation35_spill]] }
  0xd2   : > { %s8741_s5 = scalar_lea.hbm %s10074_s26, 1536 }
  0xd3   : > { %p8742_p2 = scmp.ne.s32.totalorder %s10074_s26, %s8741_s5  ;;  %p8748_p0 = scmp.lt.u32.totalorder %s8741_s5, %s10074_s26 }
  0xd5   : > { %p8744_p3 = pnand %p8742_p2, %p9167_p7 }
  0xd7   : > { %p8745_p13 = pneg %p8744_p3 }
  0xd9   : > { %p8750_p1 = pnand %p8748_p0, %p8745_p13 }
  0xdb   : > { %8753 = shalt.err (!%p8750_p1)
}
  0xdc   : > { %s8754_s28 = scalar_lea.vmem %s463_s7, 1536  ;;  %p8762_p9 = scmp.lt.s32.totalorder %s463_s7, %s463_s7 }
  0xdd   : > { %p8755_p4 = scmp.ne.s32.totalorder %s463_s7, %s8754_s28  ;;  %p8763_p10 = scmp.lt.s32.totalorder %s8754_s28, %s8754_s28 }
  0xdf   : > { %p8757_p6 = pnand %p8755_p4, %p9167_p7  ;;  %p8764_p11 = por %p8763_p10, %p8762_p9 }
  0xe1   : > { %p8758_p8 = pneg %p8757_p6 }
  0xe3   : > { %p8765_p12 = pnand %p8764_p11, %p8758_p8 }
  0xe5   : > { %8768 = shalt.err (!%p8765_p12)
}
  0xe6   : > { %s9017_s4 = smov 768   ;;  %s9018_s27 = smov 48  }
  0xe7   : > { %8155 = dma.hbm_to_vmem [thread:$0]  (!%p9151_p5), %s10074_s26, 1536, %s463_s7, [#allocation3], %s9017_s4, %s9017_s4, %s9018_s27  }
  0xe8   : > { %s9019_s23 = smov [#allocation6]   ;;  %s8769_s18 = scalar_lea.hbm %s10027_s3, 65536 }
  0xe9   : > { %s486_s29 = sshll.u32 %s9019_s23, 4  ;;  %p8770_p2 = scmp.ne.s32.totalorder %s10027_s3, %s8769_s18  ;;  %s487_s29 = int_to_ptr.vmem [resolvable:$true] %s486_s29 }
  0xea   : > { %p8776_p0 = scmp.lt.u32.totalorder %s8769_s18, %s10027_s3 }
  0xeb   : > { %p8772_p3 = pnand %p8770_p2, %p9167_p7 }
  0xed   : > { %p8773_p13 = pneg %p8772_p3 }
  0xef   : > { %p8778_p1 = pnand %p8776_p0, %p8773_p13 }
  0xf1   : > { %8781 = shalt.err (!%p8778_p1)
}
  0xf2   : > { %s8782_s7 = scalar_lea.vmem %s487_s29, 65536  ;;  %p8790_p9 = scmp.lt.s32.totalorder %s487_s29, %s487_s29 }
  0xf3   : > { %p8783_p4 = scmp.ne.s32.totalorder %s487_s29, %s8782_s7  ;;  %p8791_p10 = scmp.lt.s32.totalorder %s8782_s7, %s8782_s7 }
  0xf5   : > { %p8785_p6 = pnand %p8783_p4, %p9167_p7  ;;  %p8792_p11 = por %p8791_p10, %p8790_p9 }
  0xf7   : > { %p8786_p8 = pneg %p8785_p6 }
  0xf9   : > { %p8793_p12 = pnand %p8792_p11, %p8786_p8 }
  0xfb   : > { %8796 = shalt.err (!%p8793_p12)
}
  0xfc   : > { %s9020_s4 = smov 512   ;;  %s9021_s27 = smov 32  }
  0xfd   : > { %8161 = dma.hbm_to_vmem [thread:$0]  (!%p9151_p5), %s10027_s3, 65536, %s487_s29, [#allocation5], %s9020_s4, %s9020_s4, %s9021_s27  }
  0xfe   : > { %s9022_s16 = smov [#allocation9]   ;;  %s9023_s5 = smov [#allocation12]  }
  0xff   : > { %s514_s23 = sshll.u32 %s9022_s16, 4  ;;  %s538_s21 = sshll.u32 %s9023_s5, 4  ;;  %s515_s23 = int_to_ptr.vmem [resolvable:$true] %s514_s23  ;;  %s9349_s21 = int_to_ptr.vmem [resolvable:$true] %s538_s21 }
 0x100   : > { %s8797_s25 = scalar_lea.hbm %s10030_s6, 16 }
 0x101   : > { %p8798_p2 = scmp.ne.s32.totalorder %s10030_s6, %s8797_s25  ;;  %p8804_p0 = scmp.lt.u32.totalorder %s8797_s25, %s10030_s6 }
 0x103   : > { %p8800_p3 = pnand %p8798_p2, %p9167_p7 }
 0x105   : > { %p8801_p13 = pneg %p8800_p3 }
 0x107   : > { %p8806_p1 = pnand %p8804_p0, %p8801_p13 }
 0x109   : > { %8809 = shalt.err (!%p8806_p1)
}
 0x10a   : > { %s8810_s4 = scalar_lea.vmem %s515_s23, 16  ;;  %s8817_s27 = scalar_lea.vmem %s515_s23, 32 }
 0x10b   : > { %p8811_p4 = scmp.ne.s32.totalorder %s515_s23, %s8810_s4  ;;  %p8818_p9 = scmp.lt.s32.totalorder %s515_s23, %s515_s23 }
 0x10c   : > { %p8819_p10 = scmp.lt.s32.totalorder %s8817_s27, %s8810_s4 }
 0x10d   : > { %p8813_p6 = pnand %p8811_p4, %p9167_p7 }
 0x10e   : > { %p8820_p11 = por %p8819_p10, %p8818_p9 }
 0x10f   : > { %p8814_p8 = pneg %p8813_p6 }
 0x111   : > { %p8821_p12 = pnand %p8820_p11, %p8814_p8 }
 0x113   : > { %8824 = shalt.err (!%p8821_p12)
}
 0x114   : > { %8167 = dma.hbm_to_vmem [thread:$0]  (!%p9151_p5), %s10030_s6, 16, %s515_s23, [#allocation8]  }
 0x115   : > { %s8825_s24 = scalar_lea.hbm %s10032_s8, 32 }
 0x116   : > { %p8826_p2 = scmp.ne.s32.totalorder %s10032_s8, %s8825_s24  ;;  %p8832_p0 = scmp.lt.u32.totalorder %s8825_s24, %s10032_s8 }
 0x118   : > { %p8828_p3 = pnand %p8826_p2, %p9167_p7 }
 0x11a   : > { %p8829_p13 = pneg %p8828_p3 }
 0x11c   : > { %p8834_p1 = pnand %p8832_p0, %p8829_p13 }
 0x11e   : > { %8837 = shalt.err (!%p8834_p1)
}
 0x11f   : > { %s8838_s23 = scalar_lea.vmem %s9349_s21, 32  ;;  %p8846_p9 = scmp.lt.s32.totalorder %s9349_s21, %s9349_s21 }
 0x120   : > { %p8839_p4 = scmp.ne.s32.totalorder %s9349_s21, %s8838_s23  ;;  %p8847_p10 = scmp.lt.s32.totalorder %s8838_s23, %s8838_s23 }
 0x122   : > { %p8841_p6 = pnand %p8839_p4, %p9167_p7  ;;  %p8848_p11 = por %p8847_p10, %p8846_p9 }
 0x124   : > { %p8842_p8 = pneg %p8841_p6 }
 0x126   : > { %p8849_p12 = pnand %p8848_p11, %p8842_p8 }
 0x128   : > { %8852 = shalt.err (!%p8849_p12)
}
 0x129   : > { %8173 = dma.hbm_to_vmem [thread:$0]  (!%p9151_p5), %s10032_s8, 32, %s9349_s21, [#allocation11]  }
 0x12a   : > { %s9024_s27 = smov [#allocation15]   ;;  %s9025_s16 = smov [#allocation18]  }
 0x12b   : > { %s562_s1 = sshll.u32 %s9024_s27, 4  ;;  %s584_s5 = sshll.u32 %s9025_s16, 4  ;;  %s563_s1 = int_to_ptr.vmem [resolvable:$true] %s562_s1  ;;  %s9392_s5 = int_to_ptr.vmem [resolvable:$true] %s584_s5 }
 0x12c   : > { %s8853_s25 = scalar_lea.hbm %s10034_s10, 96 }
 0x12d   : > { %p8854_p2 = scmp.ne.s32.totalorder %s10034_s10, %s8853_s25  ;;  %p8860_p0 = scmp.lt.u32.totalorder %s8853_s25, %s10034_s10 }
 0x12f   : > { %p8856_p3 = pnand %p8854_p2, %p9167_p7 }
 0x131   : > { %p8857_p13 = pneg %p8856_p3 }
 0x133   : > { %p8862_p1 = pnand %p8860_p0, %p8857_p13 }
 0x135   : > { %8865 = shalt.err (!%p8862_p1)
}
 0x136   : > { %s8866_s23 = scalar_lea.vmem %s563_s1, 96  ;;  %p8874_p9 = scmp.lt.s32.totalorder %s563_s1, %s563_s1 }
 0x137   : > { %p8867_p4 = scmp.ne.s32.totalorder %s563_s1, %s8866_s23  ;;  %p8875_p10 = scmp.lt.s32.totalorder %s8866_s23, %s8866_s23 }
 0x139   : > { %p8869_p6 = pnand %p8867_p4, %p9167_p7  ;;  %p8876_p11 = por %p8875_p10, %p8874_p9 }
 0x13b   : > { %p8870_p8 = pneg %p8869_p6 }
 0x13d   : > { %p8877_p12 = pnand %p8876_p11, %p8870_p8 }
 0x13f   : > { %8880 = shalt.err (!%p8877_p12)
}
 0x140   : > { %8179 = dma.hbm_to_vmem [thread:$0]  (!%p9151_p5), %s10034_s10, 96, %s563_s1, [#allocation14]  }
 0x141   : > { %s8881_s18 = scalar_lea.hbm %s10036_s12, 32 }
 0x142   : > { %p8882_p2 = scmp.ne.s32.totalorder %s10036_s12, %s8881_s18  ;;  %p8888_p0 = scmp.lt.u32.totalorder %s8881_s18, %s10036_s12 }
 0x144   : > { %p8884_p3 = pnand %p8882_p2, %p9167_p7 }
 0x146   : > { %p8885_p13 = pneg %p8884_p3 }
 0x148   : > { %p8890_p1 = pnand %p8888_p0, %p8885_p13 }
 0x14a   : > { %8893 = shalt.err (!%p8890_p1)
}
 0x14b   : > { %s8894_s1 = scalar_lea.vmem %s9392_s5, 32  ;;  %p8902_p9 = scmp.lt.s32.totalorder %s9392_s5, %s9392_s5 }
 0x14c   : > { %p8895_p4 = scmp.ne.s32.totalorder %s9392_s5, %s8894_s1  ;;  %p8903_p10 = scmp.lt.s32.totalorder %s8894_s1, %s8894_s1 }
 0x14e   : > { %p8897_p6 = pnand %p8895_p4, %p9167_p7  ;;  %p8904_p11 = por %p8903_p10, %p8902_p9 }
 0x150   : > { %p8898_p8 = pneg %p8897_p6 }
 0x152   : > { %p8905_p12 = pnand %p8904_p11, %p8898_p8 }
 0x154   : > { %8908 = shalt.err (!%p8905_p12)
}
 0x155   : > { %8185 = dma.hbm_to_vmem [thread:$0]  (!%p9151_p5), %s10036_s12, 32, %s9392_s5, [#allocation17]  }
 0x156   : > { %s9026_s23 = smov [#allocation21]   ;;  %s9027_s4 = smov [#allocation24]  }
 0x157   : > { %s607_s29 = sshll.u32 %s9026_s23, 4  ;;  %s635_s27 = sshll.u32 %s9027_s4, 4  ;;  %s608_s29 = int_to_ptr.vmem [resolvable:$true] %s607_s29  ;;  %s9435_s27 = int_to_ptr.vmem [resolvable:$true] %s635_s27 }
 0x158   : > { %s8909_s24 = scalar_lea.hbm %s10038_s14, 4096 }
 0x159   : > { %p8910_p2 = scmp.ne.s32.totalorder %s10038_s14, %s8909_s24  ;;  %p8916_p0 = scmp.lt.u32.totalorder %s8909_s24, %s10038_s14 }
 0x15b   : > { %p8912_p3 = pnand %p8910_p2, %p9167_p7 }
 0x15d   : > { %p8913_p13 = pneg %p8912_p3 }
 0x15f   : > { %p8918_p1 = pnand %p8916_p0, %p8913_p13 }
 0x161   : > { %8921 = shalt.err (!%p8918_p1)
}
 0x162   : > { %s8922_s1 = scalar_lea.vmem %s608_s29, 4096  ;;  %p8930_p9 = scmp.lt.s32.totalorder %s608_s29, %s608_s29 }
 0x163   : > { %p8923_p4 = scmp.ne.s32.totalorder %s608_s29, %s8922_s1  ;;  %p8931_p10 = scmp.lt.s32.totalorder %s8922_s1, %s8922_s1 }
 0x165   : > { %p8925_p6 = pnand %p8923_p4, %p9167_p7  ;;  %p8932_p11 = por %p8931_p10, %p8930_p9 }
 0x167   : > { %p8926_p8 = pneg %p8925_p6 }
 0x169   : > { %p8933_p12 = pnand %p8932_p11, %p8926_p8 }
 0x16b   : > { %8936 = shalt.err (!%p8933_p12)
}
 0x16c   : > { %8191 = dma.hbm_to_vmem [thread:$0]  (!%p9151_p5), %s10038_s14, 4096, %s608_s29, [#allocation20], %s10073_s2, %s10073_s2, %s10072_s19  }
 0x16d   : > { %s8937_s16 = scalar_lea.hbm %s10041_s17, 16 }
 0x16e   : > { %p8938_p2 = scmp.ne.s32.totalorder %s10041_s17, %s8937_s16  ;;  %p8944_p0 = scmp.lt.u32.totalorder %s8937_s16, %s10041_s17 }
 0x170   : > { %p8940_p3 = pnand %p8938_p2, %p9167_p7 }
 0x172   : > { %p8941_p13 = pneg %p8940_p3 }
 0x174   : > { %p8946_p1 = pnand %p8944_p0, %p8941_p13 }
 0x176   : > { %8949 = shalt.err (!%p8946_p1)
}
 0x177   : > { %s8950_s19 = scalar_lea.vmem %s9435_s27, 16  ;;  %s8957_s2 = scalar_lea.vmem %s9435_s27, 32 }
 0x178   : > { %p8951_p4 = scmp.ne.s32.totalorder %s9435_s27, %s8950_s19  ;;  %p8958_p9 = scmp.lt.s32.totalorder %s9435_s27, %s9435_s27 }
 0x179   : > { %p8959_p10 = scmp.lt.s32.totalorder %s8957_s2, %s8950_s19 }
 0x17a   : > { %p8953_p6 = pnand %p8951_p4, %p9167_p7 }
 0x17b   : > { %p8960_p11 = por %p8959_p10, %p8958_p9 }
 0x17c   : > { %p8954_p8 = pneg %p8953_p6 }
 0x17e   : > { %p8961_p12 = pnand %p8960_p11, %p8954_p8 }
 0x180   : > { %8964 = shalt.err (!%p8961_p12)
}
 0x181   : > { %8197 = dma.hbm_to_vmem [thread:$0]  (!%p9151_p5), %s10041_s17, 16, %s9435_s27, [#allocation23]  }
 0x182   : > { %p10075_p2 = scmp.ne.s32.totalorder %s10065_s0, 0 }
 0x183   : > { %p10076_p7 = scmp.eq.s32.totalorder (!%p10075_p2), %s9134_s30, 0 }
 0x184   : > { %655 = sbr.rel (%p10075_p2) target bundleno = 3128 (0xc38), region = 92 }
 0x18b   : > { %8970 = dma.done.wait (%p10076_p7), [#allocation3], 1536   ;;  %p10077_p3 = pmov %p10076_p7 }
 0x18d   : > { %8972 = vsyncadd (%p10077_p3), [#allocation3], 4294965760  ;;  %p10078_p13 = pmov %p10077_p3 }
 0x18e   : > { %p10079_p0 = pmov %p10077_p3 }
 0x18f   : > { %8974 = dma.done.wait (%p10078_p13), [#allocation5], 65728  }
 0x190   : > { %8976 = vsyncadd (%p10079_p0), [#allocation5], 4294901568  ;;  %p10080_p1 = pmov %p10079_p0 }
 0x191   : > { %p10081_p5 = pmov %p10079_p0 }
 0x192   : > { %8978 = dma.done.wait (%p10080_p1), [#allocation8], 144  }
 0x193   : > { %8980 = vsyncadd (%p10081_p5), [#allocation8], 4294967152  ;;  %p10082_p4 = pmov %p10079_p0 }
 0x194   : > { %p10083_p6 = pmov %p10079_p0 }
 0x195   : > { %8982 = dma.done.wait (%p10082_p4), [#allocation11], 4128  }
 0x196   : > { %8984 = vsyncadd (%p10083_p6), [#allocation11], 4294963168  ;;  %p10084_p8 = pmov %p10079_p0 }
 0x197   : > { %p10085_p9 = pmov %p10079_p0 }
 0x198   : > { %8986 = dma.done.wait (%p10084_p8), [#allocation14], 1632  }
 0x199   : > { %8988 = vsyncadd (%p10085_p9), [#allocation14], 4294965664  ;;  %p10086_p10 = pmov %p10079_p0 }
 0x19a   : > { %p10087_p11 = pmov %p10079_p0 }
 0x19b   : > { %8990 = dma.done.wait (%p10086_p10), [#allocation17], 160  }
 0x19c   : > { %8992 = vsyncadd (%p10087_p11), [#allocation17], 4294967136  ;;  %p10088_p12 = pmov %p10079_p0 }
 0x19d   : > { %p10089_p2 = pmov %p10079_p0 }
 0x19e   : > { %8994 = dma.done.wait (%p10088_p12), [#allocation20], 8192  }
 0x19f   : > { %8996 = vsyncadd (%p10089_p2), [#allocation20], 4294959104  ;;  %p10090_p7 = pmov %p10079_p0 }
 0x1a0   : > { %p10091_p3 = pmov %p10079_p0 }
 0x1a1   : > { %8998 = dma.done.wait (%p10090_p7), [#allocation23], 48  }
 0x1a2   : > { %9000 = vsyncadd (%p10091_p3), [#allocation23], 4294967248  ;;  %p763_p13 = scmp.lt.s32.totalorder %s9134_s30, 1  ;;  %v9028_v0 = vmov 0   ;;  %s10092_s27 = sld [smem:[#allocation34_spill]]  ;;  %vm910_vm0 = vcmask 130048  }
 0x1a3   : > { %946 = vmatprep.mubr.bf16.mxu0 %v9028_v0  ;;  %987 = vmatprep.mubr.bf16.mxu1 %v9028_v0  ;;  %v8264_v1 = vld [vmem:[#allocation2 + $0x4] ss:$48 sps:$4 sm:$0xff]   ;;  %v8266_v2 = vld [vmem:[#allocation2] ss:$48 sps:$4 sm:$0xff]   ;;  %v8267_v5 = vld [vmem:[#allocation2 + $0xc] ss:$48 sps:$4 sm:$0xff]  }
 0x1a4   : > { %s10098_s30 = smov (!%p763_p13, %s9134_s30), 1  ;;  %914 = vmatprep.subr.bf16.mxu0 %v8264_v1  ;;  %v8269_v6 = vld [vmem:[#allocation2 + $0x8] ss:$48 sps:$4 sm:$0xff]   ;;  %v8270_v7 = vld [vmem:[#allocation2 + $0x10] ss:$48 sps:$4 sm:$0xff]   ;;  %955 = vmatprep.subr.bf16.mxu1 %v8267_v5  ;;  %s10093_s21 = sld [smem:[#allocation38_spill]] }
 0x1a5   : > { %s7189_s0 = sshll.u32 %s10098_s30, 3  ;;  %915 = vmatpush1.bf16.msra.mxu0 %v8266_v2  ;;  %v8272_v8 = vld [vmem:[#allocation2 + $0x14] ss:$48 sps:$4 sm:$0xff]   ;;  %956 = vmatpush1.bf16.msra.mxu1 %v8269_v6  ;;  %v8273_v9 = vld [vmem:[#allocation2 + $0x18] ss:$48 sps:$4 sm:$0xff]   ;;  %v1178_v13 = vld [vmem:[#allocation6] sm:$0xff] }
 0x1a6   : > { %v8275_v10 = vld [vmem:[#allocation2 + $0x1c] ss:$48 sps:$4 sm:$0xff]   ;;  %996 = vmatprep.subr.bf16.mxu0 %v8272_v8  ;;  %v8278_v11 = vld [vmem:[#allocation2 + $0x24] ss:$48 sps:$4 sm:$0xff]   ;;  %v8276_v15 = vld [vmem:[#allocation2 + $0x20] ss:$48 sps:$4 sm:$0xff]  }
 0x1a7   : > { %1037 = vmatprep.subr.bf16.mxu1 %v8275_v10  ;;  %v8281_v12 = vld [vmem:[#allocation2 + $0x2c] ss:$48 sps:$4 sm:$0xff]   ;;  %v1179_v16 = vld [vmem:[#allocation6 + $0x8] sm:$0xff]  ;;  %vm5997_vm1 = vcmask 261120   ;;  %s10094_s29 = sld [smem:[#allocation41_spill]]  ;;  %vm6856_vm2 = vcmask 1043456  }
 0x1a8   : > { %s766_s5 = scalar_lea.vmem %s10092_s27, %s7189_s0  ;;  %v1182_v14 = vld [vmem:[#allocation6 + $0x20] sm:$0xff]  ;;  %v1183_v17 = vld [vmem:[#allocation6 + $0x28] sm:$0xff]  ;;  %vm6852_vm3 = vcmask 64512   ;;  %s9029_s19 = smov 120  }
 0x1a9   : > { %v772_v3 = vld [vmem:[%s766_s5] sm:$0xff]  ;;  %v7210_v18 = vcombine.high %v1178_v13, %v1182_v14  ;;  %v8279_v19 = vld [vmem:[#allocation2 + $0x28] ss:$48 sps:$4 sm:$0xff]   ;;  %v7212_v20 = vcombine.high %v1179_v16, %v1183_v17  ;;  %v1186_v21 = vld [vmem:[#allocation6 + $0x40] sm:$0xff]  ;;  %v7209_v23 = vcombine.low %v1178_v13, %v1182_v14  ;;  %v7211_v27 = vcombine.low %v1179_v16, %v1183_v17  ;;  %s9030_s2 = smov 112   ;;  %s9031_s7 = smov 104  }
 0x1aa   : > { %v773_v4 = vpack.c.bf16 %v772_v3, %v772_v3  ;;  %v1190_v22 = vld [vmem:[#allocation6 + $0x60] sm:$0xff]  ;;  %v1187_v24 = vld [vmem:[#allocation6 + $0x48] sm:$0xff]  ;;  %s9032_s22 = smov 8   ;;  %s10095_s5 = sld [smem:[#allocation42_spill]] }
 0x1ab   : > { %v1191_v25 = vld [vmem:[#allocation6 + $0x68] sm:$0xff]  ;;  %v7218_v26 = vcombine.high %v1186_v21, %v1190_v22  ;;  %v1194_v28 = vld [vmem:[#allocation6 + $0x80] sm:$0xff]  ;;  %v7217_v31 = vcombine.low %v1186_v21, %v1190_v22 }
 0x1ac   : > { %7203 = vmatmul.mubr.msk.bf16.vlgmr.msra.gmra.mrb[0].mxu0 %vm910_vm0, %v773_v4  ;;  %7204 = vmatmul.mubr.msk.bf16.vlgmr.msra.gmra.mrb[0].mxu1 %vm910_vm0, %v773_v4  ;;  %v1198_v29 = vld [vmem:[#allocation6 + $0xa0] sm:$0xff]  ;;  %v7220_v30 = vcombine.high %v1187_v24, %v1191_v25  ;;  %v1195_v32 = vld [vmem:[#allocation6 + $0x88] sm:$0xff]  ;;  %v7219_v35 = vcombine.low %v1187_v24, %v1191_v25 }
 0x1ad   : > { %997 = vmatpush1.bf16.msra.mxu0 %v8270_v7  ;;  %1028 = vmatprep.mubr.bf16.mxu0 %v9028_v0  ;;  %v1199_v33 = vld [vmem:[#allocation6 + $0xa8] sm:$0xff]  ;;  %v7226_v34 = vcombine.high %v1194_v28, %v1198_v29  ;;  %v1202_v36 = vld [vmem:[#allocation6 + $0xc0] sm:$0xff]  ;;  %v7225_v41 = vcombine.low %v1194_v28, %v1198_v29 }
 0x1ae   : > { %1038 = vmatpush1.bf16.msra.mxu1 %v8273_v9  ;;  %1069 = vmatprep.mubr.bf16.mxu1 %v9028_v0  ;;  %v1206_v37 = vld [vmem:[#allocation6 + $0xe0] sm:$0xff]  ;;  %v7228_v38 = vcombine.high %v1195_v32, %v1199_v33  ;;  %v1203_v39 = vld [vmem:[#allocation6 + $0xc8] sm:$0xff]  ;;  %v7227_v45 = vcombine.low %v1195_v32, %v1199_v33 }
 0x1af   : > { %1078 = vmatprep.subr.bf16.mxu0 %v8278_v11  ;;  %1119 = vmatprep.subr.bf16.mxu1 %v8281_v12  ;;  %v1207_v40 = vld [vmem:[#allocation6 + $0xe8] sm:$0xff]  ;;  %v1210_v42 = vld [vmem:[#allocation6 + $0x100] sm:$0xff]  ;;  %v7234_v44 = vcombine.high %v1202_v36, %v1206_v37  ;;  %v7233_v49 = vcombine.low %v1202_v36, %v1206_v37 }
 0x1b0   : > { %v1214_v43 = vld [vmem:[#allocation6 + $0x120] sm:$0xff]  ;;  %v1211_v46 = vld [vmem:[#allocation6 + $0x108] sm:$0xff]  ;;  %v7236_v48 = vcombine.high %v1203_v39, %v1207_v40  ;;  %v7235_v53 = vcombine.low %v1203_v39, %v1207_v40  ;;  %s770_s1 = scalar_lea.vmem %s10095_s5, %s7189_s0 }
 0x1b1   : > { %v1215_v47 = vld [vmem:[#allocation6 + $0x128] sm:$0xff]  ;;  %v1218_v50 = vld [vmem:[#allocation6 + $0x140] sm:$0xff]  ;;  %v7242_v52 = vcombine.high %v1210_v42, %v1214_v43  ;;  %v7241_v57 = vcombine.low %v1210_v42, %v1214_v43 }
 0x1b2   : > { %v1222_v51 = vld [vmem:[#allocation6 + $0x160] sm:$0xff]  ;;  %v1219_v54 = vld [vmem:[#allocation6 + $0x148] sm:$0xff]  ;;  %v7244_v56 = vcombine.high %v1211_v46, %v1215_v47  ;;  %v7243_v61 = vcombine.low %v1211_v46, %v1215_v47 }
 0x1b3   : > { %v1223_v55 = vld [vmem:[#allocation6 + $0x168] sm:$0xff]  ;;  %v1226_v58 = vld [vmem:[#allocation6 + $0x180] sm:$0xff]  ;;  %v7250_v60 = vcombine.high %v1218_v50, %v1222_v51  ;;  %v7249_v2 = vcombine.low %v1218_v50, %v1222_v51 }
 0x1b4   : > { %7205 = vmatmul.mubr.msk.bf16.vlgmr.msra.gmra.mrb[4].mxu0 %vm910_vm0, %v773_v4  ;;  %7206 = vmatmul.mubr.msk.bf16.vlgmr.msra.gmra.mrb[4].mxu1 %vm910_vm0, %v773_v4  ;;  %v1230_v59 = vld [vmem:[#allocation6 + $0x1a0] sm:$0xff]  ;;  %v1227_v62 = vld [vmem:[#allocation6 + $0x188] sm:$0xff]  ;;  %v7252_v1 = vcombine.high %v1219_v54, %v1223_v55  ;;  %v7251_v6 = vcombine.low %v1219_v54, %v1223_v55 }
 0x1b5   : > { %1079 = vmatpush1.bf16.msra.mxu0 %v8276_v15  ;;  %1110 = vmatprep.mubr.bf16.mxu0 %v9028_v0  ;;  %v1231_v63 = vld [vmem:[#allocation6 + $0x1a8] sm:$0xff]  ;;  %v1234_v3 = vld [vmem:[#allocation6 + $0x1c0] sm:$0xff]  ;;  %v7258_v5 = vcombine.high %v1226_v58, %v1230_v59  ;;  %v7257_v10 = vcombine.low %v1226_v58, %v1230_v59 }
 0x1b6   : > { %4292 = vmatprep.subr.bf16.mxu0 %v7210_v18  ;;  %1120 = vmatpush1.bf16.msra.mxu1 %v8279_v19  ;;  %v1235_v7 = vld [vmem:[#allocation6 + $0x1c8] sm:$0xff]  ;;  %v7260_v9 = vcombine.high %v1227_v62, %v1231_v63  ;;  %v1242_v11 = vld [vmem:[#allocation6 + $0x200] sm:$0xff]  ;;  %v7259_v14 = vcombine.low %v1227_v62, %v1231_v63 }
 0x1b7   : > { %1151 = vmatprep.mubr.bf16.mxu1 %v9028_v0  ;;  %4456 = vmatprep.subr.bf16.mxu1 %v7212_v20  ;;  %v1239_v8 = vld [vmem:[#allocation6 + $0x1e8] sm:$0xff]  ;;  %v1246_v12 = vld [vmem:[#allocation6 + $0x220] sm:$0xff] }
 0x1b8   : > { %v1243_v15 = vld [vmem:[#allocation6 + $0x208] sm:$0xff]  ;;  %v7268_v17 = vcombine.high %v1235_v7, %v1239_v8  ;;  %v1250_v19 = vld [vmem:[#allocation6 + $0x240] sm:$0xff]  ;;  %v7274_v21 = vcombine.high %v1242_v11, %v1246_v12  ;;  %v7267_v22 = vcombine.low %v1235_v7, %v1239_v8 }
 0x1b9   : > { %v1247_v16 = vld [vmem:[#allocation6 + $0x228] sm:$0xff]  ;;  %v1254_v20 = vld [vmem:[#allocation6 + $0x260] sm:$0xff] }
 0x1ba   : > { %v1255_v24 = vld [vmem:[#allocation6 + $0x268] sm:$0xff]  ;;  %v7276_v25 = vcombine.high %v1243_v15, %v1247_v16  ;;  %v1262_v28 = vld [vmem:[#allocation6 + $0x2a0] sm:$0xff]  ;;  %v7282_v29 = vcombine.high %v1250_v19, %v1254_v20 }
 0x1bb   : > { %v1263_v32 = vld [vmem:[#allocation6 + $0x2a8] sm:$0xff]  ;;  %v1270_v36 = vld [vmem:[#allocation6 + $0x2e0] sm:$0xff] }
 0x1bc   : > { %7207 = vmatmul.mubr.msk.bf16.vlgmr.msra.gmra.mrb[8].mxu0 %vm910_vm0, %v773_v4  ;;  %7208 = vmatmul.mubr.msk.bf16.vlgmr.msra.gmra.mrb[8].mxu1 %vm910_vm0, %v773_v4  ;;  %v1238_v4 = vld [vmem:[#allocation6 + $0x1e0] sm:$0xff]  ;;  %v1267_v39 = vld [vmem:[#allocation6 + $0x2c8] sm:$0xff] }
 0x1bd   : > { %4293 = vmatpush1.bf16.msra.mxu0 %v7209_v23  ;;  %4457 = vmatpush1.bf16.msra.mxu1 %v7211_v27  ;;  %v7266_v13 = vcombine.high %v1234_v3, %v1238_v4  ;;  %v7265_v18 = vcombine.low %v1234_v3, %v1238_v4  ;;  %v1251_v23 = vld [vmem:[#allocation6 + $0x248] sm:$0xff]  ;;  %v1258_v27 = vld [vmem:[#allocation6 + $0x280] sm:$0xff] }
 0x1be   : > { %4294 = vmatprep.subr.bf16.mxu0 %v7218_v26  ;;  %4458 = vmatprep.subr.bf16.mxu1 %v7220_v30  ;;  %v7273_v26 = vcombine.low %v1242_v11, %v1246_v12  ;;  %v7275_v30 = vcombine.low %v1243_v15, %v1247_v16  ;;  %v7284_v33 = vcombine.high %v1251_v23, %v1255_v24  ;;  %v1271_v40 = vld [vmem:[#allocation6 + $0x2e8] sm:$0xff]  ;;  %v1274_v43 = vld [vmem:[#allocation6 + $0x300] sm:$0xff] }
 0x1bf   : > { %v7290_v37 = vcombine.high %v1258_v27, %v1262_v28  ;;  %v7289_v42 = vcombine.low %v1258_v27, %v1262_v28  ;;  %v1275_v47 = vld [vmem:[#allocation6 + $0x308] sm:$0xff]  ;;  %v1282_v51 = vld [vmem:[#allocation6 + $0x340] sm:$0xff]  ;;  %v7299_v54 = vcombine.low %v1267_v39, %v1271_v40  ;;  %v9543_v28 = vld [vmem:[#allocation4] sm:$0xff] }
 0x1c0   : > { %v1283_v55 = vld [vmem:[#allocation6 + $0x348] sm:$0xff] }
 0x1c1   : > { %4295 = vmatpush1.bf16.msra.mxu0 %v7217_v31  ;;  %4459 = vmatpush1.bf16.msra.mxu1 %v7219_v35  ;;  %v1259_v31 = vld [vmem:[#allocation6 + $0x288] sm:$0xff]  ;;  %v1266_v35 = vld [vmem:[#allocation6 + $0x2c0] sm:$0xff] }
 0x1c2   : > { %4296 = vmatprep.subr.bf16.mxu0 %v7226_v34  ;;  %4460 = vmatprep.subr.bf16.mxu1 %v7228_v38  ;;  %v7281_v34 = vcombine.low %v1250_v19, %v1254_v20  ;;  %v7283_v38 = vcombine.low %v1251_v23, %v1255_v24  ;;  %v7291_v46 = vcombine.low %v1259_v31, %v1263_v32  ;;  %v1291_v3 = vld [vmem:[#allocation6 + $0x388] sm:$0xff] }
 0x1c3   : > { %v7297_v50 = vcombine.low %v1266_v35, %v1270_v36  ;;  %v1299_v11 = vld [vmem:[#allocation6 + $0x3c8] sm:$0xff] }
 0x1c4   : > { %v1307_v19 = vld [vmem:[#allocation6 + $0x408] sm:$0xff] }
 0x1c5   : > { %4297 = vmatpush1.bf16.msra.mxu0 %v7225_v41  ;;  %4461 = vmatpush1.bf16.msra.mxu1 %v7227_v45  ;;  %v7292_v41 = vcombine.high %v1259_v31, %v1263_v32  ;;  %v7298_v45 = vcombine.high %v1266_v35, %v1270_v36 }
 0x1c6   : > { %4298 = vmatprep.subr.bf16.mxu0 %v7234_v44  ;;  %4462 = vmatprep.subr.bf16.mxu1 %v7236_v48  ;;  %v1278_v44 = vld [vmem:[#allocation6 + $0x320] sm:$0xff]  ;;  %v1279_v48 = vld [vmem:[#allocation6 + $0x328] sm:$0xff] }
 0x1c7   : > { %v7305_v58 = vcombine.low %v1274_v43, %v1278_v44 }
 0x1c9   : > { %4299 = vmatpush1.bf16.msra.mxu0 %v7233_v49  ;;  %4463 = vmatpush1.bf16.msra.mxu1 %v7235_v53  ;;  %v7300_v49 = vcombine.high %v1267_v39, %v1271_v40  ;;  %v7306_v53 = vcombine.high %v1274_v43, %v1278_v44 }
 0x1ca   : > { %4300 = vmatprep.subr.bf16.mxu0 %v7242_v52  ;;  %4464 = vmatprep.subr.bf16.mxu1 %v7244_v56  ;;  %v1286_v52 = vld [vmem:[#allocation6 + $0x360] sm:$0xff]  ;;  %v1287_v56 = vld [vmem:[#allocation6 + $0x368] sm:$0xff] }
 0x1cb   : > { %v7314_v59 = vcombine.high %v1282_v51, %v1286_v52  ;;  %v7313_v62 = vcombine.low %v1282_v51, %v1286_v52  ;;  %v7315_v63 = vcombine.low %v1283_v55, %v1287_v56 }
 0x1cd   : > { %4301 = vmatpush1.bf16.msra.mxu0 %v7241_v57  ;;  %4465 = vmatpush1.bf16.msra.mxu1 %v7243_v61  ;;  %v7308_v57 = vcombine.high %v1275_v47, %v1279_v48  ;;  %v7316_v61 = vcombine.high %v1283_v55, %v1287_v56  ;;  %v1322_v56 = vld [vmem:[#allocation6 + $0x480] sm:$0xff] }
 0x1ce   : > { %4302 = vmatprep.subr.bf16.mxu0 %v7250_v60  ;;  %4466 = vmatprep.subr.bf16.mxu1 %v7252_v1  ;;  %v7307_v60 = vcombine.low %v1275_v47, %v1279_v48  ;;  %v1290_v1 = vld [vmem:[#allocation6 + $0x380] sm:$0xff]  ;;  %v1319_v47 = vld [vmem:[#allocation6 + $0x468] sm:$0xff] }
 0x1d1   : > { %4303 = vmatpush1.bf16.msra.mxu0 %v7249_v2  ;;  %4467 = vmatpush1.bf16.msra.mxu1 %v7251_v6  ;;  %v1294_v2 = vld [vmem:[#allocation6 + $0x3a0] sm:$0xff] }
 0x1d2   : > { %4304 = vmatprep.subr.bf16.mxu0 %v7258_v5  ;;  %4468 = vmatprep.subr.bf16.mxu1 %v7260_v9  ;;  %v7322_v4 = vcombine.high %v1290_v1, %v1294_v2  ;;  %v1295_v5 = vld [vmem:[#allocation6 + $0x3a8] sm:$0xff]  ;;  %v7321_v6 = vcombine.low %v1290_v1, %v1294_v2  ;;  %v1298_v9 = vld [vmem:[#allocation6 + $0x3c0] sm:$0xff] }
 0x1d3   : > { %v7323_v7 = vcombine.low %v1291_v3, %v1295_v5  ;;  %v7324_v8 = vcombine.high %v1291_v3, %v1295_v5  ;;  %v1330_v5 = vld [vmem:[#allocation6 + $0x4c0] sm:$0xff] }
 0x1d5   : > { %4305 = vmatpush1.bf16.msra.mxu0 %v7257_v10  ;;  %4469 = vmatpush1.bf16.msra.mxu1 %v7259_v14  ;;  %v1302_v10 = vld [vmem:[#allocation6 + $0x3e0] sm:$0xff] }
 0x1d6   : > { %4306 = vmatprep.subr.bf16.mxu0 %v7266_v13  ;;  %4470 = vmatprep.subr.bf16.mxu1 %v7268_v17  ;;  %v7330_v12 = vcombine.high %v1298_v9, %v1302_v10  ;;  %v1303_v13 = vld [vmem:[#allocation6 + $0x3e8] sm:$0xff]  ;;  %v7329_v14 = vcombine.low %v1298_v9, %v1302_v10  ;;  %v1306_v17 = vld [vmem:[#allocation6 + $0x400] sm:$0xff] }
 0x1d7   : > { %v7331_v15 = vcombine.low %v1299_v11, %v1303_v13  ;;  %v7332_v16 = vcombine.high %v1299_v11, %v1303_v13  ;;  %v1335_v9 = vld [vmem:[#allocation6 + $0x4e8] sm:$0xff] }
 0x1d9   : > { %4307 = vmatpush1.bf16.msra.mxu0 %v7265_v18  ;;  %4471 = vmatpush1.bf16.msra.mxu1 %v7267_v22  ;;  %v1310_v18 = vld [vmem:[#allocation6 + $0x420] sm:$0xff] }
 0x1da   : > { %4308 = vmatprep.subr.bf16.mxu0 %v7274_v21  ;;  %4472 = vmatprep.subr.bf16.mxu1 %v7276_v25  ;;  %v7338_v20 = vcombine.high %v1306_v17, %v1310_v18  ;;  %v1311_v21 = vld [vmem:[#allocation6 + $0x428] sm:$0xff]  ;;  %v7337_v22 = vcombine.low %v1306_v17, %v1310_v18  ;;  %v790_v25 = vlaneseq }
 0x1db   : > { %v7339_v23 = vcombine.low %v1307_v19, %v1311_v21  ;;  %v7340_v24 = vcombine.high %v1307_v19, %v1311_v21  ;;  %v1343_v17 = vld [vmem:[#allocation6 + $0x528] sm:$0xff] }
 0x1dd   : > { %4309 = vmatpush1.bf16.msra.mxu0 %v7273_v26  ;;  %4473 = vmatpush1.bf16.msra.mxu1 %v7275_v30  ;;  %v9538_v26 = vshrl.u32 %v790_v25, 7  ;;  %v1350_v25 = vld [vmem:[#allocation6 + $0x560] sm:$0xff] }
 0x1de   : > { %4310 = vmatprep.subr.bf16.mxu0 %v7282_v29  ;;  %4474 = vmatprep.subr.bf16.mxu1 %v7284_v33 }
 0x1df   : > { %v9541_v27 = vsub.s32 0, %v9538_v26  ;;  %v9546_v29 = vsub.s32 1, %v9538_v26  ;;  %v9549_v30 = vsub.s32 3, %v9538_v26 }
 0x1e1   : > { %4311 = vmatpush1.bf16.msra.mxu0 %v7281_v34  ;;  %4475 = vmatpush1.bf16.msra.mxu1 %v7283_v38  ;;  %v793_v31 = vrot.slane %v9543_v28, %v9541_v27  ;;  %v797_v32 = vrot.slane %v9543_v28, %v9546_v29  ;;  %v805_v34 = vrot.slane %v9543_v28, %v9549_v30 }
 0x1e2   : > { %4312 = vmatprep.subr.bf16.mxu0 %v7290_v37  ;;  %4476 = vmatprep.subr.bf16.mxu1 %v7292_v41 }
 0x1e5   : > { %4313 = vmatpush1.bf16.msra.mxu0 %v7289_v42  ;;  %4477 = vmatpush1.bf16.msra.mxu1 %v7291_v46  ;;  %v1314_v42 = vld [vmem:[#allocation6 + $0x440] sm:$0xff]  ;;  %v1315_v46 = vld [vmem:[#allocation6 + $0x448] sm:$0xff] }
 0x1e6   : > { %4314 = vmatprep.subr.bf16.mxu0 %v7298_v45  ;;  %4478 = vmatprep.subr.bf16.mxu1 %v7300_v49  ;;  %v1318_v45 = vld [vmem:[#allocation6 + $0x460] sm:$0xff]  ;;  %v7348_v55 = vcombine.high %v1315_v46, %v1319_v47  ;;  %v7347_v1 = vcombine.low %v1315_v46, %v1319_v47 }
 0x1e9   : > { %4315 = vmatpush1.bf16.msra.mxu0 %v7297_v50  ;;  %4479 = vmatpush1.bf16.msra.mxu1 %v7299_v54  ;;  %v7346_v54 = vcombine.high %v1314_v42, %v1318_v45 }
 0x1ea   : > { %4316 = vmatprep.subr.bf16.mxu0 %v7306_v53  ;;  %4480 = vmatprep.subr.bf16.mxu1 %v7308_v57  ;;  %v1326_v57 = vld [vmem:[#allocation6 + $0x4a0] sm:$0xff] }
 0x1eb   : > { %v7354_v3 = vcombine.high %v1322_v56, %v1326_v57  ;;  %v7353_v10 = vcombine.low %v1322_v56, %v1326_v57  ;;  %v1367_v56 = vld [vmem:[#allocation6 + $0x5e8] sm:$0xff] }
 0x1ed   : > { %4317 = vmatpush1.bf16.msra.mxu0 %v7305_v58  ;;  %4481 = vmatpush1.bf16.msra.mxu1 %v7307_v60  ;;  %v1323_v58 = vld [vmem:[#allocation6 + $0x488] sm:$0xff] }
 0x1ee   : > { %4318 = vmatprep.subr.bf16.mxu0 %v7314_v59  ;;  %4482 = vmatprep.subr.bf16.mxu1 %v7316_v61  ;;  %v1327_v59 = vld [vmem:[#allocation6 + $0x4a8] sm:$0xff] }
 0x1ef   : > { %v7355_v11 = vcombine.low %v1323_v58, %v1327_v59 }
 0x1f1   : > { %4319 = vmatpush1.bf16.msra.mxu0 %v7313_v62  ;;  %4483 = vmatpush1.bf16.msra.mxu1 %v7315_v63  ;;  %v7345_v63 = vcombine.low %v1314_v42, %v1318_v45  ;;  %v1358_v42 = vld [vmem:[#allocation6 + $0x5a0] sm:$0xff] }
 0x1f2   : > { %4320 = vmatprep.subr.bf16.mxu0 %v7322_v4  ;;  %4484 = vmatprep.subr.bf16.mxu1 %v7324_v8  ;;  %v7356_v4 = vcombine.high %v1323_v58, %v1327_v59  ;;  %v1331_v8 = vld [vmem:[#allocation6 + $0x4c8] sm:$0xff] }
 0x1f3   : > { %v7364_v13 = vcombine.high %v1331_v8, %v1335_v9  ;;  %v7363_v19 = vcombine.low %v1331_v8, %v1335_v9 }
 0x1f5   : > { %4321 = vmatpush1.bf16.msra.mxu0 %v7321_v6  ;;  %4485 = vmatpush1.bf16.msra.mxu1 %v7323_v7  ;;  %v1334_v7 = vld [vmem:[#allocation6 + $0x4e0] sm:$0xff] }
 0x1f6   : > { %4322 = vmatprep.subr.bf16.mxu0 %v7330_v12  ;;  %4486 = vmatprep.subr.bf16.mxu1 %v7332_v16  ;;  %v7362_v12 = vcombine.high %v1330_v5, %v1334_v7  ;;  %v1339_v16 = vld [vmem:[#allocation6 + $0x508] sm:$0xff]  ;;  %v7361_v18 = vcombine.low %v1330_v5, %v1334_v7 }
 0x1f7   : > { %v1375_v5 = vld [vmem:[#allocation6 + $0x628] sm:$0xff] }
 0x1f9   : > { %4323 = vmatpush1.bf16.msra.mxu0 %v7329_v14  ;;  %4487 = vmatpush1.bf16.msra.mxu1 %v7331_v15  ;;  %v1338_v14 = vld [vmem:[#allocation6 + $0x500] sm:$0xff] }
 0x1fa   : > { %4333 = vmatprep.subr.bf16.mxu0 %v7338_v20  ;;  %4497 = vmatprep.subr.bf16.mxu1 %v7340_v24  ;;  %v1342_v15 = vld [vmem:[#allocation6 + $0x520] sm:$0xff] }
 0x1fb   : > { %v7370_v21 = vcombine.high %v1338_v14, %v1342_v15 }
 0x27f   : > { %v948_v33 = vpop.f32.mrb[0].mxu0  ;;  %v9557_v39 = vpop.f32.mrb[0].mxu1 }
 0x280   : > { %v949_v35 = vadd.f32 %v948_v33, %v793_v31  ;;  %v950_v36 = vpop.f32.mrb[1].mxu0  ;;  %v991_v43 = vpop.f32.mrb[1].mxu1  ;;  %v1347_v31 = vld [vmem:[#allocation6 + $0x548] sm:$0xff] }
 0x281   : > { %v951_v37 = vadd.f32 %v950_v36, %v797_v32  ;;  %v952_v38 = vpop.f32.mrb[2].mxu0  ;;  %v992_v48 = vadd.f32 %v991_v43, %v805_v34  ;;  %v993_v49 = vpop.f32.mrb[2].mxu1  ;;  %v1351_v32 = vld [vmem:[#allocation6 + $0x568] sm:$0xff]  ;;  %v7371_v36 = vcombine.low %v1339_v16, %v1343_v17 }
 0x282   : > { %v1160_v40 = vmax.f32 %v949_v35, 0.0  ;;  %v953_v41 = vpop.f32.mrb[3].mxu0  ;;  %v994_v50 = vpop.f32.mrb[3].mxu1  ;;  %v7369_v35 = vcombine.low %v1338_v14, %v1342_v15  ;;  %v7380_v38 = vcombine.high %v1347_v31, %v1351_v32  ;;  %v1355_v43 = vld [vmem:[#allocation6 + $0x588] sm:$0xff]  ;;  %v7379_v46 = vcombine.low %v1347_v31, %v1351_v32 }
 0x283   : > { %v1161_v44 = vmax.f32 %v951_v37, 0.0  ;;  %v1163_v52 = vmax.f32 %v992_v48, 0.0  ;;  %v1362_v50 = vld [vmem:[#allocation6 + $0x5c0] sm:$0xff] }
 0x284   : > { %v9561_v53 = vpack.c.bf16 %v1160_v40, %v1160_v40  ;;  %v1354_v40 = vld [vmem:[#allocation6 + $0x580] sm:$0xff] }
 0x285   : > { %v9559_v51 = vpack.c.bf16 %v1161_v44, %v1161_v44  ;;  %v9565_v60 = vpack.c.bf16 %v1163_v52, %v1163_v52  ;;  %v1359_v44 = vld [vmem:[#allocation6 + $0x5a8] sm:$0xff]  ;;  %v7386_v48 = vcombine.high %v1354_v40, %v1358_v42  ;;  %v7385_v58 = vcombine.low %v1354_v40, %v1358_v42 }
 0x286   : > { %v7388_v49 = vcombine.high %v1355_v43, %v1359_v44  ;;  %v7387_v59 = vcombine.low %v1355_v43, %v1359_v44  ;;  %v1402_v43 = vld [vmem:[#allocation6 + $0x700] sm:$0xff] }
 0x287   : > { %4324 = vmatprep.mubr.bf16.mxu0 %v9559_v51  ;;  %4488 = vmatprep.mubr.bf16.mxu1 %v9559_v51  ;;  %v9567_v61 = vpop.f32.mrb[4].mxu0  ;;  %v9575_v20 = vpop.f32.mrb[4].mxu1  ;;  %v1406_v44 = vld [vmem:[#allocation6 + $0x720] sm:$0xff] }
 0x288   : > { %4325 = vmatmul.mubr.bf16.vlgmr.msra.gmra.mrb[12].mxu0 %v9561_v53  ;;  %4489 = vmatmul.mubr.bf16.vlgmr.msra.gmra.mrb[12].mxu1 %v9561_v53  ;;  %v9571_v62 = vpop.f32.mrb[5].mxu0  ;;  %v9577_v24 = vpop.f32.mrb[5].mxu1 }
 0x289   : > { %4334 = vmatpush1.bf16.msra.mxu0 %v7337_v22  ;;  %4498 = vmatpush1.bf16.msra.mxu1 %v7339_v23  ;;  %v1034_v2 = vpop.f32.mrb[6].mxu0  ;;  %v7372_v22 = vcombine.high %v1339_v16, %v1343_v17  ;;  %v1346_v23 = vld [vmem:[#allocation6 + $0x540] sm:$0xff]  ;;  %v1075_v33 = vpop.f32.mrb[6].mxu1 }
 0x28a   : > { %4335 = vmatprep.subr.bf16.mxu0 %v7346_v54  ;;  %4499 = vmatprep.subr.bf16.mxu1 %v7348_v55  ;;  %v1035_v6 = vpop.f32.mrb[7].mxu0  ;;  %v1076_v34 = vpop.f32.mrb[7].mxu1  ;;  %v7378_v37 = vcombine.high %v1346_v23, %v1350_v25  ;;  %v7377_v45 = vcombine.low %v1346_v23, %v1350_v25  ;;  %v1366_v54 = vld [vmem:[#allocation6 + $0x5e0] sm:$0xff]  ;;  %v1363_v55 = vld [vmem:[#allocation6 + $0x5c8] sm:$0xff] }
 0x28b   : > { %4365 = vmatprep.mubr.bf16.mxu0 %v9565_v60  ;;  %4529 = vmatprep.mubr.bf16.mxu1 %v9565_v60  ;;  %v1370_v2 = vld [vmem:[#allocation6 + $0x600] sm:$0xff]  ;;  %v7393_v6 = vcombine.low %v1362_v50, %v1366_v54  ;;  %v7395_v7 = vcombine.low %v1363_v55, %v1367_v56 }
 0x28c   : > { %v1394_v33 = vld [vmem:[#allocation6 + $0x6c0] sm:$0xff] }
 0x28d   : > { %4336 = vmatpush1.bf16.msra.mxu0 %v7345_v63  ;;  %4500 = vmatpush1.bf16.msra.mxu1 %v7347_v1  ;;  %v7394_v63 = vcombine.high %v1362_v50, %v1366_v54  ;;  %v7396_v1 = vcombine.high %v1363_v55, %v1367_v56  ;;  %v1398_v34 = vld [vmem:[#allocation6 + $0x6e0] sm:$0xff]  ;;  %v7434_v50 = vcombine.high %v1402_v43, %v1406_v44  ;;  %v1411_v56 = vld [vmem:[#allocation6 + $0x748] sm:$0xff] }
 0x28e   : > { %4337 = vmatprep.subr.bf16.mxu0 %v7354_v3  ;;  %4501 = vmatprep.subr.bf16.mxu1 %v7356_v4  ;;  %v1374_v3 = vld [vmem:[#allocation6 + $0x620] sm:$0xff]  ;;  %v1371_v4 = vld [vmem:[#allocation6 + $0x608] sm:$0xff]  ;;  %v7426_v40 = vcombine.high %v1394_v33, %v1398_v34 }
 0x28f   : > { %v9579_v41 = vpop.f32.mrb[8].mxu0  ;;  %v7402_v8 = vcombine.high %v1370_v2, %v1374_v3  ;;  %v7404_v9 = vcombine.high %v1371_v4, %v1375_v5  ;;  %v7401_v14 = vcombine.low %v1370_v2, %v1374_v3  ;;  %v7403_v15 = vcombine.low %v1371_v4, %v1375_v5  ;;  %v1410_v54 = vld [vmem:[#allocation6 + $0x740] sm:$0xff]  ;;  %v1419_v5 = vld [vmem:[#allocation6 + $0x788] sm:$0xff] }
 0x290   : > { %v9581_v47 = vpop.f32.mrb[9].mxu0  ;;  %v1414_v55 = vld [vmem:[#allocation6 + $0x760] sm:$0xff] }
 0x291   : > { %4338 = vmatpush1.bf16.msra.mxu0 %v7353_v10  ;;  %4502 = vmatpush1.bf16.msra.mxu1 %v7355_v11  ;;  %v1116_v52 = vpop.f32.mrb[10].mxu0  ;;  %v1378_v10 = vld [vmem:[#allocation6 + $0x640] sm:$0xff] }
 0x292   : > { %4339 = vmatprep.subr.bf16.mxu0 %v7362_v12  ;;  %4503 = vmatprep.subr.bf16.mxu1 %v7364_v13  ;;  %v1117_v57 = vpop.f32.mrb[11].mxu0  ;;  %v1382_v11 = vld [vmem:[#allocation6 + $0x660] sm:$0xff]  ;;  %v1379_v12 = vld [vmem:[#allocation6 + $0x648] sm:$0xff] }
 0x293   : > { %v1383_v13 = vld [vmem:[#allocation6 + $0x668] sm:$0xff]  ;;  %v7410_v16 = vcombine.high %v1378_v10, %v1382_v11  ;;  %v7409_v23 = vcombine.low %v1378_v10, %v1382_v11  ;;  %v1418_v3 = vld [vmem:[#allocation6 + $0x780] sm:$0xff] }
 0x294   : > { %v7412_v17 = vcombine.high %v1379_v12, %v1383_v13  ;;  %v7411_v25 = vcombine.low %v1379_v12, %v1383_v13  ;;  %v1415_v57 = vld [vmem:[#allocation6 + $0x768] sm:$0xff]  ;;  %v1422_v4 = vld [vmem:[#allocation6 + $0x7a0] sm:$0xff] }
 0x295   : > { %4340 = vmatpush1.bf16.msra.mxu0 %v7361_v18  ;;  %4504 = vmatpush1.bf16.msra.mxu1 %v7363_v19  ;;  %v1386_v18 = vld [vmem:[#allocation6 + $0x680] sm:$0xff]  ;;  %v7444_v2 = vcombine.high %v1411_v56, %v1415_v57  ;;  %v7443_v10 = vcombine.low %v1411_v56, %v1415_v57  ;;  %v7450_v11 = vcombine.high %v1418_v3, %v1422_v4  ;;  %v1455_v56 = vld [vmem:[#allocation6 + $0x8a8] sm:$0xff] }
 0x296   : > { %4341 = vmatprep.subr.bf16.mxu0 %v7370_v21  ;;  %4505 = vmatprep.subr.bf16.mxu1 %v7372_v22  ;;  %v1390_v19 = vld [vmem:[#allocation6 + $0x6a0] sm:$0xff]  ;;  %v1387_v21 = vld [vmem:[#allocation6 + $0x688] sm:$0xff] }
 0x297   : > { %v1391_v22 = vld [vmem:[#allocation6 + $0x6a8] sm:$0xff]  ;;  %v7418_v31 = vcombine.high %v1386_v18, %v1390_v19  ;;  %v1426_v13 = vld [vmem:[#allocation6 + $0x7c0] sm:$0xff] }
 0x298   : > { %v7420_v32 = vcombine.high %v1387_v21, %v1391_v22 }
 0x299   : > { %4342 = vmatpush1.bf16.msra.mxu0 %v7369_v35  ;;  %4506 = vmatpush1.bf16.msra.mxu1 %v7371_v36  ;;  %v1395_v35 = vld [vmem:[#allocation6 + $0x6c8] sm:$0xff] }
 0x29a   : > { %4343 = vmatprep.subr.bf16.mxu0 %v7378_v37  ;;  %4507 = vmatprep.subr.bf16.mxu1 %v7380_v38  ;;  %v1399_v36 = vld [vmem:[#allocation6 + $0x6e8] sm:$0xff]  ;;  %v7417_v37 = vcombine.low %v1386_v18, %v1390_v19  ;;  %v7419_v38 = vcombine.low %v1387_v21, %v1391_v22  ;;  %v7449_v19 = vcombine.low %v1418_v3, %v1422_v4  ;;  %v1458_v3 = vld [vmem:[#allocation6 + $0x8c0] sm:$0xff] }
 0x29b   : > { %v7428_v42 = vcombine.high %v1395_v35, %v1399_v36  ;;  %v1462_v4 = vld [vmem:[#allocation6 + $0x8e0] sm:$0xff] }
 0x29d   : > { %4344 = vmatpush1.bf16.msra.mxu0 %v7377_v45  ;;  %4508 = vmatpush1.bf16.msra.mxu1 %v7379_v46  ;;  %v1403_v45 = vld [vmem:[#allocation6 + $0x708] sm:$0xff] }
 0x29e   : > { %4345 = vmatprep.subr.bf16.mxu0 %v7386_v48  ;;  %4509 = vmatprep.subr.bf16.mxu1 %v7388_v49  ;;  %v1407_v46 = vld [vmem:[#allocation6 + $0x728] sm:$0xff]  ;;  %v7425_v48 = vcombine.low %v1394_v33, %v1398_v34  ;;  %v7427_v49 = vcombine.low %v1395_v35, %v1399_v36 }
 0x29f   : > { %v7436_v52 = vcombine.high %v1403_v45, %v1407_v46  ;;  %v1439_v33 = vld [vmem:[#allocation6 + $0x828] sm:$0xff] }
 0x2a1   : > { %4346 = vmatpush1.bf16.msra.mxu0 %v7385_v58  ;;  %4510 = vmatpush1.bf16.msra.mxu1 %v7387_v59  ;;  %v9584_v58 = vsub.s32 2, %v9538_v26  ;;  %v7433_v59 = vcombine.low %v1402_v43, %v1406_v44  ;;  %v1443_v43 = vld [vmem:[#allocation6 + $0x848] sm:$0xff] }
 0x2a2   : > { %4347 = vmatprep.subr.bf16.mxu0 %v7394_v63  ;;  %4511 = vmatprep.subr.bf16.mxu1 %v7396_v1  ;;  %v7435_v63 = vcombine.low %v1403_v45, %v1407_v46  ;;  %v7442_v1 = vcombine.high %v1410_v54, %v1414_v55  ;;  %v1447_v44 = vld [vmem:[#allocation6 + $0x868] sm:$0xff] }
 0x2a5   : > { %4348 = vmatpush1.bf16.msra.mxu0 %v7393_v6  ;;  %4512 = vmatpush1.bf16.msra.mxu1 %v7395_v7  ;;  %v1423_v6 = vld [vmem:[#allocation6 + $0x7a8] sm:$0xff]  ;;  %v9587_v7 = vsub.s32 5, %v9538_v26 }
 0x2a6   : > { %4349 = vmatprep.subr.bf16.mxu0 %v7402_v8  ;;  %4513 = vmatprep.subr.bf16.mxu1 %v7404_v9  ;;  %v801_v8 = vrot.slane %v9543_v28, %v9584_v58  ;;  %v7441_v9 = vcombine.low %v1410_v54, %v1414_v55  ;;  %v7452_v12 = vcombine.high %v1419_v5, %v1423_v6  ;;  %v1454_v54 = vld [vmem:[#allocation6 + $0x8a0] sm:$0xff]  ;;  %v1451_v55 = vld [vmem:[#allocation6 + $0x888] sm:$0xff] }
 0x2a7   : > { %v7451_v21 = vcombine.low %v1419_v5, %v1423_v6  ;;  %v1459_v5 = vld [vmem:[#allocation6 + $0x8c8] sm:$0xff] }
 0x2a8   : > { %v990_v18 = vadd.f32 %v9557_v39, %v801_v8  ;;  %v1463_v6 = vld [vmem:[#allocation6 + $0x8e8] sm:$0xff] }
 0x2a9   : > { %4350 = vmatpush1.bf16.msra.mxu0 %v7401_v14  ;;  %4514 = vmatpush1.bf16.msra.mxu1 %v7403_v15  ;;  %v1430_v14 = vld [vmem:[#allocation6 + $0x7e0] sm:$0xff]  ;;  %v1427_v15 = vld [vmem:[#allocation6 + $0x7c8] sm:$0xff] }
 0x2aa   : > { %4351 = vmatprep.subr.bf16.mxu0 %v7410_v16  ;;  %4515 = vmatprep.subr.bf16.mxu1 %v7412_v17  ;;  %v1431_v16 = vld [vmem:[#allocation6 + $0x7e8] sm:$0xff]  ;;  %v813_v17 = vrot.slane %v9543_v28, %v9587_v7  ;;  %v7458_v22 = vcombine.high %v1426_v13, %v1430_v14  ;;  %v1162_v35 = vmax.f32 %v990_v18, 0.0  ;;  %v7457_v36 = vcombine.low %v1426_v13, %v1430_v14  ;;  %v1470_v13 = vld [vmem:[#allocation6 + $0x920] sm:$0xff] }
 0x2ab   : > { %v1467_v14 = vld [vmem:[#allocation6 + $0x908] sm:$0xff] }
 0x2ac   : > { %v1033_v34 = vadd.f32 %v9571_v62, %v813_v17  ;;  %v9595_v46 = vpack.c.bf16 %v1162_v35, %v1162_v35  ;;  %v7491_v17 = vcombine.low %v1459_v5, %v1463_v6  ;;  %v1482_v35 = vld [vmem:[#allocation6 + $0x980] sm:$0xff] }
 0x2ad   : > { %4352 = vmatpush1.bf16.msra.mxu0 %v7409_v23  ;;  %4516 = vmatpush1.bf16.msra.mxu1 %v7411_v25  ;;  %v7460_v23 = vcombine.high %v1427_v15, %v1431_v16  ;;  %v1434_v25 = vld [vmem:[#allocation6 + $0x800] sm:$0xff] }
 0x2ae   : > { %4353 = vmatprep.subr.bf16.mxu0 %v7418_v31  ;;  %4517 = vmatprep.subr.bf16.mxu1 %v7420_v32  ;;  %v1438_v31 = vld [vmem:[#allocation6 + $0x820] sm:$0xff]  ;;  %v1435_v32 = vld [vmem:[#allocation6 + $0x808] sm:$0xff]  ;;  %v1165_v45 = vmax.f32 %v1033_v34, 0.0 }
 0x2af   : > { %v7466_v39 = vcombine.high %v1434_v25, %v1438_v31  ;;  %v7467_v62 = vcombine.low %v1435_v32, %v1439_v33 }
 0x2b0   : > { %v9597_v57 = vpack.c.bf16 %v1165_v45, %v1165_v45  ;;  %v1494_v45 = vld [vmem:[#allocation6 + $0x9e0] sm:$0xff] }
 0x2b1   : > { %4354 = vmatpush1.bf16.msra.mxu0 %v7417_v37  ;;  %4518 = vmatpush1.bf16.msra.mxu1 %v7419_v38  ;;  %v7459_v37 = vcombine.low %v1427_v15, %v1431_v16  ;;  %v7468_v38 = vcombine.high %v1435_v32, %v1439_v33  ;;  %v1471_v15 = vld [vmem:[#allocation6 + $0x928] sm:$0xff]  ;;  %v7489_v16 = vcombine.low %v1458_v3, %v1462_v4 }
 0x2b2   : > { %4355 = vmatprep.subr.bf16.mxu0 %v7426_v40  ;;  %4519 = vmatprep.subr.bf16.mxu1 %v7428_v42  ;;  %v1442_v40 = vld [vmem:[#allocation6 + $0x840] sm:$0xff]  ;;  %v7499_v32 = vcombine.low %v1467_v14, %v1471_v15 }
 0x2b3   : > { %v1446_v42 = vld [vmem:[#allocation6 + $0x860] sm:$0xff] }
 0x2b5   : > { %4356 = vmatpush1.bf16.msra.mxu0 %v7425_v48  ;;  %4520 = vmatpush1.bf16.msra.mxu1 %v7427_v49  ;;  %v7465_v48 = vcombine.low %v1434_v25, %v1438_v31  ;;  %v7474_v49 = vcombine.high %v1442_v40, %v1446_v42  ;;  %v1479_v25 = vld [vmem:[#allocation6 + $0x968] sm:$0xff] }
 0x2b6   : > { %4357 = vmatprep.subr.bf16.mxu0 %v7434_v50  ;;  %4521 = vmatprep.subr.bf16.mxu1 %v7436_v52  ;;  %v7476_v50 = vcombine.high %v1443_v43, %v1447_v44  ;;  %v1450_v52 = vld [vmem:[#allocation6 + $0x880] sm:$0xff] }
 0x2b7   : > { %v7481_v8 = vcombine.low %v1450_v52, %v1454_v54 }
 0x2b9   : > { %4358 = vmatpush1.bf16.msra.mxu0 %v7433_v59  ;;  %4522 = vmatpush1.bf16.msra.mxu1 %v7435_v63  ;;  %v7473_v59 = vcombine.low %v1442_v40, %v1446_v42  ;;  %v7475_v63 = vcombine.low %v1443_v43, %v1447_v44  ;;  %v1490_v44 = vld [vmem:[#allocation6 + $0x9c0] sm:$0xff] }
 0x2ba   : > { %4359 = vmatprep.subr.bf16.mxu0 %v7442_v1  ;;  %4523 = vmatprep.subr.bf16.mxu1 %v7444_v2  ;;  %v7482_v1 = vcombine.high %v1450_v52, %v1454_v54  ;;  %v7484_v2 = vcombine.high %v1451_v55, %v1455_v56  ;;  %v7522_v52 = vcombine.high %v1490_v44, %v1494_v45 }
 0x2bd   : > { %4360 = vmatpush1.bf16.msra.mxu0 %v7441_v9  ;;  %4524 = vmatpush1.bf16.msra.mxu1 %v7443_v10  ;;  %v7483_v9 = vcombine.low %v1451_v55, %v1455_v56  ;;  %v7490_v10 = vcombine.high %v1458_v3, %v1462_v4  ;;  %v1498_v55 = vld [vmem:[#allocation6 + $0xa00] sm:$0xff] }
 0x2be   : > { %4361 = vmatprep.subr.bf16.mxu0 %v7450_v11  ;;  %4525 = vmatprep.subr.bf16.mxu1 %v7452_v12  ;;  %v7492_v11 = vcombine.high %v1459_v5, %v1463_v6  ;;  %v1466_v12 = vld [vmem:[#allocation6 + $0x900] sm:$0xff] }
 0x2bf   : > { %v7498_v18 = vcombine.high %v1466_v12, %v1470_v13  ;;  %v7497_v31 = vcombine.low %v1466_v12, %v1470_v13  ;;  %v1502_v56 = vld [vmem:[#allocation6 + $0xa20] sm:$0xff] }
 0x2c0   : > { %v7530_v3 = vcombine.high %v1498_v55, %v1502_v56  ;;  %v1506_v5 = vld [vmem:[#allocation6 + $0xa40] sm:$0xff] }
 0x2c1   : > { %4362 = vmatpush1.bf16.msra.mxu0 %v7449_v19  ;;  %4526 = vmatpush1.bf16.msra.mxu1 %v7451_v21  ;;  %v7500_v19 = vcombine.high %v1467_v14, %v1471_v15  ;;  %v1474_v21 = vld [vmem:[#allocation6 + $0x940] sm:$0xff] }
 0x2c2   : > { %4363 = vmatprep.subr.bf16.mxu0 %v7458_v22  ;;  %4527 = vmatprep.subr.bf16.mxu1 %v7460_v23  ;;  %v1478_v22 = vld [vmem:[#allocation6 + $0x960] sm:$0xff]  ;;  %v1475_v23 = vld [vmem:[#allocation6 + $0x948] sm:$0xff] }
 0x2c3   : > { %v7506_v33 = vcombine.high %v1474_v21, %v1478_v22  ;;  %v7508_v34 = vcombine.high %v1475_v23, %v1479_v25  ;;  %v7507_v40 = vcombine.low %v1475_v23, %v1479_v25  ;;  %v1510_v6 = vld [vmem:[#allocation6 + $0xa60] sm:$0xff] }
 0x2c4   : > { %v7538_v12 = vcombine.high %v1506_v5, %v1510_v6  ;;  %v1514_v14 = vld [vmem:[#allocation6 + $0xa80] sm:$0xff] }
 0x2c5   : > { %4364 = vmatpush1.bf16.msra.mxu0 %v7457_v36  ;;  %4528 = vmatpush1.bf16.msra.mxu1 %v7459_v37  ;;  %v1486_v36 = vld [vmem:[#allocation6 + $0x9a0] sm:$0xff]  ;;  %v1483_v37 = vld [vmem:[#allocation6 + $0x988] sm:$0xff] }
 0x2c6   : > { %4374 = vmatprep.subr.bf16.mxu0 %v7466_v39  ;;  %4538 = vmatprep.subr.bf16.mxu1 %v7468_v38  ;;  %v1487_v39 = vld [vmem:[#allocation6 + $0x9a8] sm:$0xff]  ;;  %v7505_v38 = vcombine.low %v1474_v21, %v1478_v22  ;;  %v7514_v42 = vcombine.high %v1482_v35, %v1486_v36  ;;  %v1518_v15 = vld [vmem:[#allocation6 + $0xaa0] sm:$0xff] }
 0x2c7   : > { %v7516_v43 = vcombine.high %v1483_v37, %v1487_v39  ;;  %v7546_v21 = vcombine.high %v1514_v14, %v1518_v15  ;;  %v1522_v23 = vld [vmem:[#allocation6 + $0xac0] sm:$0xff] }
 0x2c8   : > { %4366 = vmatmul.mubr.bf16.vlgmr.msra.gmra.mrb[12].mxu0 %v9595_v46  ;;  %4530 = vmatmul.mubr.bf16.vlgmr.msra.gmra.mrb[12].mxu1 %v9595_v46  ;;  %v1526_v25 = vld [vmem:[#allocation6 + $0xae0] sm:$0xff] }
 0x2c9   : > { %4375 = vmatpush1.bf16.msra.mxu0 %v7465_v48  ;;  %4539 = vmatpush1.bf16.msra.mxu1 %v7467_v62  ;;  %v1491_v48 = vld [vmem:[#allocation6 + $0x9c8] sm:$0xff] }
 0x2ca   : > { %4376 = vmatprep.subr.bf16.mxu0 %v7474_v49  ;;  %4540 = vmatprep.subr.bf16.mxu1 %v7476_v50  ;;  %v1495_v62 = vld [vmem:[#allocation6 + $0x9e8] sm:$0xff]  ;;  %v7513_v49 = vcombine.low %v1482_v35, %v1486_v36  ;;  %v7515_v50 = vcombine.low %v1483_v37, %v1487_v39  ;;  %v7554_v35 = vcombine.high %v1522_v23, %v1526_v25  ;;  %v1530_v37 = vld [vmem:[#allocation6 + $0xb00] sm:$0xff] }
 0x2cb   : > { %4406 = vmatprep.mubr.bf16.mxu0 %v9597_v57  ;;  %4570 = vmatprep.mubr.bf16.mxu1 %v9597_v57  ;;  %v7524_v54 = vcombine.high %v1491_v48, %v1495_v62  ;;  %v1534_v39 = vld [vmem:[#allocation6 + $0xb20] sm:$0xff] }
 0x2cd   : > { %4377 = vmatpush1.bf16.msra.mxu0 %v7473_v59  ;;  %4541 = vmatpush1.bf16.msra.mxu1 %v7475_v63  ;;  %v1499_v59 = vld [vmem:[#allocation6 + $0xa08] sm:$0xff] }
 0x2ce   : > { %4378 = vmatprep.subr.bf16.mxu0 %v7482_v1  ;;  %4542 = vmatprep.subr.bf16.mxu1 %v7484_v2  ;;  %v1503_v63 = vld [vmem:[#allocation6 + $0xa28] sm:$0xff]  ;;  %v7521_v1 = vcombine.low %v1490_v44, %v1494_v45  ;;  %v7523_v2 = vcombine.low %v1491_v48, %v1495_v62  ;;  %v7562_v44 = vcombine.high %v1530_v37, %v1534_v39  ;;  %v1538_v48 = vld [vmem:[#allocation6 + $0xb40] sm:$0xff] }
 0x2cf   : > { %v7532_v4 = vcombine.high %v1499_v59, %v1503_v63  ;;  %v1542_v62 = vld [vmem:[#allocation6 + $0xb60] sm:$0xff] }
 0x2d1   : > { %4379 = vmatpush1.bf16.msra.mxu0 %v7481_v8  ;;  %4543 = vmatpush1.bf16.msra.mxu1 %v7483_v9  ;;  %v1507_v8 = vld [vmem:[#allocation6 + $0xa48] sm:$0xff] }
 0x2d2   : > { %4380 = vmatprep.subr.bf16.mxu0 %v7490_v10  ;;  %4544 = vmatprep.subr.bf16.mxu1 %v7492_v11  ;;  %v1511_v9 = vld [vmem:[#allocation6 + $0xa68] sm:$0xff]  ;;  %v7529_v10 = vcombine.low %v1498_v55, %v1502_v56  ;;  %v7531_v11 = vcombine.low %v1499_v59, %v1503_v63  ;;  %v7570_v56 = vcombine.high %v1538_v48, %v1542_v62  ;;  %v1546_v63 = vld [vmem:[#allocation6 + $0xb80] sm:$0xff] }
 0x2d3   : > { %v7540_v13 = vcombine.high %v1507_v8, %v1511_v9 }
 0x2d5   : > { %4381 = vmatpush1.bf16.msra.mxu0 %v7489_v16  ;;  %4545 = vmatpush1.bf16.msra.mxu1 %v7491_v17  ;;  %v1515_v16 = vld [vmem:[#allocation6 + $0xa88] sm:$0xff] }
 0x2d6   : > { %4382 = vmatprep.subr.bf16.mxu0 %v7498_v18  ;;  %4546 = vmatprep.subr.bf16.mxu1 %v7500_v19  ;;  %v1519_v17 = vld [vmem:[#allocation6 + $0xaa8] sm:$0xff]  ;;  %v7537_v18 = vcombine.low %v1506_v5, %v1510_v6  ;;  %v7539_v19 = vcombine.low %v1507_v8, %v1511_v9  ;;  %v7569_v6 = vcombine.low %v1538_v48, %v1542_v62  ;;  %v1578_v48 = vld [vmem:[#allocation6 + $0xc80] sm:$0xff] }
 0x2d7   : > { %v7548_v22 = vcombine.high %v1515_v16, %v1519_v17  ;;  %v1582_v62 = vld [vmem:[#allocation6 + $0xca0] sm:$0xff] }
 0x2d9   : > { %4383 = vmatpush1.bf16.msra.mxu0 %v7497_v31  ;;  %4547 = vmatpush1.bf16.msra.mxu1 %v7499_v32  ;;  %v1523_v31 = vld [vmem:[#allocation6 + $0xac8] sm:$0xff] }
 0x2da   : > { %4384 = vmatprep.subr.bf16.mxu0 %v7506_v33  ;;  %4548 = vmatprep.subr.bf16.mxu1 %v7508_v34  ;;  %v1527_v32 = vld [vmem:[#allocation6 + $0xae8] sm:$0xff]  ;;  %v7545_v33 = vcombine.low %v1514_v14, %v1518_v15  ;;  %v7547_v34 = vcombine.low %v1515_v16, %v1519_v17 }
 0x2db   : > { %v7556_v36 = vcombine.high %v1523_v31, %v1527_v32  ;;  %v1559_v14 = vld [vmem:[#allocation6 + $0xbe8] sm:$0xff] }
 0x2dd   : > { %4385 = vmatpush1.bf16.msra.mxu0 %v7505_v38  ;;  %4549 = vmatpush1.bf16.msra.mxu1 %v7507_v40  ;;  %v1531_v38 = vld [vmem:[#allocation6 + $0xb08] sm:$0xff] }
 0x2de   : > { %4386 = vmatprep.subr.bf16.mxu0 %v7514_v42  ;;  %4550 = vmatprep.subr.bf16.mxu1 %v7516_v43  ;;  %v1535_v40 = vld [vmem:[#allocation6 + $0xb28] sm:$0xff]  ;;  %v7553_v42 = vcombine.low %v1522_v23, %v1526_v25  ;;  %v7555_v43 = vcombine.low %v1523_v31, %v1527_v32  ;;  %v1566_v23 = vld [vmem:[#allocation6 + $0xc20] sm:$0xff] }
 0x2df   : > { %v7564_v45 = vcombine.high %v1531_v38, %v1535_v40  ;;  %v7563_v55 = vcombine.low %v1531_v38, %v1535_v40  ;;  %v1563_v25 = vld [vmem:[#allocation6 + $0xc08] sm:$0xff] }
 0x2e0   : > { %v1567_v31 = vld [vmem:[#allocation6 + $0xc28] sm:$0xff] }
 0x2e1   : > { %4387 = vmatpush1.bf16.msra.mxu0 %v7513_v49  ;;  %4551 = vmatpush1.bf16.msra.mxu1 %v7515_v50  ;;  %v1539_v49 = vld [vmem:[#allocation6 + $0xb48] sm:$0xff] }
 0x2e2   : > { %4388 = vmatprep.subr.bf16.mxu0 %v7522_v52  ;;  %4552 = vmatprep.subr.bf16.mxu1 %v7524_v54  ;;  %v1543_v50 = vld [vmem:[#allocation6 + $0xb68] sm:$0xff]  ;;  %v9604_v52 = vsub.s32 4, %v9538_v26  ;;  %v7561_v54 = vcombine.low %v1530_v37, %v1534_v39  ;;  %v1574_v37 = vld [vmem:[#allocation6 + $0xc60] sm:$0xff] }
 0x2e3   : > { %v7572_v59 = vcombine.high %v1539_v49, %v1543_v50  ;;  %v7571_v8 = vcombine.low %v1539_v49, %v1543_v50  ;;  %v1571_v39 = vld [vmem:[#allocation6 + $0xc48] sm:$0xff] }
 0x2e4   : > { %v809_v5 = vrot.slane %v9543_v28, %v9604_v52  ;;  %v1575_v38 = vld [vmem:[#allocation6 + $0xc68] sm:$0xff] }
 0x2e5   : > { %4389 = vmatpush1.bf16.msra.mxu0 %v7521_v1  ;;  %4553 = vmatpush1.bf16.msra.mxu1 %v7523_v2  ;;  %v1550_v1 = vld [vmem:[#allocation6 + $0xba0] sm:$0xff]  ;;  %v1547_v2 = vld [vmem:[#allocation6 + $0xb88] sm:$0xff] }
 0x2e6   : > { %4390 = vmatprep.subr.bf16.mxu0 %v7530_v3  ;;  %4554 = vmatprep.subr.bf16.mxu1 %v7532_v4  ;;  %v1551_v3 = vld [vmem:[#allocation6 + $0xba8] sm:$0xff]  ;;  %v820_v4 = vsub.s32 7, %v9538_v26  ;;  %v7578_v9 = vcombine.high %v1546_v63, %v1550_v1  ;;  %v1031_v16 = vadd.f32 %v9567_v61, %v809_v5  ;;  %v7577_v17 = vcombine.low %v1546_v63, %v1550_v1  ;;  %v1586_v1 = vld [vmem:[#allocation6 + $0xcc0] sm:$0xff] }
 0x2e7   : > { %v1579_v49 = vld [vmem:[#allocation6 + $0xc88] sm:$0xff] }
 0x2e8   : > { %v821_v15 = vrot.slane %v9543_v28, %v820_v4  ;;  %v1583_v50 = vld [vmem:[#allocation6 + $0xca8] sm:$0xff] }
 0x2e9   : > { %4391 = vmatpush1.bf16.msra.mxu0 %v7529_v10  ;;  %4555 = vmatpush1.bf16.msra.mxu1 %v7531_v11  ;;  %v7580_v10 = vcombine.high %v1547_v2, %v1551_v3  ;;  %v1554_v11 = vld [vmem:[#allocation6 + $0xbc0] sm:$0xff]  ;;  %v7612_v63 = vcombine.high %v1579_v49, %v1583_v50  ;;  %v1591_v5 = vld [vmem:[#allocation6 + $0xce8] sm:$0xff] }
 0x2ea   : > { %4392 = vmatprep.subr.bf16.mxu0 %v7538_v12  ;;  %4556 = vmatprep.subr.bf16.mxu1 %v7540_v13  ;;  %v1558_v12 = vld [vmem:[#allocation6 + $0xbe0] sm:$0xff]  ;;  %v1555_v13 = vld [vmem:[#allocation6 + $0xbc8] sm:$0xff]  ;;  %v1074_v32 = vadd.f32 %v9577_v24, %v821_v15  ;;  %v7595_v24 = vcombine.low %v1563_v25, %v1567_v31 }
 0x2eb   : > { %v7585_v28 = vcombine.low %v1554_v11, %v1558_v12 }
 0x2ec   : > { %v1167_v40 = vmax.f32 %v1074_v32, 0.0 }
 0x2ed   : > { %4393 = vmatpush1.bf16.msra.mxu0 %v7537_v18  ;;  %4557 = vmatpush1.bf16.msra.mxu1 %v7539_v19  ;;  %v7579_v18 = vcombine.low %v1547_v2, %v1551_v3  ;;  %v7586_v19 = vcombine.high %v1554_v11, %v1558_v12  ;;  %v1590_v2 = vld [vmem:[#allocation6 + $0xce0] sm:$0xff]  ;;  %v1587_v3 = vld [vmem:[#allocation6 + $0xcc8] sm:$0xff] }
 0x2ee   : > { %4394 = vmatprep.subr.bf16.mxu0 %v7546_v21  ;;  %4558 = vmatprep.subr.bf16.mxu1 %v7548_v22  ;;  %v7588_v21 = vcombine.high %v1555_v13, %v1559_v14  ;;  %v1562_v22 = vld [vmem:[#allocation6 + $0xc00] sm:$0xff]  ;;  %v7617_v15 = vcombine.low %v1586_v1, %v1590_v2 }
 0x2ef   : > { %v7594_v61 = vcombine.high %v1562_v22, %v1566_v23  ;;  %v1594_v11 = vld [vmem:[#allocation6 + $0xd00] sm:$0xff] }
 0x2f0   : > { %v1598_v12 = vld [vmem:[#allocation6 + $0xd20] sm:$0xff] }
 0x2f1   : > { %4395 = vmatpush1.bf16.msra.mxu0 %v7545_v33  ;;  %4559 = vmatpush1.bf16.msra.mxu1 %v7547_v34  ;;  %v1164_v33 = vmax.f32 %v1031_v16, 0.0  ;;  %v7587_v34 = vcombine.low %v1555_v13, %v1559_v14  ;;  %v1595_v13 = vld [vmem:[#allocation6 + $0xd08] sm:$0xff]  ;;  %v7619_v16 = vcombine.low %v1587_v3, %v1591_v5 }
 0x2f2   : > { %4396 = vmatprep.subr.bf16.mxu0 %v7554_v35  ;;  %4560 = vmatprep.subr.bf16.mxu1 %v7556_v36  ;;  %v7596_v35 = vcombine.high %v1563_v25, %v1567_v31  ;;  %v1570_v36 = vld [vmem:[#allocation6 + $0xc40] sm:$0xff]  ;;  %v1599_v14 = vld [vmem:[#allocation6 + $0xd28] sm:$0xff]  ;;  %v7625_v25 = vcombine.low %v1594_v11, %v1598_v12 }
 0x2f3   : > { %v7627_v31 = vcombine.low %v1595_v13, %v1599_v14 }
 0x2f5   : > { %4397 = vmatpush1.bf16.msra.mxu0 %v7553_v42  ;;  %4561 = vmatpush1.bf16.msra.mxu1 %v7555_v43  ;;  %v9614_v42 = vpack.c.bf16 %v1164_v33, %v1164_v33  ;;  %v7593_v43 = vcombine.low %v1562_v22, %v1566_v23  ;;  %v1603_v22 = vld [vmem:[#allocation6 + $0xd48] sm:$0xff] }
 0x2f6   : > { %4398 = vmatprep.subr.bf16.mxu0 %v7562_v44  ;;  %4562 = vmatprep.subr.bf16.mxu1 %v7564_v45  ;;  %v7602_v44 = vcombine.high %v1570_v36, %v1574_v37  ;;  %v7604_v45 = vcombine.high %v1571_v39, %v1575_v38  ;;  %v1607_v23 = vld [vmem:[#allocation6 + $0xd68] sm:$0xff] }
 0x2f7   : > { %v7636_v33 = vcombine.high %v1603_v22, %v1607_v23 }
 0x2f9   : > { %4399 = vmatpush1.bf16.msra.mxu0 %v7561_v54  ;;  %4563 = vmatpush1.bf16.msra.mxu1 %v7563_v55  ;;  %v9616_v54 = vpack.c.bf16 %v1167_v40, %v1167_v40  ;;  %v7601_v55 = vcombine.low %v1570_v36, %v1574_v37  ;;  %v7635_v37 = vcombine.low %v1603_v22, %v1607_v23  ;;  %v1618_v40 = vld [vmem:[#allocation6 + $0xdc0] sm:$0xff] }
 0x2fa   : > { %4400 = vmatprep.subr.bf16.mxu0 %v7570_v56  ;;  %4564 = vmatprep.subr.bf16.mxu1 %v7572_v59  ;;  %v7603_v56 = vcombine.low %v1571_v39, %v1575_v38  ;;  %v7610_v59 = vcombine.high %v1578_v48, %v1582_v62  ;;  %v1650_v23 = vld [vmem:[#allocation6 + $0xec0] sm:$0xff] }
 0x2fd   : > { %4401 = vmatpush1.bf16.msra.mxu0 %v7569_v6  ;;  %4565 = vmatpush1.bf16.msra.mxu1 %v7571_v8  ;;  %v7609_v6 = vcombine.low %v1578_v48, %v1582_v62  ;;  %v7611_v8 = vcombine.low %v1579_v49, %v1583_v50  ;;  %v1626_v50 = vld [vmem:[#allocation6 + $0xe00] sm:$0xff] }
 0x2fe   : > { %4402 = vmatprep.subr.bf16.mxu0 %v7578_v9  ;;  %4566 = vmatprep.subr.bf16.mxu1 %v7580_v10  ;;  %v7618_v9 = vcombine.high %v1586_v1, %v1590_v2  ;;  %v7620_v10 = vcombine.high %v1587_v3, %v1591_v5  ;;  %v1634_v5 = vld [vmem:[#allocation6 + $0xe40] sm:$0xff] }
 0x301   : > { %4403 = vmatpush1.bf16.msra.mxu0 %v7577_v17  ;;  %4567 = vmatpush1.bf16.msra.mxu1 %v7579_v18  ;;  %v7626_v17 = vcombine.high %v1594_v11, %v1598_v12  ;;  %v7628_v18 = vcombine.high %v1595_v13, %v1599_v14  ;;  %v1642_v14 = vld [vmem:[#allocation6 + $0xe80] sm:$0xff] }
 0x302   : > { %4404 = vmatprep.subr.bf16.mxu0 %v7586_v19  ;;  %4568 = vmatprep.subr.bf16.mxu1 %v7588_v21  ;;  %v1602_v19 = vld [vmem:[#allocation6 + $0xd40] sm:$0xff] }
 0x303   : > { %v1606_v21 = vld [vmem:[#allocation6 + $0xd60] sm:$0xff] }
 0x304   : > { %v7634_v32 = vcombine.high %v1602_v19, %v1606_v21  ;;  %v7633_v36 = vcombine.low %v1602_v19, %v1606_v21 }
 0x305   : > { %4405 = vmatpush1.bf16.msra.mxu0 %v7585_v28  ;;  %4569 = vmatpush1.bf16.msra.mxu1 %v7587_v34  ;;  %v1610_v28 = vld [vmem:[#allocation6 + $0xd80] sm:$0xff] }
 0x306   : > { %4415 = vmatprep.subr.bf16.mxu0 %v7594_v61  ;;  %4579 = vmatprep.subr.bf16.mxu1 %v7596_v35  ;;  %v1614_v34 = vld [vmem:[#allocation6 + $0xda0] sm:$0xff]  ;;  %v1611_v61 = vld [vmem:[#allocation6 + $0xd88] sm:$0xff] }
 0x307   : > { %v1615_v35 = vld [vmem:[#allocation6 + $0xda8] sm:$0xff]  ;;  %v7642_v39 = vcombine.high %v1610_v28, %v1614_v34 }
 0x308   : > { %4407 = vmatmul.mubr.bf16.vlgmr.msra.gmra.mrb[12].mxu0 %v9614_v42  ;;  %4571 = vmatmul.mubr.bf16.vlgmr.msra.gmra.mrb[12].mxu1 %v9614_v42  ;;  %v7644_v38 = vcombine.high %v1611_v61, %v1615_v35  ;;  %v7643_v48 = vcombine.low %v1611_v61, %v1615_v35  ;;  %v1658_v35 = vld [vmem:[#allocation6 + $0xf00] sm:$0xff] }
 0x309   : > { %4416 = vmatpush1.bf16.msra.mxu0 %v7593_v43  ;;  %4580 = vmatpush1.bf16.msra.mxu1 %v7595_v24  ;;  %v1622_v43 = vld [vmem:[#allocation6 + $0xde0] sm:$0xff]  ;;  %v1619_v24 = vld [vmem:[#allocation6 + $0xdc8] sm:$0xff] }
 0x30a   : > { %4417 = vmatprep.subr.bf16.mxu0 %v7602_v44  ;;  %4581 = vmatprep.subr.bf16.mxu1 %v7604_v45  ;;  %v1623_v44 = vld [vmem:[#allocation6 + $0xde8] sm:$0xff]  ;;  %v7641_v45 = vcombine.low %v1610_v28, %v1614_v34  ;;  %v7650_v62 = vcombine.high %v1618_v40, %v1622_v43 }
 0x30b   : > { %4447 = vmatprep.mubr.bf16.mxu0 %v9616_v54  ;;  %4611 = vmatprep.mubr.bf16.mxu1 %v9616_v54  ;;  %v7652_v49 = vcombine.high %v1619_v24, %v1623_v44  ;;  %v7651_v1 = vcombine.low %v1619_v24, %v1623_v44  ;;  %v1666_v44 = vld [vmem:[#allocation6 + $0xf40] sm:$0xff] }
 0x30d   : > { %4418 = vmatpush1.bf16.msra.mxu0 %v7601_v55  ;;  %4582 = vmatpush1.bf16.msra.mxu1 %v7603_v56  ;;  %v1630_v55 = vld [vmem:[#allocation6 + $0xe20] sm:$0xff]  ;;  %v1627_v56 = vld [vmem:[#allocation6 + $0xe08] sm:$0xff] }
 0x30e   : > { %4419 = vmatprep.subr.bf16.mxu0 %v7610_v59  ;;  %4583 = vmatprep.subr.bf16.mxu1 %v7612_v63  ;;  %v1631_v59 = vld [vmem:[#allocation6 + $0xe28] sm:$0xff]  ;;  %v7649_v63 = vcombine.low %v1618_v40, %v1622_v43  ;;  %v7658_v2 = vcombine.high %v1626_v50, %v1630_v55 }
 0x30f   : > { %v7660_v3 = vcombine.high %v1627_v56, %v1631_v59  ;;  %v7659_v11 = vcombine.low %v1627_v56, %v1631_v59 }
 0x311   : > { %4420 = vmatpush1.bf16.msra.mxu0 %v7609_v6  ;;  %4584 = vmatpush1.bf16.msra.mxu1 %v7611_v8  ;;  %v1638_v6 = vld [vmem:[#allocation6 + $0xe60] sm:$0xff]  ;;  %v1635_v8 = vld [vmem:[#allocation6 + $0xe48] sm:$0xff] }
 0x312   : > { %4421 = vmatprep.subr.bf16.mxu0 %v7618_v9  ;;  %4585 = vmatprep.subr.bf16.mxu1 %v7620_v10  ;;  %v1639_v9 = vld [vmem:[#allocation6 + $0xe68] sm:$0xff]  ;;  %v7657_v10 = vcombine.low %v1626_v50, %v1630_v55  ;;  %v7666_v12 = vcombine.high %v1634_v5, %v1638_v6  ;;  %v816_v55 = vsub.s32 6, %v9538_v26 }
 0x313   : > { %v7668_v13 = vcombine.high %v1635_v8, %v1639_v9  ;;  %v7667_v19 = vcombine.low %v1635_v8, %v1639_v9  ;;  %v8544_v8 = vld [vmem:[#allocation4] sm:$0xff] }
 0x314   : > { %v817_v9 = vrot.slane %v8544_v8, %v816_v55 }
 0x315   : > { %4422 = vmatpush1.bf16.msra.mxu0 %v7617_v15  ;;  %4586 = vmatpush1.bf16.msra.mxu1 %v7619_v16  ;;  %v1646_v15 = vld [vmem:[#allocation6 + $0xea0] sm:$0xff]  ;;  %v1643_v16 = vld [vmem:[#allocation6 + $0xe88] sm:$0xff] }
 0x316   : > { %4423 = vmatprep.subr.bf16.mxu0 %v7626_v17  ;;  %4587 = vmatprep.subr.bf16.mxu1 %v7628_v18  ;;  %v1647_v17 = vld [vmem:[#allocation6 + $0xea8] sm:$0xff]  ;;  %v7665_v18 = vcombine.low %v1634_v5, %v1638_v6  ;;  %v7674_v21 = vcombine.high %v1642_v14, %v1646_v15 }
 0x317   : > { %v7676_v22 = vcombine.high %v1643_v16, %v1647_v17  ;;  %v7675_v28 = vcombine.low %v1643_v16, %v1647_v17 }
 0x319   : > { %4424 = vmatpush1.bf16.msra.mxu0 %v7625_v25  ;;  %4588 = vmatpush1.bf16.msra.mxu1 %v7627_v31  ;;  %v1654_v25 = vld [vmem:[#allocation6 + $0xee0] sm:$0xff]  ;;  %v1651_v31 = vld [vmem:[#allocation6 + $0xec8] sm:$0xff] }
 0x31a   : > { %4425 = vmatprep.subr.bf16.mxu0 %v7634_v32  ;;  %4589 = vmatprep.subr.bf16.mxu1 %v7636_v33  ;;  %v1655_v32 = vld [vmem:[#allocation6 + $0xee8] sm:$0xff]  ;;  %v7673_v33 = vcombine.low %v1642_v14, %v1646_v15  ;;  %v7682_v34 = vcombine.high %v1650_v23, %v1654_v25 }
 0x31b   : > { %v7684_v61 = vcombine.high %v1651_v31, %v1655_v32  ;;  %v7683_v40 = vcombine.low %v1651_v31, %v1655_v32  ;;  %v1683_v14 = vld [vmem:[#allocation6 + $0xfc8] sm:$0xff]  ;;  %v1185_v31 = vld [vmem:[#allocation6 + $0x38] sm:$0xff] }
 0x31c   : > { %v1687_v15 = vld [vmem:[#allocation6 + $0xfe8] sm:$0xff] }
 0x31d   : > { %4426 = vmatpush1.bf16.msra.mxu0 %v7633_v36  ;;  %4590 = vmatpush1.bf16.msra.mxu1 %v7635_v37  ;;  %v1662_v36 = vld [vmem:[#allocation6 + $0xf20] sm:$0xff]  ;;  %v1659_v37 = vld [vmem:[#allocation6 + $0xf08] sm:$0xff] }
 0x31e   : > { %4427 = vmatprep.subr.bf16.mxu0 %v7642_v39  ;;  %4591 = vmatprep.subr.bf16.mxu1 %v7644_v38  ;;  %v1663_v39 = vld [vmem:[#allocation6 + $0xf28] sm:$0xff]  ;;  %v7681_v38 = vcombine.low %v1650_v23, %v1654_v25  ;;  %v7690_v43 = vcombine.high %v1658_v35, %v1662_v36  ;;  %v1184_v23 = vld [vmem:[#allocation6 + $0x30] sm:$0xff]  ;;  %v1181_v25 = vld [vmem:[#allocation6 + $0x18] sm:$0xff] }
 0x31f   : > { %v7692_v24 = vcombine.high %v1659_v37, %v1663_v39  ;;  %v7691_v50 = vcombine.low %v1659_v37, %v1663_v39  ;;  %v1193_v37 = vld [vmem:[#allocation6 + $0x78] sm:$0xff] }
 0x321   : > { %4428 = vmatpush1.bf16.msra.mxu0 %v7641_v45  ;;  %4592 = vmatpush1.bf16.msra.mxu1 %v7643_v48  ;;  %v1670_v45 = vld [vmem:[#allocation6 + $0xf60] sm:$0xff]  ;;  %v1667_v48 = vld [vmem:[#allocation6 + $0xf48] sm:$0xff] }
 0x322   : > { %4429 = vmatprep.subr.bf16.mxu0 %v7650_v62  ;;  %4593 = vmatprep.subr.bf16.mxu1 %v7652_v49  ;;  %v1671_v62 = vld [vmem:[#allocation6 + $0xf68] sm:$0xff]  ;;  %v7689_v49 = vcombine.low %v1658_v35, %v1662_v36  ;;  %v7698_v56 = vcombine.high %v1666_v44, %v1670_v45  ;;  %v7697_v5 = vcombine.low %v1666_v44, %v1670_v45  ;;  %v1188_v35 = vld [vmem:[#allocation6 + $0x50] sm:$0xff] }
 0x323   : > { %v7700_v59 = vcombine.high %v1667_v48, %v1671_v62  ;;  %v7699_v6 = vcombine.low %v1667_v48, %v1671_v62  ;;  %v1192_v36 = vld [vmem:[#allocation6 + $0x70] sm:$0xff]  ;;  %v1197_v48 = vld [vmem:[#allocation6 + $0x98] sm:$0xff] }
 0x324   : > { %v1196_v44 = vld [vmem:[#allocation6 + $0x90] sm:$0xff]  ;;  %v1201_v62 = vld [vmem:[#allocation6 + $0xb8] sm:$0xff] }
 0x325   : > { %4430 = vmatpush1.bf16.msra.mxu0 %v7649_v63  ;;  %4594 = vmatpush1.bf16.msra.mxu1 %v7651_v1  ;;  %v1674_v63 = vld [vmem:[#allocation6 + $0xf80] sm:$0xff]  ;;  %v1200_v45 = vld [vmem:[#allocation6 + $0xb0] sm:$0xff] }
 0x326   : > { %4431 = vmatprep.subr.bf16.mxu0 %v7658_v2  ;;  %4595 = vmatprep.subr.bf16.mxu1 %v7660_v3  ;;  %v1678_v1 = vld [vmem:[#allocation6 + $0xfa0] sm:$0xff]  ;;  %v1675_v2 = vld [vmem:[#allocation6 + $0xf88] sm:$0xff] }
 0x327   : > { %v1679_v3 = vld [vmem:[#allocation6 + $0xfa8] sm:$0xff]  ;;  %v7705_v16 = vcombine.low %v1674_v63, %v1678_v1 }
 0x328   : > { %v7707_v17 = vcombine.low %v1675_v2, %v1679_v3 }
 0x329   : > { %4432 = vmatpush1.bf16.msra.mxu0 %v7657_v10  ;;  %4596 = vmatpush1.bf16.msra.mxu1 %v7659_v11  ;;  %v7706_v10 = vcombine.high %v1674_v63, %v1678_v1  ;;  %v7708_v11 = vcombine.high %v1675_v2, %v1679_v3  ;;  %v1204_v63 = vld [vmem:[#allocation6 + $0xd0] sm:$0xff]  ;;  %v1205_v2 = vld [vmem:[#allocation6 + $0xd8] sm:$0xff] }
 0x32a   : > { %4433 = vmatprep.subr.bf16.mxu0 %v7666_v12  ;;  %4597 = vmatprep.subr.bf16.mxu1 %v7668_v13  ;;  %v1682_v12 = vld [vmem:[#allocation6 + $0xfc0] sm:$0xff]  ;;  %v1208_v1 = vld [vmem:[#allocation6 + $0xf0] sm:$0xff]  ;;  %v1209_v3 = vld [vmem:[#allocation6 + $0xf8] sm:$0xff] }
 0x32b   : > { %v1686_v13 = vld [vmem:[#allocation6 + $0xfe0] sm:$0xff]  ;;  %v7238_v8 = vcombine.high %v1204_v63, %v1208_v1 }
 0x32c   : > { %v7713_v32 = vcombine.low %v1682_v12, %v1686_v13 }
 0x32d   : > { %4434 = vmatpush1.bf16.msra.mxu0 %v7665_v18  ;;  %4598 = vmatpush1.bf16.msra.mxu1 %v7667_v19  ;;  %v1072_v18 = vadd.f32 %v9575_v20, %v817_v9  ;;  %v7714_v19 = vcombine.high %v1682_v12, %v1686_v13  ;;  %v1189_v20 = vld [vmem:[#allocation6 + $0x58] sm:$0xff]  ;;  %v7240_v9 = vcombine.high %v1205_v2, %v1209_v3 }
 0x32e   : > { %4435 = vmatprep.subr.bf16.mxu0 %v7674_v21  ;;  %4599 = vmatprep.subr.bf16.mxu1 %v7676_v22  ;;  %v7716_v21 = vcombine.high %v1683_v14, %v1687_v15  ;;  %v1180_v22 = vld [vmem:[#allocation6 + $0x10] sm:$0xff]  ;;  %v1217_v12 = vld [vmem:[#allocation6 + $0x138] sm:$0xff]  ;;  %v7237_v13 = vcombine.low %v1204_v63, %v1208_v1 }
 0x32f   : > { %v7213_v39 = vcombine.low %v1180_v22, %v1184_v23 }
 0x331   : > { %4436 = vmatpush1.bf16.msra.mxu0 %v7673_v33  ;;  %4600 = vmatpush1.bf16.msra.mxu1 %v7675_v28  ;;  %v7715_v33 = vcombine.low %v1683_v14, %v1687_v15  ;;  %v1166_v28 = vmax.f32 %v1072_v18, 0.0  ;;  %v7239_v14 = vcombine.low %v1205_v2, %v1209_v3  ;;  %v1224_v18 = vld [vmem:[#allocation6 + $0x170] sm:$0xff] }
 0x332   : > { %4437 = vmatprep.subr.bf16.mxu0 %v7682_v34  ;;  %4601 = vmatprep.subr.bf16.mxu1 %v7684_v61  ;;  %v7214_v34 = vcombine.high %v1180_v22, %v1184_v23  ;;  %v7216_v61 = vcombine.high %v1181_v25, %v1185_v31  ;;  %v1252_v3 = vld [vmem:[#allocation6 + $0x250] sm:$0xff] }
 0x335   : > { %4438 = vmatpush1.bf16.msra.mxu0 %v7681_v38  ;;  %4602 = vmatpush1.bf16.msra.mxu1 %v7683_v40  ;;  %v9626_v38 = vpack.c.bf16 %v1166_v28, %v1166_v28  ;;  %v7215_v40 = vcombine.low %v1181_v25, %v1185_v31  ;;  %v1229_v28 = vld [vmem:[#allocation6 + $0x198] sm:$0xff] }
 0x336   : > { %4439 = vmatprep.subr.bf16.mxu0 %v7690_v43  ;;  %4603 = vmatprep.subr.bf16.mxu1 %v7692_v24  ;;  %v7222_v43 = vcombine.high %v1188_v35, %v1192_v36  ;;  %v7224_v24 = vcombine.high %v1189_v20, %v1193_v37 }
 0x339   : > { %4440 = vmatpush1.bf16.msra.mxu0 %v7689_v49  ;;  %4604 = vmatpush1.bf16.msra.mxu1 %v7691_v50  ;;  %v7221_v49 = vcombine.low %v1188_v35, %v1192_v36  ;;  %v7223_v50 = vcombine.low %v1189_v20, %v1193_v37  ;;  %v1236_v37 = vld [vmem:[#allocation6 + $0x1d0] sm:$0xff] }
 0x33a   : > { %4441 = vmatprep.subr.bf16.mxu0 %v7698_v56  ;;  %4605 = vmatprep.subr.bf16.mxu1 %v7700_v59  ;;  %v7230_v56 = vcombine.high %v1196_v44, %v1200_v45  ;;  %v7232_v59 = vcombine.high %v1197_v48, %v1201_v62 }
 0x33d   : > { %4442 = vmatpush1.bf16.msra.mxu0 %v7697_v5  ;;  %4606 = vmatpush1.bf16.msra.mxu1 %v7699_v6  ;;  %v7229_v5 = vcombine.low %v1196_v44, %v1200_v45  ;;  %v7231_v6 = vcombine.low %v1197_v48, %v1201_v62  ;;  %v1244_v62 = vld [vmem:[#allocation6 + $0x210] sm:$0xff] }
 0x33e   : > { %4443 = vmatprep.subr.bf16.mxu0 %v7706_v10  ;;  %4607 = vmatprep.subr.bf16.mxu1 %v7708_v11  ;;  %v1212_v10 = vld [vmem:[#allocation6 + $0x110] sm:$0xff] }
 0x33f   : > { %v1216_v11 = vld [vmem:[#allocation6 + $0x130] sm:$0xff] }
 0x340   : > { %v7246_v15 = vcombine.high %v1212_v10, %v1216_v11  ;;  %v7245_v22 = vcombine.low %v1212_v10, %v1216_v11 }
 0x341   : > { %4444 = vmatpush1.bf16.msra.mxu0 %v7705_v16  ;;  %4608 = vmatpush1.bf16.msra.mxu1 %v7707_v17  ;;  %v1220_v17 = vld [vmem:[#allocation6 + $0x150] sm:$0xff] }
 0x342   : > { %4445 = vmatprep.subr.bf16.mxu0 %v7714_v19  ;;  %4609 = vmatprep.subr.bf16.mxu1 %v7716_v21  ;;  %v1221_v19 = vld [vmem:[#allocation6 + $0x158] sm:$0xff]  ;;  %v7254_v25 = vcombine.high %v1220_v17, %v1224_v18 }
 0x343   : > { %v1225_v21 = vld [vmem:[#allocation6 + $0x178] sm:$0xff] }
 0x344   : > { %v7256_v31 = vcombine.high %v1221_v19, %v1225_v21  ;;  %v7255_v35 = vcombine.low %v1221_v19, %v1225_v21  ;;  %v1268_v21 = vld [vmem:[#allocation6 + $0x2d0] sm:$0xff] }
 0x345   : > { %4446 = vmatpush1.bf16.msra.mxu0 %v7713_v32  ;;  %4610 = vmatpush1.bf16.msra.mxu1 %v7715_v33  ;;  %v1228_v32 = vld [vmem:[#allocation6 + $0x190] sm:$0xff] }
 0x346   : > { %4620 = vmatprep.subr.bf16.mxu0 %v7214_v34  ;;  %4784 = vmatprep.subr.bf16.mxu1 %v7216_v61  ;;  %v1232_v33 = vld [vmem:[#allocation6 + $0x1b0] sm:$0xff]  ;;  %v1233_v34 = vld [vmem:[#allocation6 + $0x1b8] sm:$0xff]  ;;  %v7253_v61 = vcombine.low %v1220_v17, %v1224_v18 }
 0x347   : > { %v7262_v36 = vcombine.high %v1228_v32, %v1232_v33  ;;  %v7264_v20 = vcombine.high %v1229_v28, %v1233_v34  ;;  %v7263_v44 = vcombine.low %v1229_v28, %v1233_v34  ;;  %v1276_v34 = vld [vmem:[#allocation6 + $0x310] sm:$0xff] }
 0x348   : > { %4448 = vmatmul.mubr.bf16.vlgmr.msra.gmra.mrb[12].mxu0 %v9626_v38  ;;  %4612 = vmatmul.mubr.bf16.vlgmr.msra.gmra.mrb[12].mxu1 %v9626_v38 }
 0x349   : > { %4621 = vmatpush1.bf16.msra.mxu0 %v7213_v39  ;;  %4652 = vmatprep.mubr.bf16.mxu0 %v9559_v51  ;;  %v1240_v39 = vld [vmem:[#allocation6 + $0x1f0] sm:$0xff] }
 0x34a   : > { %4785 = vmatpush1.bf16.msra.mxu1 %v7215_v40  ;;  %4816 = vmatprep.mubr.bf16.mxu1 %v9559_v51  ;;  %v1213_v51 = vld [vmem:[#allocation6 + $0x118] sm:$0xff]  ;;  %v7270_v45 = vcombine.high %v1236_v37, %v1240_v39 }
 0x34b   : > { %4622 = vmatprep.subr.bf16.mxu0 %v7222_v43  ;;  %4786 = vmatprep.subr.bf16.mxu1 %v7224_v24  ;;  %v7248_v16 = vcombine.high %v1213_v51, %v1217_v12  ;;  %v7247_v23 = vcombine.low %v1213_v51, %v1217_v12  ;;  %v1237_v40 = vld [vmem:[#allocation6 + $0x1d8] sm:$0xff]  ;;  %v7261_v24 = vcombine.low %v1228_v32, %v1232_v33  ;;  %v1260_v12 = vld [vmem:[#allocation6 + $0x290] sm:$0xff] }
 0x34c   : > { %v1241_v43 = vld [vmem:[#allocation6 + $0x1f8] sm:$0xff] }
 0x34d   : > { %4623 = vmatpush1.bf16.msra.mxu0 %v7221_v49  ;;  %v7272_v48 = vcombine.high %v1237_v40, %v1241_v43  ;;  %v1248_v49 = vld [vmem:[#allocation6 + $0x230] sm:$0xff]  ;;  %v7271_v63 = vcombine.low %v1237_v40, %v1241_v43 }
 0x34e   : > { %4787 = vmatpush1.bf16.msra.mxu1 %v7223_v50  ;;  %4624 = vmatprep.subr.bf16.mxu0 %v7230_v56  ;;  %v1245_v50 = vld [vmem:[#allocation6 + $0x218] sm:$0xff]  ;;  %v7278_v1 = vcombine.high %v1244_v62, %v1248_v49  ;;  %v1284_v43 = vld [vmem:[#allocation6 + $0x350] sm:$0xff] }
 0x34f   : > { %4788 = vmatprep.subr.bf16.mxu1 %v7232_v59  ;;  %v1249_v56 = vld [vmem:[#allocation6 + $0x238] sm:$0xff]  ;;  %v7269_v59 = vcombine.low %v1236_v37, %v1240_v39 }
 0x350   : > { %v7280_v2 = vcombine.high %v1245_v50, %v1249_v56  ;;  %v7279_v10 = vcombine.low %v1245_v50, %v1249_v56  ;;  %v1292_v56 = vld [vmem:[#allocation6 + $0x390] sm:$0xff] }
 0x351   : > { %4625 = vmatpush1.bf16.msra.mxu0 %v7229_v5  ;;  %v1256_v5 = vld [vmem:[#allocation6 + $0x270] sm:$0xff] }
 0x352   : > { %4789 = vmatpush1.bf16.msra.mxu1 %v7231_v6  ;;  %4626 = vmatprep.subr.bf16.mxu0 %v7238_v8  ;;  %v1253_v6 = vld [vmem:[#allocation6 + $0x258] sm:$0xff]  ;;  %v7286_v11 = vcombine.high %v1252_v3, %v1256_v5 }
 0x353   : > { %4790 = vmatprep.subr.bf16.mxu1 %v7240_v9  ;;  %v1257_v8 = vld [vmem:[#allocation6 + $0x278] sm:$0xff]  ;;  %v7277_v9 = vcombine.low %v1244_v62, %v1248_v49 }
 0x354   : > { %v7288_v51 = vcombine.high %v1253_v6, %v1257_v8  ;;  %v7287_v17 = vcombine.low %v1253_v6, %v1257_v8  ;;  %v1300_v8 = vld [vmem:[#allocation6 + $0x3d0] sm:$0xff] }
 0x355   : > { %4627 = vmatpush1.bf16.msra.mxu0 %v7237_v13  ;;  %v1264_v13 = vld [vmem:[#allocation6 + $0x2b0] sm:$0xff] }
 0x356   : > { %4791 = vmatpush1.bf16.msra.mxu1 %v7239_v14  ;;  %4628 = vmatprep.subr.bf16.mxu0 %v7246_v15  ;;  %v1261_v14 = vld [vmem:[#allocation6 + $0x298] sm:$0xff]  ;;  %v7294_v18 = vcombine.high %v1260_v12, %v1264_v13 }
 0x357   : > { %4792 = vmatprep.subr.bf16.mxu1 %v7248_v16  ;;  %v1265_v15 = vld [vmem:[#allocation6 + $0x2b8] sm:$0xff]  ;;  %v7285_v16 = vcombine.low %v1252_v3, %v1256_v5 }
 0x358   : > { %v7296_v19 = vcombine.high %v1261_v14, %v1265_v15  ;;  %v7295_v32 = vcombine.low %v1261_v14, %v1265_v15  ;;  %v1308_v15 = vld [vmem:[#allocation6 + $0x410] sm:$0xff] }
 0x359   : > { %4629 = vmatpush1.bf16.msra.mxu0 %v7245_v22  ;;  %v1272_v22 = vld [vmem:[#allocation6 + $0x2f0] sm:$0xff] }
 0x35a   : > { %4793 = vmatpush1.bf16.msra.mxu1 %v7247_v23  ;;  %4630 = vmatprep.subr.bf16.mxu0 %v7254_v25  ;;  %v1269_v23 = vld [vmem:[#allocation6 + $0x2d8] sm:$0xff]  ;;  %v7302_v33 = vcombine.high %v1268_v21, %v1272_v22 }
 0x35b   : > { %4794 = vmatprep.subr.bf16.mxu1 %v7256_v31  ;;  %v1273_v25 = vld [vmem:[#allocation6 + $0x2f8] sm:$0xff]  ;;  %v7293_v31 = vcombine.low %v1260_v12, %v1264_v13 }
 0x35c   : > { %v7304_v28 = vcombine.high %v1269_v23, %v1273_v25  ;;  %v7303_v37 = vcombine.low %v1269_v23, %v1273_v25  ;;  %v1316_v25 = vld [vmem:[#allocation6 + $0x450] sm:$0xff] }
 0x35d   : > { %4631 = vmatpush1.bf16.msra.mxu0 %v7253_v61  ;;  %v1280_v61 = vld [vmem:[#allocation6 + $0x330] sm:$0xff] }
 0x35e   : > { %4795 = vmatpush1.bf16.msra.mxu1 %v7255_v35  ;;  %4632 = vmatprep.subr.bf16.mxu0 %v7262_v36  ;;  %v1277_v35 = vld [vmem:[#allocation6 + $0x318] sm:$0xff]  ;;  %v7310_v39 = vcombine.high %v1276_v34, %v1280_v61 }
 0x35f   : > { %4796 = vmatprep.subr.bf16.mxu1 %v7264_v20  ;;  %v1281_v36 = vld [vmem:[#allocation6 + $0x338] sm:$0xff]  ;;  %v7301_v20 = vcombine.low %v1268_v21, %v1272_v22 }
 0x360   : > { %v7312_v40 = vcombine.high %v1277_v35, %v1281_v36  ;;  %v7311_v62 = vcombine.low %v1277_v35, %v1281_v36  ;;  %v1324_v35 = vld [vmem:[#allocation6 + $0x490] sm:$0xff] }
 0x361   : > { %4633 = vmatpush1.bf16.msra.mxu0 %v7261_v24  ;;  %v1288_v24 = vld [vmem:[#allocation6 + $0x370] sm:$0xff] }
 0x362   : > { %4797 = vmatpush1.bf16.msra.mxu1 %v7263_v44  ;;  %4634 = vmatprep.subr.bf16.mxu0 %v7270_v45  ;;  %v1285_v44 = vld [vmem:[#allocation6 + $0x358] sm:$0xff]  ;;  %v7318_v49 = vcombine.high %v1284_v43, %v1288_v24  ;;  %v1328_v36 = vld [vmem:[#allocation6 + $0x4b0] sm:$0xff] }
 0x363   : > { %4798 = vmatprep.subr.bf16.mxu1 %v7272_v48  ;;  %v1289_v45 = vld [vmem:[#allocation6 + $0x378] sm:$0xff]  ;;  %v7309_v48 = vcombine.low %v1276_v34, %v1280_v61 }
 0x364   : > { %v7320_v50 = vcombine.high %v1285_v44, %v1289_v45  ;;  %v7319_v3 = vcombine.low %v1285_v44, %v1289_v45  ;;  %v1332_v45 = vld [vmem:[#allocation6 + $0x4d0] sm:$0xff] }
 0x365   : > { %4635 = vmatpush1.bf16.msra.mxu0 %v7269_v59  ;;  %v1296_v59 = vld [vmem:[#allocation6 + $0x3b0] sm:$0xff] }
 0x366   : > { %4799 = vmatpush1.bf16.msra.mxu1 %v7271_v63  ;;  %4636 = vmatprep.subr.bf16.mxu0 %v7278_v1  ;;  %v1293_v63 = vld [vmem:[#allocation6 + $0x398] sm:$0xff]  ;;  %v7326_v5 = vcombine.high %v1292_v56, %v1296_v59 }
 0x367   : > { %4800 = vmatprep.subr.bf16.mxu1 %v7280_v2  ;;  %v1297_v1 = vld [vmem:[#allocation6 + $0x3b8] sm:$0xff]  ;;  %v7317_v2 = vcombine.low %v1284_v43, %v1288_v24  ;;  %v7358_v24 = vcombine.high %v1324_v35, %v1328_v36 }
 0x368   : > { %v7328_v6 = vcombine.high %v1293_v63, %v1297_v1  ;;  %v7327_v12 = vcombine.low %v1293_v63, %v1297_v1  ;;  %v1340_v63 = vld [vmem:[#allocation6 + $0x510] sm:$0xff] }
 0x369   : > { %4637 = vmatpush1.bf16.msra.mxu0 %v7277_v9  ;;  %v1304_v9 = vld [vmem:[#allocation6 + $0x3f0] sm:$0xff] }
 0x36a   : > { %4801 = vmatpush1.bf16.msra.mxu1 %v7279_v10  ;;  %4638 = vmatprep.subr.bf16.mxu0 %v7286_v11  ;;  %v1301_v10 = vld [vmem:[#allocation6 + $0x3d8] sm:$0xff]  ;;  %v7334_v13 = vcombine.high %v1300_v8, %v1304_v9  ;;  %v1344_v1 = vld [vmem:[#allocation6 + $0x530] sm:$0xff] }
 0x36b   : > { %4802 = vmatprep.subr.bf16.mxu1 %v7288_v51  ;;  %v1305_v11 = vld [vmem:[#allocation6 + $0x3f8] sm:$0xff]  ;;  %v7325_v51 = vcombine.low %v1292_v56, %v1296_v59 }
 0x36c   : > { %v7336_v14 = vcombine.high %v1301_v10, %v1305_v11  ;;  %v7335_v21 = vcombine.low %v1301_v10, %v1305_v11  ;;  %v1352_v10 = vld [vmem:[#allocation6 + $0x570] sm:$0xff]  ;;  %v1349_v11 = vld [vmem:[#allocation6 + $0x558] sm:$0xff] }
 0x36d   : > { %4639 = vmatpush1.bf16.msra.mxu0 %v7285_v16  ;;  %v1312_v16 = vld [vmem:[#allocation6 + $0x430] sm:$0xff] }
 0x36e   : > { %4803 = vmatpush1.bf16.msra.mxu1 %v7287_v17  ;;  %4640 = vmatprep.subr.bf16.mxu0 %v7294_v18  ;;  %v1309_v17 = vld [vmem:[#allocation6 + $0x418] sm:$0xff]  ;;  %v7342_v22 = vcombine.high %v1308_v15, %v1312_v16 }
 0x36f   : > { %4804 = vmatprep.subr.bf16.mxu1 %v7296_v19  ;;  %v1313_v18 = vld [vmem:[#allocation6 + $0x438] sm:$0xff]  ;;  %v7333_v19 = vcombine.low %v1300_v8, %v1304_v9  ;;  %v1348_v9 = vld [vmem:[#allocation6 + $0x550] sm:$0xff] }
 0x370   : > { %v7344_v23 = vcombine.high %v1309_v17, %v1313_v18  ;;  %v7343_v34 = vcombine.low %v1309_v17, %v1313_v18  ;;  %v1360_v17 = vld [vmem:[#allocation6 + $0x5b0] sm:$0xff]  ;;  %v1357_v18 = vld [vmem:[#allocation6 + $0x598] sm:$0xff] }
 0x371   : > { %4641 = vmatpush1.bf16.msra.mxu0 %v7293_v31  ;;  %v1320_v31 = vld [vmem:[#allocation6 + $0x470] sm:$0xff] }
 0x372   : > { %4805 = vmatpush1.bf16.msra.mxu1 %v7295_v32  ;;  %4642 = vmatprep.subr.bf16.mxu0 %v7302_v33  ;;  %v7341_v32 = vcombine.low %v1308_v15, %v1312_v16  ;;  %v1317_v33 = vld [vmem:[#allocation6 + $0x458] sm:$0xff]  ;;  %v7350_v61 = vcombine.high %v1316_v25, %v1320_v31  ;;  %v1356_v16 = vld [vmem:[#allocation6 + $0x590] sm:$0xff] }
 0x373   : > { %4806 = vmatprep.subr.bf16.mxu1 %v7304_v28  ;;  %v1321_v28 = vld [vmem:[#allocation6 + $0x478] sm:$0xff] }
 0x374   : > { %v7351_v43 = vcombine.low %v1317_v33, %v1321_v28 }
 0x375   : > { %4643 = vmatpush1.bf16.msra.mxu0 %v7301_v20  ;;  %v7352_v20 = vcombine.high %v1317_v33, %v1321_v28  ;;  %v1365_v33 = vld [vmem:[#allocation6 + $0x5d8] sm:$0xff] }
 0x376   : > { %4807 = vmatpush1.bf16.msra.mxu1 %v7303_v37  ;;  %4644 = vmatprep.subr.bf16.mxu0 %v7310_v39  ;;  %v1325_v37 = vld [vmem:[#allocation6 + $0x498] sm:$0xff] }
 0x377   : > { %4808 = vmatprep.subr.bf16.mxu1 %v7312_v40  ;;  %v1329_v39 = vld [vmem:[#allocation6 + $0x4b8] sm:$0xff]  ;;  %v7349_v40 = vcombine.low %v1316_v25, %v1320_v31  ;;  %v1364_v31 = vld [vmem:[#allocation6 + $0x5d0] sm:$0xff] }
 0x378   : > { %v7360_v44 = vcombine.high %v1325_v37, %v1329_v39  ;;  %v1369_v28 = vld [vmem:[#allocation6 + $0x5f8] sm:$0xff] }
 0x379   : > { %4645 = vmatpush1.bf16.msra.mxu0 %v7309_v48  ;;  %v1336_v48 = vld [vmem:[#allocation6 + $0x4f0] sm:$0xff] }
 0x37a   : > { %4809 = vmatpush1.bf16.msra.mxu1 %v7311_v62  ;;  %4646 = vmatprep.subr.bf16.mxu0 %v7318_v49  ;;  %v1333_v62 = vld [vmem:[#allocation6 + $0x4d8] sm:$0xff]  ;;  %v7366_v56 = vcombine.high %v1332_v45, %v1336_v48 }
 0x37b   : > { %4810 = vmatprep.subr.bf16.mxu1 %v7320_v50  ;;  %v1337_v49 = vld [vmem:[#allocation6 + $0x4f8] sm:$0xff]  ;;  %v7357_v50 = vcombine.low %v1324_v35, %v1328_v36  ;;  %v7400_v36 = vcombine.high %v1365_v33, %v1369_v28 }
 0x37c   : > { %v7368_v59 = vcombine.high %v1333_v62, %v1337_v49 }
 0x37d   : > { %4647 = vmatpush1.bf16.msra.mxu0 %v7317_v2  ;;  %v1341_v2 = vld [vmem:[#allocation6 + $0x518] sm:$0xff] }
 0x37e   : > { %4811 = vmatpush1.bf16.msra.mxu1 %v7319_v3  ;;  %4648 = vmatprep.subr.bf16.mxu0 %v7326_v5  ;;  %v1345_v3 = vld [vmem:[#allocation6 + $0x538] sm:$0xff]  ;;  %v7367_v5 = vcombine.low %v1333_v62, %v1337_v49  ;;  %v1384_v62 = vld [vmem:[#allocation6 + $0x670] sm:$0xff] }
 0x37f   : > { %4812 = vmatprep.subr.bf16.mxu1 %v7328_v6  ;;  %v7374_v6 = vcombine.high %v1340_v63, %v1344_v1  ;;  %v7376_v8 = vcombine.high %v1341_v2, %v1345_v3  ;;  %v1381_v49 = vld [vmem:[#allocation6 + $0x658] sm:$0xff] }
 0x381   : > { %4649 = vmatpush1.bf16.msra.mxu0 %v7325_v51  ;;  %v1353_v51 = vld [vmem:[#allocation6 + $0x578] sm:$0xff] }
 0x382   : > { %4813 = vmatpush1.bf16.msra.mxu1 %v7327_v12  ;;  %4650 = vmatprep.subr.bf16.mxu0 %v7334_v13  ;;  %v7373_v12 = vcombine.low %v1340_v63, %v1344_v1  ;;  %v7375_v13 = vcombine.low %v1341_v2, %v1345_v3  ;;  %v7384_v15 = vcombine.high %v1349_v11, %v1353_v51  ;;  %v1388_v1 = vld [vmem:[#allocation6 + $0x690] sm:$0xff]  ;;  %v1389_v3 = vld [vmem:[#allocation6 + $0x698] sm:$0xff] }
 0x383   : > { %4814 = vmatprep.subr.bf16.mxu1 %v7336_v14  ;;  %v7382_v14 = vcombine.high %v1348_v9, %v1352_v10  ;;  %v1392_v2 = vld [vmem:[#allocation6 + $0x6b0] sm:$0xff] }
 0x385   : > { %4651 = vmatpush1.bf16.msra.mxu0 %v7333_v19  ;;  %v1361_v19 = vld [vmem:[#allocation6 + $0x5b8] sm:$0xff] }
 0x386   : > { %4815 = vmatpush1.bf16.msra.mxu1 %v7335_v21  ;;  %4661 = vmatprep.subr.bf16.mxu0 %v7342_v22  ;;  %v7381_v21 = vcombine.low %v1348_v9, %v1352_v10  ;;  %v7383_v22 = vcombine.low %v1349_v11, %v1353_v51  ;;  %v7392_v25 = vcombine.high %v1357_v18, %v1361_v19  ;;  %v1396_v10 = vld [vmem:[#allocation6 + $0x6d0] sm:$0xff]  ;;  %v1397_v51 = vld [vmem:[#allocation6 + $0x6d8] sm:$0xff] }
 0x387   : > { %4825 = vmatprep.subr.bf16.mxu1 %v7344_v23  ;;  %v7390_v23 = vcombine.high %v1356_v16, %v1360_v17  ;;  %v1400_v11 = vld [vmem:[#allocation6 + $0x6f0] sm:$0xff] }
 0x388   : > { %4653 = vmatmul.mubr.bf16.vlgmr.msra.gmra.mrb[16].mxu0 %v9561_v53 }
 0x389   : > { %4817 = vmatmul.mubr.bf16.vlgmr.msra.gmra.mrb[16].mxu1 %v9561_v53  ;;  %4662 = vmatpush1.bf16.msra.mxu0 %v7341_v32  ;;  %v7359_v53 = vcombine.low %v1325_v37, %v1329_v39  ;;  %v1368_v32 = vld [vmem:[#allocation6 + $0x5f0] sm:$0xff]  ;;  %v1373_v39 = vld [vmem:[#allocation6 + $0x618] sm:$0xff] }
 0x38a   : > { %4693 = vmatprep.mubr.bf16.mxu0 %v9565_v60  ;;  %4826 = vmatpush1.bf16.msra.mxu1 %v7343_v34  ;;  %v7389_v34 = vcombine.low %v1356_v16, %v1360_v17  ;;  %v7398_v35 = vcombine.high %v1364_v31, %v1368_v32  ;;  %v1376_v37 = vld [vmem:[#allocation6 + $0x630] sm:$0xff] }
 0x38b   : > { %4857 = vmatprep.mubr.bf16.mxu1 %v9565_v60  ;;  %4663 = vmatprep.subr.bf16.mxu0 %v7350_v61  ;;  %v7365_v60 = vcombine.low %v1332_v45, %v1336_v48  ;;  %v7391_v61 = vcombine.low %v1357_v18, %v1361_v19  ;;  %v1380_v48 = vld [vmem:[#allocation6 + $0x650] sm:$0xff]  ;;  %v1405_v19 = vld [vmem:[#allocation6 + $0x718] sm:$0xff] }
 0x38c   : > { %4827 = vmatprep.subr.bf16.mxu1 %v7352_v20  ;;  %v1372_v20 = vld [vmem:[#allocation6 + $0x610] sm:$0xff] }
 0x38d   : > { %4664 = vmatpush1.bf16.msra.mxu0 %v7349_v40  ;;  %v1377_v40 = vld [vmem:[#allocation6 + $0x638] sm:$0xff]  ;;  %v1404_v17 = vld [vmem:[#allocation6 + $0x710] sm:$0xff] }
 0x38e   : > { %4828 = vmatpush1.bf16.msra.mxu1 %v7351_v43  ;;  %4665 = vmatprep.subr.bf16.mxu0 %v7358_v24  ;;  %v7397_v43 = vcombine.low %v1364_v31, %v1368_v32  ;;  %v7399_v24 = vcombine.low %v1365_v33, %v1369_v28  ;;  %v7408_v45 = vcombine.high %v1373_v39, %v1377_v40  ;;  %v1408_v18 = vld [vmem:[#allocation6 + $0x730] sm:$0xff]  ;;  %v1413_v28 = vld [vmem:[#allocation6 + $0x758] sm:$0xff] }
 0x38f   : > { %4829 = vmatprep.subr.bf16.mxu1 %v7360_v44  ;;  %v7406_v44 = vcombine.high %v1372_v20, %v1376_v37  ;;  %v1412_v32 = vld [vmem:[#allocation6 + $0x750] sm:$0xff] }
 0x390   : > { %v1416_v33 = vld [vmem:[#allocation6 + $0x770] sm:$0xff] }
 0x391   : > { %4666 = vmatpush1.bf16.msra.mxu0 %v7357_v50  ;;  %v1385_v50 = vld [vmem:[#allocation6 + $0x678] sm:$0xff] }
 0x392   : > { %4830 = vmatpush1.bf16.msra.mxu1 %v7359_v53  ;;  %4667 = vmatprep.subr.bf16.mxu0 %v7366_v56  ;;  %v7405_v53 = vcombine.low %v1372_v20, %v1376_v37  ;;  %v7407_v56 = vcombine.low %v1373_v39, %v1377_v40  ;;  %v7416_v63 = vcombine.high %v1381_v49, %v1385_v50  ;;  %v1420_v37 = vld [vmem:[#allocation6 + $0x790] sm:$0xff]  ;;  %v1421_v40 = vld [vmem:[#allocation6 + $0x798] sm:$0xff] }
 0x393   : > { %4831 = vmatprep.subr.bf16.mxu1 %v7368_v59  ;;  %v7414_v59 = vcombine.high %v1380_v48, %v1384_v62  ;;  %v1424_v39 = vld [vmem:[#allocation6 + $0x7b0] sm:$0xff] }
 0x395   : > { %4668 = vmatpush1.bf16.msra.mxu0 %v7365_v60  ;;  %v1393_v60 = vld [vmem:[#allocation6 + $0x6b8] sm:$0xff] }
 0x396   : > { %4832 = vmatpush1.bf16.msra.mxu1 %v7367_v5  ;;  %4669 = vmatprep.subr.bf16.mxu0 %v7374_v6  ;;  %v7413_v5 = vcombine.low %v1380_v48, %v1384_v62  ;;  %v7415_v6 = vcombine.low %v1381_v49, %v1385_v50  ;;  %v7424_v9 = vcombine.high %v1389_v3, %v1393_v60  ;;  %v1428_v62 = vld [vmem:[#allocation6 + $0x7d0] sm:$0xff]  ;;  %v1429_v50 = vld [vmem:[#allocation6 + $0x7d8] sm:$0xff] }
 0x397   : > { %4833 = vmatprep.subr.bf16.mxu1 %v7376_v8  ;;  %v7422_v8 = vcombine.high %v1388_v1, %v1392_v2  ;;  %v1432_v49 = vld [vmem:[#allocation6 + $0x7f0] sm:$0xff] }
 0x399   : > { %4670 = vmatpush1.bf16.msra.mxu0 %v7373_v12  ;;  %v1401_v12 = vld [vmem:[#allocation6 + $0x6f8] sm:$0xff] }
 0x39a   : > { %4834 = vmatpush1.bf16.msra.mxu1 %v7375_v13  ;;  %4671 = vmatprep.subr.bf16.mxu0 %v7382_v14  ;;  %v7421_v13 = vcombine.low %v1388_v1, %v1392_v2  ;;  %v7423_v14 = vcombine.low %v1389_v3, %v1393_v60  ;;  %v7432_v16 = vcombine.high %v1397_v51, %v1401_v12  ;;  %v1436_v2 = vld [vmem:[#allocation6 + $0x810] sm:$0xff]  ;;  %v1437_v60 = vld [vmem:[#allocation6 + $0x818] sm:$0xff] }
 0x39b   : > { %4835 = vmatprep.subr.bf16.mxu1 %v7384_v15  ;;  %v7430_v15 = vcombine.high %v1396_v10, %v1400_v11  ;;  %v1440_v3 = vld [vmem:[#allocation6 + $0x830] sm:$0xff] }
 0x39d   : > { %4672 = vmatpush1.bf16.msra.mxu0 %v7381_v21  ;;  %v1409_v21 = vld [vmem:[#allocation6 + $0x738] sm:$0xff] }
 0x39e   : > { %4836 = vmatpush1.bf16.msra.mxu1 %v7383_v22  ;;  %4673 = vmatprep.subr.bf16.mxu0 %v7390_v23  ;;  %v7429_v22 = vcombine.low %v1396_v10, %v1400_v11  ;;  %v7431_v23 = vcombine.low %v1397_v51, %v1401_v12  ;;  %v7440_v31 = vcombine.high %v1405_v19, %v1409_v21  ;;  %v1444_v11 = vld [vmem:[#allocation6 + $0x850] sm:$0xff] }
 0x39f   : > { %4837 = vmatprep.subr.bf16.mxu1 %v7392_v25  ;;  %v7438_v25 = vcombine.high %v1404_v17, %v1408_v18  ;;  %v1448_v51 = vld [vmem:[#allocation6 + $0x870] sm:$0xff]  ;;  %v7469_v12 = vcombine.low %v1436_v2, %v1440_v3 }
 0x3a1   : > { %4674 = vmatpush1.bf16.msra.mxu0 %v7389_v34  ;;  %v1417_v34 = vld [vmem:[#allocation6 + $0x778] sm:$0xff] }
 0x3a2   : > { %4838 = vmatpush1.bf16.msra.mxu1 %v7391_v61  ;;  %4675 = vmatprep.subr.bf16.mxu0 %v7398_v35  ;;  %v7437_v61 = vcombine.low %v1404_v17, %v1408_v18  ;;  %v7439_v35 = vcombine.low %v1405_v19, %v1409_v21  ;;  %v7448_v20 = vcombine.high %v1413_v28, %v1417_v34  ;;  %v1452_v17 = vld [vmem:[#allocation6 + $0x890] sm:$0xff]  ;;  %v1453_v21 = vld [vmem:[#allocation6 + $0x898] sm:$0xff] }
 0x3a3   : > { %4839 = vmatprep.subr.bf16.mxu1 %v7400_v36  ;;  %v7446_v36 = vcombine.high %v1412_v32, %v1416_v33  ;;  %v1456_v18 = vld [vmem:[#allocation6 + $0x8b0] sm:$0xff] }
 0x3a5   : > { %4676 = vmatpush1.bf16.msra.mxu0 %v7397_v43  ;;  %v1425_v43 = vld [vmem:[#allocation6 + $0x7b8] sm:$0xff] }
 0x3a6   : > { %4840 = vmatpush1.bf16.msra.mxu1 %v7399_v24  ;;  %4677 = vmatprep.subr.bf16.mxu0 %v7406_v44  ;;  %v7445_v24 = vcombine.low %v1412_v32, %v1416_v33  ;;  %v7447_v44 = vcombine.low %v1413_v28, %v1417_v34  ;;  %v7456_v48 = vcombine.high %v1421_v40, %v1425_v43  ;;  %v1460_v33 = vld [vmem:[#allocation6 + $0x8d0] sm:$0xff]  ;;  %v1461_v34 = vld [vmem:[#allocation6 + $0x8d8] sm:$0xff] }
 0x3a7   : > { %4841 = vmatprep.subr.bf16.mxu1 %v7408_v45  ;;  %v7454_v45 = vcombine.high %v1420_v37, %v1424_v39  ;;  %v1464_v28 = vld [vmem:[#allocation6 + $0x8f0] sm:$0xff] }
 0x3a9   : > { %4678 = vmatpush1.bf16.msra.mxu0 %v7405_v53  ;;  %v1433_v53 = vld [vmem:[#allocation6 + $0x7f8] sm:$0xff] }
 0x3aa   : > { %4842 = vmatpush1.bf16.msra.mxu1 %v7407_v56  ;;  %4679 = vmatprep.subr.bf16.mxu0 %v7414_v59  ;;  %v7453_v56 = vcombine.low %v1420_v37, %v1424_v39  ;;  %v7455_v59 = vcombine.low %v1421_v40, %v1425_v43  ;;  %v7464_v1 = vcombine.high %v1429_v50, %v1433_v53  ;;  %v1468_v37 = vld [vmem:[#allocation6 + $0x910] sm:$0xff]  ;;  %v1469_v40 = vld [vmem:[#allocation6 + $0x918] sm:$0xff] }
 0x3ab   : > { %4843 = vmatprep.subr.bf16.mxu1 %v7416_v63  ;;  %v7462_v63 = vcombine.high %v1428_v62, %v1432_v49  ;;  %v1472_v39 = vld [vmem:[#allocation6 + $0x930] sm:$0xff]  ;;  %v1473_v43 = vld [vmem:[#allocation6 + $0x938] sm:$0xff] }
 0x3ad   : > { %4680 = vmatpush1.bf16.msra.mxu0 %v7413_v5  ;;  %v1441_v5 = vld [vmem:[#allocation6 + $0x838] sm:$0xff] }
 0x3ae   : > { %4844 = vmatpush1.bf16.msra.mxu1 %v7415_v6  ;;  %4681 = vmatprep.subr.bf16.mxu0 %v7422_v8  ;;  %v7461_v6 = vcombine.low %v1428_v62, %v1432_v49  ;;  %v7463_v8 = vcombine.low %v1429_v50, %v1433_v53  ;;  %v7472_v10 = vcombine.high %v1437_v60, %v1441_v5  ;;  %v1480_v62 = vld [vmem:[#allocation6 + $0x970] sm:$0xff]  ;;  %v1477_v49 = vld [vmem:[#allocation6 + $0x958] sm:$0xff] }
 0x3af   : > { %4845 = vmatprep.subr.bf16.mxu1 %v7424_v9  ;;  %v7470_v9 = vcombine.high %v1436_v2, %v1440_v3  ;;  %v1481_v50 = vld [vmem:[#allocation6 + $0x978] sm:$0xff]  ;;  %v7501_v53 = vcombine.low %v1468_v37, %v1472_v39  ;;  %v1488_v2 = vld [vmem:[#allocation6 + $0x9b0] sm:$0xff] }
 0x3b0   : > { %v1485_v3 = vld [vmem:[#allocation6 + $0x998] sm:$0xff] }
 0x3b1   : > { %4682 = vmatpush1.bf16.msra.mxu0 %v7421_v13  ;;  %v1445_v13 = vld [vmem:[#allocation6 + $0x858] sm:$0xff] }
 0x3b2   : > { %4846 = vmatpush1.bf16.msra.mxu1 %v7423_v14  ;;  %4683 = vmatprep.subr.bf16.mxu0 %v7430_v15  ;;  %v1449_v14 = vld [vmem:[#allocation6 + $0x878] sm:$0xff]  ;;  %v7471_v15 = vcombine.low %v1437_v60, %v1441_v5 }
 0x3b3   : > { %4847 = vmatprep.subr.bf16.mxu1 %v7432_v16  ;;  %v7478_v16 = vcombine.high %v1444_v11, %v1448_v51  ;;  %v7480_v19 = vcombine.high %v1445_v13, %v1449_v14  ;;  %v1489_v60 = vld [vmem:[#allocation6 + $0x9b8] sm:$0xff] }
 0x3b5   : > { %4684 = vmatpush1.bf16.msra.mxu0 %v7429_v22  ;;  %v1457_v22 = vld [vmem:[#allocation6 + $0x8b8] sm:$0xff] }
 0x3b6   : > { %4848 = vmatpush1.bf16.msra.mxu1 %v7431_v23  ;;  %4685 = vmatprep.subr.bf16.mxu0 %v7438_v25  ;;  %v7477_v23 = vcombine.low %v1444_v11, %v1448_v51  ;;  %v7479_v25 = vcombine.low %v1445_v13, %v1449_v14  ;;  %v7488_v32 = vcombine.high %v1453_v21, %v1457_v22  ;;  %v1496_v11 = vld [vmem:[#allocation6 + $0x9f0] sm:$0xff]  ;;  %v1493_v51 = vld [vmem:[#allocation6 + $0x9d8] sm:$0xff] }
 0x3b7   : > { %4849 = vmatprep.subr.bf16.mxu1 %v7440_v31  ;;  %v7486_v31 = vcombine.high %v1452_v17, %v1456_v18  ;;  %v7519_v14 = vcombine.low %v1485_v3, %v1489_v60 }
 0x3b9   : > { %4686 = vmatpush1.bf16.msra.mxu0 %v7437_v61  ;;  %v1465_v61 = vld [vmem:[#allocation6 + $0x8f8] sm:$0xff] }
 0x3ba   : > { %4850 = vmatpush1.bf16.msra.mxu1 %v7439_v35  ;;  %4687 = vmatprep.subr.bf16.mxu0 %v7446_v36  ;;  %v7485_v35 = vcombine.low %v1452_v17, %v1456_v18  ;;  %v7494_v36 = vcombine.high %v1460_v33, %v1464_v28  ;;  %v1500_v17 = vld [vmem:[#allocation6 + $0xa10] sm:$0xff] }
 0x3bb   : > { %4851 = vmatprep.subr.bf16.mxu1 %v7448_v20  ;;  %v7496_v20 = vcombine.high %v1461_v34, %v1465_v61  ;;  %v1504_v18 = vld [vmem:[#allocation6 + $0xa30] sm:$0xff] }
 0x3bd   : > { %4688 = vmatpush1.bf16.msra.mxu0 %v7445_v24  ;;  %v7495_v24 = vcombine.low %v1461_v34, %v1465_v61  ;;  %v1513_v34 = vld [vmem:[#allocation6 + $0xa78] sm:$0xff]  ;;  %v7533_v61 = vcombine.low %v1500_v17, %v1504_v18 }
 0x3be   : > { %4852 = vmatpush1.bf16.msra.mxu1 %v7447_v44  ;;  %4689 = vmatprep.subr.bf16.mxu0 %v7454_v45  ;;  %v7502_v44 = vcombine.high %v1468_v37, %v1472_v39  ;;  %v7504_v45 = vcombine.high %v1469_v40, %v1473_v43  ;;  %v1520_v37 = vld [vmem:[#allocation6 + $0xab0] sm:$0xff]  ;;  %v1517_v39 = vld [vmem:[#allocation6 + $0xa98] sm:$0xff] }
 0x3bf   : > { %4853 = vmatprep.subr.bf16.mxu1 %v7456_v48  ;;  %v1476_v48 = vld [vmem:[#allocation6 + $0x950] sm:$0xff] }
 0x3c0   : > { %v7509_v5 = vcombine.low %v1476_v48, %v1480_v62 }
 0x3c1   : > { %4690 = vmatpush1.bf16.msra.mxu0 %v7453_v56  ;;  %v7503_v56 = vcombine.low %v1469_v40, %v1473_v43  ;;  %v1521_v40 = vld [vmem:[#allocation6 + $0xab8] sm:$0xff] }
 0x3c2   : > { %4854 = vmatpush1.bf16.msra.mxu1 %v7455_v59  ;;  %4691 = vmatprep.subr.bf16.mxu0 %v7462_v63  ;;  %v7510_v59 = vcombine.high %v1476_v48, %v1480_v62  ;;  %v7512_v63 = vcombine.high %v1477_v49, %v1481_v50  ;;  %v1528_v48 = vld [vmem:[#allocation6 + $0xaf0] sm:$0xff]  ;;  %v1525_v62 = vld [vmem:[#allocation6 + $0xad8] sm:$0xff] }
 0x3c3   : > { %4855 = vmatprep.subr.bf16.mxu1 %v7464_v1  ;;  %v1484_v1 = vld [vmem:[#allocation6 + $0x990] sm:$0xff] }
 0x3c4   : > { %v7517_v13 = vcombine.low %v1484_v1, %v1488_v2 }
 0x3c5   : > { %4692 = vmatpush1.bf16.msra.mxu0 %v7461_v6  ;;  %v7511_v6 = vcombine.low %v1477_v49, %v1481_v50  ;;  %v1529_v49 = vld [vmem:[#allocation6 + $0xaf8] sm:$0xff] }
 0x3c6   : > { %4856 = vmatpush1.bf16.msra.mxu1 %v7463_v8  ;;  %4702 = vmatprep.subr.bf16.mxu0 %v7470_v9  ;;  %v7518_v8 = vcombine.high %v1484_v1, %v1488_v2  ;;  %v7520_v9 = vcombine.high %v1485_v3, %v1489_v60  ;;  %v1536_v1 = vld [vmem:[#allocation6 + $0xb30] sm:$0xff]  ;;  %v1533_v2 = vld [vmem:[#allocation6 + $0xb18] sm:$0xff] }
 0x3c7   : > { %4866 = vmatprep.subr.bf16.mxu1 %v7472_v10  ;;  %v1492_v10 = vld [vmem:[#allocation6 + $0x9d0] sm:$0xff]  ;;  %v1537_v3 = vld [vmem:[#allocation6 + $0xb38] sm:$0xff] }
 0x3c8   : > { %4694 = vmatmul.mubr.bf16.vlgmr.msra.gmra.mrb[16].mxu0 %v9595_v46 }
 0x3c9   : > { %4858 = vmatmul.mubr.bf16.vlgmr.msra.gmra.mrb[16].mxu1 %v9595_v46  ;;  %4703 = vmatpush1.bf16.msra.mxu0 %v7469_v12  ;;  %v7487_v46 = vcombine.low %v1453_v21, %v1457_v22  ;;  %v1497_v12 = vld [vmem:[#allocation6 + $0x9f8] sm:$0xff]  ;;  %v7525_v22 = vcombine.low %v1492_v10, %v1496_v11 }
 0x3ca   : > { %4734 = vmatprep.mubr.bf16.mxu0 %v9597_v57  ;;  %4867 = vmatpush1.bf16.msra.mxu1 %v7471_v15  ;;  %v7526_v15 = vcombine.high %v1492_v10, %v1496_v11  ;;  %v1505_v21 = vld [vmem:[#allocation6 + $0xa38] sm:$0xff]  ;;  %v1544_v10 = vld [vmem:[#allocation6 + $0xb70] sm:$0xff] }
 0x3cb   : > { %4898 = vmatprep.mubr.bf16.mxu1 %v9597_v57  ;;  %4704 = vmatprep.subr.bf16.mxu0 %v7478_v16  ;;  %v7493_v57 = vcombine.low %v1460_v33, %v1464_v28  ;;  %v7528_v16 = vcombine.high %v1493_v51, %v1497_v12  ;;  %v1512_v33 = vld [vmem:[#allocation6 + $0xa70] sm:$0xff]  ;;  %v1509_v28 = vld [vmem:[#allocation6 + $0xa58] sm:$0xff] }
 0x3cc   : > { %4868 = vmatprep.subr.bf16.mxu1 %v7480_v19  ;;  %v1501_v19 = vld [vmem:[#allocation6 + $0xa18] sm:$0xff] }
 0x3cd   : > { %4705 = vmatpush1.bf16.msra.mxu0 %v7477_v23  ;;  %v7527_v23 = vcombine.low %v1493_v51, %v1497_v12  ;;  %v1541_v11 = vld [vmem:[#allocation6 + $0xb58] sm:$0xff] }
 0x3ce   : > { %4869 = vmatpush1.bf16.msra.mxu1 %v7479_v25  ;;  %4706 = vmatprep.subr.bf16.mxu0 %v7486_v31  ;;  %v7534_v25 = vcombine.high %v1500_v17, %v1504_v18  ;;  %v7536_v31 = vcombine.high %v1501_v19, %v1505_v21  ;;  %v1545_v51 = vld [vmem:[#allocation6 + $0xb78] sm:$0xff]  ;;  %v1552_v17 = vld [vmem:[#allocation6 + $0xbb0] sm:$0xff] }
 0x3cf   : > { %4870 = vmatprep.subr.bf16.mxu1 %v7488_v32  ;;  %v1508_v32 = vld [vmem:[#allocation6 + $0xa50] sm:$0xff]  ;;  %v1549_v18 = vld [vmem:[#allocation6 + $0xb98] sm:$0xff] }
 0x3d0   : > { %v7541_v43 = vcombine.low %v1508_v32, %v1512_v33 }
 0x3d1   : > { %4707 = vmatpush1.bf16.msra.mxu0 %v7485_v35  ;;  %v7535_v35 = vcombine.low %v1501_v19, %v1505_v21  ;;  %v1553_v19 = vld [vmem:[#allocation6 + $0xbb8] sm:$0xff] }
 0x3d2   : > { %4871 = vmatpush1.bf16.msra.mxu1 %v7487_v46  ;;  %4708 = vmatprep.subr.bf16.mxu0 %v7494_v36  ;;  %v7542_v46 = vcombine.high %v1508_v32, %v1512_v33  ;;  %v7544_v36 = vcombine.high %v1509_v28, %v1513_v34  ;;  %v1560_v32 = vld [vmem:[#allocation6 + $0xbf0] sm:$0xff]  ;;  %v1557_v33 = vld [vmem:[#allocation6 + $0xbd8] sm:$0xff] }
 0x3d3   : > { %4872 = vmatprep.subr.bf16.mxu1 %v7496_v20  ;;  %v1516_v20 = vld [vmem:[#allocation6 + $0xa90] sm:$0xff] }
 0x3d4   : > { %v7549_v50 = vcombine.low %v1516_v20, %v1520_v37 }
 0x3d5   : > { %4709 = vmatpush1.bf16.msra.mxu0 %v7493_v57  ;;  %v7543_v57 = vcombine.low %v1509_v28, %v1513_v34  ;;  %v1561_v28 = vld [vmem:[#allocation6 + $0xbf8] sm:$0xff] }
 0x3d6   : > { %4873 = vmatpush1.bf16.msra.mxu1 %v7495_v24  ;;  %4710 = vmatprep.subr.bf16.mxu0 %v7502_v44  ;;  %v7550_v24 = vcombine.high %v1516_v20, %v1520_v37  ;;  %v7552_v44 = vcombine.high %v1517_v39, %v1521_v40  ;;  %v1568_v20 = vld [vmem:[#allocation6 + $0xc30] sm:$0xff]  ;;  %v1565_v37 = vld [vmem:[#allocation6 + $0xc18] sm:$0xff] }
 0x3d7   : > { %4874 = vmatprep.subr.bf16.mxu1 %v7504_v45  ;;  %v1524_v45 = vld [vmem:[#allocation6 + $0xad0] sm:$0xff] }
 0x3d8   : > { %v7557_v60 = vcombine.low %v1524_v45, %v1528_v48 }
 0x3d9   : > { %4711 = vmatpush1.bf16.msra.mxu0 %v7501_v53  ;;  %v7551_v53 = vcombine.low %v1517_v39, %v1521_v40  ;;  %v1569_v39 = vld [vmem:[#allocation6 + $0xc38] sm:$0xff] }
 0x3da   : > { %4875 = vmatpush1.bf16.msra.mxu1 %v7503_v56  ;;  %4712 = vmatprep.subr.bf16.mxu0 %v7510_v59  ;;  %v7558_v56 = vcombine.high %v1524_v45, %v1528_v48  ;;  %v7560_v59 = vcombine.high %v1525_v62, %v1529_v49  ;;  %v1576_v45 = vld [vmem:[#allocation6 + $0xc70] sm:$0xff] }
 0x3db   : > { %4876 = vmatprep.subr.bf16.mxu1 %v7512_v63  ;;  %v1532_v63 = vld [vmem:[#allocation6 + $0xb10] sm:$0xff] }
 0x3dc   : > { %v7565_v12 = vcombine.low %v1532_v63, %v1536_v1 }
 0x3dd   : > { %4713 = vmatpush1.bf16.msra.mxu0 %v7509_v5  ;;  %v7559_v5 = vcombine.low %v1525_v62, %v1529_v49  ;;  %v1573_v62 = vld [vmem:[#allocation6 + $0xc58] sm:$0xff] }
 0x3de   : > { %4877 = vmatpush1.bf16.msra.mxu1 %v7511_v6  ;;  %4714 = vmatprep.subr.bf16.mxu0 %v7518_v8  ;;  %v7566_v6 = vcombine.high %v1532_v63, %v1536_v1  ;;  %v7568_v8 = vcombine.high %v1533_v2, %v1537_v3  ;;  %v1577_v49 = vld [vmem:[#allocation6 + $0xc78] sm:$0xff] }
 0x3df   : > { %4878 = vmatprep.subr.bf16.mxu1 %v7520_v9  ;;  %v1540_v9 = vld [vmem:[#allocation6 + $0xb50] sm:$0xff]  ;;  %v7608_v63 = vcombine.high %v1573_v62, %v1577_v49  ;;  %v1581_v1 = vld [vmem:[#allocation6 + $0xc98] sm:$0xff] }
 0x3e0   : > { %v7573_v21 = vcombine.low %v1540_v9, %v1544_v10 }
 0x3e1   : > { %4715 = vmatpush1.bf16.msra.mxu0 %v7517_v13  ;;  %v7567_v13 = vcombine.low %v1533_v2, %v1537_v3  ;;  %v1585_v2 = vld [vmem:[#allocation6 + $0xcb8] sm:$0xff] }
 0x3e2   : > { %4879 = vmatpush1.bf16.msra.mxu1 %v7519_v14  ;;  %4716 = vmatprep.subr.bf16.mxu0 %v7526_v15  ;;  %v7574_v14 = vcombine.high %v1540_v9, %v1544_v10  ;;  %v7576_v15 = vcombine.high %v1541_v11, %v1545_v51  ;;  %v1592_v9 = vld [vmem:[#allocation6 + $0xcf0] sm:$0xff]  ;;  %v1589_v10 = vld [vmem:[#allocation6 + $0xcd8] sm:$0xff] }
 0x3e3   : > { %4880 = vmatprep.subr.bf16.mxu1 %v7528_v16  ;;  %v1548_v16 = vld [vmem:[#allocation6 + $0xb90] sm:$0xff] }
 0x3e4   : > { %v7581_v34 = vcombine.low %v1548_v16, %v1552_v17 }
 0x3e5   : > { %4717 = vmatpush1.bf16.msra.mxu0 %v7525_v22  ;;  %v7575_v22 = vcombine.low %v1541_v11, %v1545_v51  ;;  %v1593_v11 = vld [vmem:[#allocation6 + $0xcf8] sm:$0xff] }
 0x3e6   : > { %4881 = vmatpush1.bf16.msra.mxu1 %v7527_v23  ;;  %4718 = vmatprep.subr.bf16.mxu0 %v7534_v25  ;;  %v7582_v23 = vcombine.high %v1548_v16, %v1552_v17  ;;  %v7584_v25 = vcombine.high %v1549_v18, %v1553_v19  ;;  %v1597_v16 = vld [vmem:[#allocation6 + $0xd18] sm:$0xff] }
 0x3e7   : > { %4882 = vmatprep.subr.bf16.mxu1 %v7536_v31  ;;  %v1556_v31 = vld [vmem:[#allocation6 + $0xbd0] sm:$0xff]  ;;  %v1601_v17 = vld [vmem:[#allocation6 + $0xd38] sm:$0xff] }
 0x3e8   : > { %v7589_v40 = vcombine.low %v1556_v31, %v1560_v32 }
 0x3e9   : > { %4719 = vmatpush1.bf16.msra.mxu0 %v7533_v61  ;;  %v7583_v61 = vcombine.low %v1549_v18, %v1553_v19  ;;  %v7623_v18 = vcombine.low %v1589_v10, %v1593_v11 }
 0x3ea   : > { %4883 = vmatpush1.bf16.msra.mxu1 %v7535_v35  ;;  %4720 = vmatprep.subr.bf16.mxu0 %v7542_v46  ;;  %v7590_v35 = vcombine.high %v1556_v31, %v1560_v32  ;;  %v7592_v46 = vcombine.high %v1557_v33, %v1561_v28  ;;  %v1609_v31 = vld [vmem:[#allocation6 + $0xd78] sm:$0xff] }
 0x3eb   : > { %4884 = vmatprep.subr.bf16.mxu1 %v7544_v36  ;;  %v1564_v36 = vld [vmem:[#allocation6 + $0xc10] sm:$0xff] }
 0x3ec   : > { %v7597_v48 = vcombine.low %v1564_v36, %v1568_v20 }
 0x3ed   : > { %4721 = vmatpush1.bf16.msra.mxu0 %v7541_v43  ;;  %v7591_v43 = vcombine.low %v1557_v33, %v1561_v28  ;;  %v7631_v33 = vcombine.low %v1597_v16, %v1601_v17 }
 0x3ee   : > { %4885 = vmatpush1.bf16.msra.mxu1 %v7543_v57  ;;  %4722 = vmatprep.subr.bf16.mxu0 %v7550_v24  ;;  %v7598_v57 = vcombine.high %v1564_v36, %v1568_v20  ;;  %v7600_v24 = vcombine.high %v1565_v37, %v1569_v39  ;;  %v1617_v36 = vld [vmem:[#allocation6 + $0xdb8] sm:$0xff] }
 0x3ef   : > { %4886 = vmatprep.subr.bf16.mxu1 %v7552_v44  ;;  %v1572_v44 = vld [vmem:[#allocation6 + $0xc50] sm:$0xff] }
 0x3f0   : > { %v7605_v3 = vcombine.low %v1572_v44, %v1576_v45 }
 0x3f1   : > { %4723 = vmatpush1.bf16.msra.mxu0 %v7549_v50  ;;  %v7599_v50 = vcombine.low %v1565_v37, %v1569_v39 }
 0x3f2   : > { %4887 = vmatpush1.bf16.msra.mxu1 %v7551_v53  ;;  %4724 = vmatprep.subr.bf16.mxu0 %v7558_v56  ;;  %v7606_v53 = vcombine.high %v1572_v44, %v1576_v45  ;;  %v1580_v56 = vld [vmem:[#allocation6 + $0xc90] sm:$0xff] }
 0x3f3   : > { %4888 = vmatprep.subr.bf16.mxu1 %v7560_v59  ;;  %v1584_v59 = vld [vmem:[#allocation6 + $0xcb0] sm:$0xff] }
 0x3f4   : > { %v7613_v51 = vcombine.low %v1580_v56, %v1584_v59  ;;  %v1624_v44 = vld [vmem:[#allocation6 + $0xdf0] sm:$0xff] }
 0x3f5   : > { %4725 = vmatpush1.bf16.msra.mxu0 %v7557_v60  ;;  %v7607_v60 = vcombine.low %v1573_v62, %v1577_v49  ;;  %v1621_v62 = vld [vmem:[#allocation6 + $0xdd8] sm:$0xff] }
 0x3f6   : > { %4889 = vmatpush1.bf16.msra.mxu1 %v7559_v5  ;;  %4726 = vmatprep.subr.bf16.mxu0 %v7566_v6  ;;  %v7614_v5 = vcombine.high %v1580_v56, %v1584_v59  ;;  %v7616_v6 = vcombine.high %v1581_v1, %v1585_v2  ;;  %v1625_v49 = vld [vmem:[#allocation6 + $0xdf8] sm:$0xff] }
 0x3f7   : > { %4890 = vmatprep.subr.bf16.mxu1 %v7568_v8  ;;  %v1588_v8 = vld [vmem:[#allocation6 + $0xcd0] sm:$0xff] }
 0x3f9   : > { %4727 = vmatpush1.bf16.msra.mxu0 %v7565_v12  ;;  %v7622_v12 = vcombine.high %v1588_v8, %v1592_v9 }
 0x3fa   : > { %4891 = vmatpush1.bf16.msra.mxu1 %v7567_v13  ;;  %4728 = vmatprep.subr.bf16.mxu0 %v7574_v14  ;;  %v7624_v13 = vcombine.high %v1589_v10, %v1593_v11  ;;  %v1596_v14 = vld [vmem:[#allocation6 + $0xd10] sm:$0xff]  ;;  %v7655_v10 = vcombine.low %v1621_v62, %v1625_v49 }
 0x3fb   : > { %4892 = vmatprep.subr.bf16.mxu1 %v7576_v15  ;;  %v1600_v15 = vld [vmem:[#allocation6 + $0xd30] sm:$0xff] }
 0x3fc   : > { %v7630_v19 = vcombine.high %v1596_v14, %v1600_v15  ;;  %v7629_v32 = vcombine.low %v1596_v14, %v1600_v15  ;;  %v1641_v14 = vld [vmem:[#allocation6 + $0xe78] sm:$0xff] }
 0x3fd   : > { %4729 = vmatpush1.bf16.msra.mxu0 %v7573_v21  ;;  %v7632_v21 = vcombine.high %v1597_v16, %v1601_v17 }
 0x3fe   : > { %4893 = vmatpush1.bf16.msra.mxu1 %v7575_v22  ;;  %4730 = vmatprep.subr.bf16.mxu0 %v7582_v23  ;;  %v1604_v22 = vld [vmem:[#allocation6 + $0xd50] sm:$0xff] }
 0x3ff   : > { %4894 = vmatprep.subr.bf16.mxu1 %v7584_v25  ;;  %v1608_v23 = vld [vmem:[#allocation6 + $0xd70] sm:$0xff]  ;;  %v1605_v25 = vld [vmem:[#allocation6 + $0xd58] sm:$0xff] }
 0x400   : > { %v7638_v28 = vcombine.high %v1604_v22, %v1608_v23  ;;  %v7637_v20 = vcombine.low %v1604_v22, %v1608_v23  ;;  %v7639_v37 = vcombine.low %v1605_v25, %v1609_v31  ;;  %v1649_v22 = vld [vmem:[#allocation6 + $0xeb8] sm:$0xff] }
 0x401   : > { %4731 = vmatpush1.bf16.msra.mxu0 %v7581_v34  ;;  %v7640_v34 = vcombine.high %v1605_v25, %v1609_v31 }
 0x402   : > { %4895 = vmatpush1.bf16.msra.mxu1 %v7583_v61  ;;  %4732 = vmatprep.subr.bf16.mxu0 %v7590_v35  ;;  %v1612_v61 = vld [vmem:[#allocation6 + $0xd90] sm:$0xff] }
 0x403   : > { %4896 = vmatprep.subr.bf16.mxu1 %v7592_v46  ;;  %v1616_v35 = vld [vmem:[#allocation6 + $0xdb0] sm:$0xff]  ;;  %v1613_v46 = vld [vmem:[#allocation6 + $0xd98] sm:$0xff] }
 0x404   : > { %v7646_v39 = vcombine.high %v1612_v61, %v1616_v35  ;;  %v7645_v56 = vcombine.low %v1612_v61, %v1616_v35  ;;  %v1657_v61 = vld [vmem:[#allocation6 + $0xef8] sm:$0xff] }
 0x405   : > { %4733 = vmatpush1.bf16.msra.mxu0 %v7589_v40 }
 0x406   : > { %4897 = vmatpush1.bf16.msra.mxu1 %v7591_v43  ;;  %4743 = vmatprep.subr.bf16.mxu0 %v7598_v57  ;;  %v7648_v57 = vcombine.high %v1613_v46, %v1617_v36 }
 0x407   : > { %4907 = vmatprep.subr.bf16.mxu1 %v7600_v24  ;;  %v1620_v24 = vld [vmem:[#allocation6 + $0xdd0] sm:$0xff] }
 0x408   : > { %4735 = vmatmul.mubr.bf16.vlgmr.msra.gmra.mrb[16].mxu0 %v9614_v42 }
 0x409   : > { %4899 = vmatmul.mubr.bf16.vlgmr.msra.gmra.mrb[16].mxu1 %v9614_v42  ;;  %4744 = vmatpush1.bf16.msra.mxu0 %v7597_v48  ;;  %v7615_v42 = vcombine.low %v1581_v1, %v1585_v2  ;;  %v7647_v1 = vcombine.low %v1613_v46, %v1617_v36  ;;  %v7654_v2 = vcombine.high %v1620_v24, %v1624_v44 }
 0x40a   : > { %4775 = vmatprep.mubr.bf16.mxu0 %v9616_v54  ;;  %4908 = vmatpush1.bf16.msra.mxu1 %v7599_v50 }
 0x40b   : > { %4939 = vmatprep.mubr.bf16.mxu1 %v9616_v54  ;;  %4745 = vmatprep.subr.bf16.mxu0 %v7606_v53  ;;  %v7621_v54 = vcombine.low %v1588_v8, %v1592_v9  ;;  %v1633_v8 = vld [vmem:[#allocation6 + $0xe38] sm:$0xff]  ;;  %v7653_v9 = vcombine.low %v1620_v24, %v1624_v44 }
 0x40c   : > { %4909 = vmatprep.subr.bf16.mxu1 %v7608_v63  ;;  %v1665_v24 = vld [vmem:[#allocation6 + $0xf38] sm:$0xff] }
 0x40d   : > { %4746 = vmatpush1.bf16.msra.mxu0 %v7605_v3  ;;  %v7656_v3 = vcombine.high %v1621_v62, %v1625_v49 }
 0x40e   : > { %4910 = vmatpush1.bf16.msra.mxu1 %v7607_v60  ;;  %4747 = vmatprep.subr.bf16.mxu0 %v7614_v5  ;;  %v1628_v60 = vld [vmem:[#allocation6 + $0xe10] sm:$0xff] }
 0x40f   : > { %4911 = vmatprep.subr.bf16.mxu1 %v7616_v6  ;;  %v1632_v5 = vld [vmem:[#allocation6 + $0xe30] sm:$0xff]  ;;  %v1629_v6 = vld [vmem:[#allocation6 + $0xe18] sm:$0xff] }
 0x410   : > { %v7662_v11 = vcombine.high %v1628_v60, %v1632_v5  ;;  %v7661_v15 = vcombine.low %v1628_v60, %v1632_v5  ;;  %v7663_v16 = vcombine.low %v1629_v6, %v1633_v8  ;;  %v1676_v5 = vld [vmem:[#allocation6 + $0xf90] sm:$0xff] }
 0x411   : > { %4748 = vmatpush1.bf16.msra.mxu0 %v7613_v51  ;;  %v7664_v51 = vcombine.high %v1629_v6, %v1633_v8  ;;  %v1680_v6 = vld [vmem:[#allocation6 + $0xfb0] sm:$0xff]  ;;  %v1677_v8 = vld [vmem:[#allocation6 + $0xf98] sm:$0xff] }
 0x412   : > { %4912 = vmatpush1.bf16.msra.mxu1 %v7615_v42  ;;  %4749 = vmatprep.subr.bf16.mxu0 %v7622_v12  ;;  %v1636_v42 = vld [vmem:[#allocation6 + $0xe50] sm:$0xff] }
 0x413   : > { %4913 = vmatprep.subr.bf16.mxu1 %v7624_v13  ;;  %v1640_v12 = vld [vmem:[#allocation6 + $0xe70] sm:$0xff]  ;;  %v1637_v13 = vld [vmem:[#allocation6 + $0xe58] sm:$0xff] }
 0x414   : > { %v7670_v17 = vcombine.high %v1636_v42, %v1640_v12  ;;  %v7669_v23 = vcombine.low %v1636_v42, %v1640_v12  ;;  %v7671_v25 = vcombine.low %v1637_v13, %v1641_v14  ;;  %v7710_v42 = vcombine.high %v1676_v5, %v1680_v6 }
 0x415   : > { %4750 = vmatpush1.bf16.msra.mxu0 %v7621_v54  ;;  %v7672_v54 = vcombine.high %v1637_v13, %v1641_v14  ;;  %v1684_v13 = vld [vmem:[#allocation6 + $0xfd0] sm:$0xff] }
 0x416   : > { %4914 = vmatpush1.bf16.msra.mxu1 %v7623_v18  ;;  %4751 = vmatprep.subr.bf16.mxu0 %v7630_v19  ;;  %v1644_v18 = vld [vmem:[#allocation6 + $0xe90] sm:$0xff] }
 0x417   : > { %4915 = vmatprep.subr.bf16.mxu1 %v7632_v21  ;;  %v1648_v19 = vld [vmem:[#allocation6 + $0xeb0] sm:$0xff]  ;;  %v1645_v21 = vld [vmem:[#allocation6 + $0xe98] sm:$0xff] }
 0x418   : > { %v7678_v31 = vcombine.high %v1644_v18, %v1648_v19  ;;  %v7677_v35 = vcombine.low %v1644_v18, %v1648_v19  ;;  %v7679_v46 = vcombine.low %v1645_v21, %v1649_v22  ;;  %v1688_v14 = vld [vmem:[#allocation6 + $0xff0] sm:$0xff]  ;;  %v7709_v18 = vcombine.low %v1676_v5, %v1680_v6  ;;  %v8305_v6 = vld [vmem:[%s10093_s21 + $0xa8] sm:$0xff]  }
 0x419   : > { %4752 = vmatpush1.bf16.msra.mxu0 %v7629_v32  ;;  %v7680_v32 = vcombine.high %v1645_v21, %v1649_v22  ;;  %v7718_v21 = vcombine.high %v1684_v13, %v1688_v14 }
 0x41a   : > { %4916 = vmatpush1.bf16.msra.mxu1 %v7631_v33  ;;  %4753 = vmatprep.subr.bf16.mxu0 %v7638_v28  ;;  %v1652_v33 = vld [vmem:[#allocation6 + $0xed0] sm:$0xff] }
 0x41b   : > { %v9644_v40 = vpop.f32.mrb[12].mxu0  ;;  %v9646_v43 = vpop.f32.mrb[12].mxu1  ;;  %4917 = vmatprep.subr.bf16.mxu1 %v7640_v34  ;;  %v1656_v28 = vld [vmem:[#allocation6 + $0xef0] sm:$0xff]  ;;  %v1653_v34 = vld [vmem:[#allocation6 + $0xed8] sm:$0xff] }
 0x41c   : > { %v9648_v45 = vpop.f32.mrb[13].mxu0  ;;  %v9650_v48 = vpop.f32.mrb[13].mxu1  ;;  %v7686_v36 = vcombine.high %v1652_v33, %v1656_v28  ;;  %v7685_v44 = vcombine.low %v1652_v33, %v1656_v28  ;;  %v7687_v62 = vcombine.low %v1653_v34, %v1657_v61  ;;  %v8282_v33 = vld [vmem:[%s10093_s21 + $0x40] sm:$0xff]  }
 0x41d   : > { %v4453_v50 = vpop.f32.mrb[14].mxu0  ;;  %v4617_v53 = vpop.f32.mrb[14].mxu1  ;;  %4754 = vmatpush1.bf16.msra.mxu0 %v7637_v20  ;;  %v7688_v20 = vcombine.high %v1653_v34, %v1657_v61  ;;  %v8283_v28 = vld [vmem:[%s10093_s21 + $0xc0] sm:$0xff]  }
 0x41e   : > { %4918 = vmatpush1.bf16.msra.mxu1 %v7639_v37  ;;  %v4454_v59 = vpop.f32.mrb[15].mxu0  ;;  %v4618_v63 = vpop.f32.mrb[15].mxu1  ;;  %4755 = vmatprep.subr.bf16.mxu0 %v7646_v39  ;;  %v1660_v37 = vld [vmem:[#allocation6 + $0xf10] sm:$0xff] }
 0x41f   : > { %4919 = vmatprep.subr.bf16.mxu1 %v7648_v57  ;;  %v1664_v39 = vld [vmem:[#allocation6 + $0xf30] sm:$0xff]  ;;  %v1661_v57 = vld [vmem:[#allocation6 + $0xf18] sm:$0xff] }
 0x420   : > { %v7694_v49 = vcombine.high %v1660_v37, %v1664_v39  ;;  %v7696_v50 = vcombine.high %v1661_v57, %v1665_v24  ;;  %v1668_v53 = vld [vmem:[#allocation6 + $0xf50] sm:$0xff]  ;;  %v1669_v59 = vld [vmem:[#allocation6 + $0xf58] sm:$0xff] }
 0x421   : > { %4756 = vmatpush1.bf16.msra.mxu0 %v7645_v56  ;;  %v1672_v56 = vld [vmem:[#allocation6 + $0xf70] sm:$0xff]  ;;  %v1673_v63 = vld [vmem:[#allocation6 + $0xf78] sm:$0xff] }
 0x422   : > { %4920 = vmatpush1.bf16.msra.mxu1 %v7647_v1  ;;  %4757 = vmatprep.subr.bf16.mxu0 %v7654_v2  ;;  %v7693_v1 = vcombine.low %v1660_v37, %v1664_v39  ;;  %v7695_v2 = vcombine.low %v1661_v57, %v1665_v24  ;;  %v7704_v60 = vcombine.high %v1669_v59, %v1673_v63  ;;  %v8288_v37 = vld [vmem:[%s10093_s21 + $0x8] sm:$0xff]   ;;  %v8290_v57 = vld [vmem:[%s10093_s21 + $0x50] sm:$0xff]  }
 0x423   : > { %4921 = vmatprep.subr.bf16.mxu1 %v7656_v3  ;;  %v7702_v3 = vcombine.high %v1668_v53, %v1672_v56  ;;  %v8289_v39 = vld [vmem:[%s10093_s21 + $0x88] sm:$0xff]   ;;  %v8292_v24 = vld [vmem:[%s10093_s21 + $0x10] sm:$0xff]  }
 0x425   : > { %4758 = vmatpush1.bf16.msra.mxu0 %v7653_v9  ;;  %v1681_v9 = vld [vmem:[#allocation6 + $0xfb8] sm:$0xff] }
 0x426   : > { %4922 = vmatpush1.bf16.msra.mxu1 %v7655_v10  ;;  %4759 = vmatprep.subr.bf16.mxu0 %v7662_v11  ;;  %v9652_v10 = vld [vmem:[#allocation7] sm:$0xff]  ;;  %v7701_v11 = vcombine.low %v1668_v53, %v1672_v56  ;;  %v7712_v12 = vcombine.high %v1677_v8, %v1681_v9  ;;  %v7711_v19 = vcombine.low %v1677_v8, %v1681_v9  ;;  %v8297_v53 = vld [vmem:[%s10093_s21 + $0x98] sm:$0xff]   ;;  %v8298_v56 = vld [vmem:[%s10093_s21 + $0x60] sm:$0xff]  }
 0x427   : > { %4923 = vmatprep.subr.bf16.mxu1 %v7664_v51  ;;  %v7703_v51 = vcombine.low %v1669_v59, %v1673_v63  ;;  %v8299_v59 = vld [vmem:[%s10093_s21 + $0xe0] sm:$0xff]   ;;  %v1695_v5 = vrot.slane %v9652_v10, %v9541_v27  ;;  %v8306_v8 = vld [vmem:[%s10093_s21 + $0x70] sm:$0xff]   ;;  %v1703_v9 = vrot.slane %v9652_v10, %v9584_v58 }
 0x428   : > { %v8300_v63 = vld [vmem:[%s10093_s21 + $0x20] sm:$0xff]  }
 0x429   : > { %4760 = vmatpush1.bf16.msra.mxu0 %v7661_v15  ;;  %v1699_v15 = vrot.slane %v9652_v10, %v9546_v29 }
 0x42a   : > { %4924 = vmatpush1.bf16.msra.mxu1 %v7663_v16  ;;  %4761 = vmatprep.subr.bf16.mxu0 %v7670_v17  ;;  %v1685_v16 = vld [vmem:[#allocation6 + $0xfd8] sm:$0xff] }
 0x42b   : > { %4925 = vmatprep.subr.bf16.mxu1 %v7672_v54  ;;  %v1689_v17 = vld [vmem:[#allocation6 + $0xff8] sm:$0xff]  ;;  %v1707_v54 = vrot.slane %v9652_v10, %v9549_v30 }
 0x42c   : > { %v7720_v22 = vcombine.high %v1685_v16, %v1689_v17 }
 0x42d   : > { %4762 = vmatpush1.bf16.msra.mxu0 %v7669_v23  ;;  %v8033_v23 = vadd.f32 %v9648_v45, %v1699_v15  ;;  %v8284_v45 = vld [vmem:[%s10093_s21] sm:$0xff]   ;;  %v8311_v15 = vld [vmem:[%s10093_s21 + $0xf8] sm:$0xff]  }
 0x42e   : > { %4926 = vmatpush1.bf16.msra.mxu1 %v7671_v25  ;;  %4763 = vmatprep.subr.bf16.mxu0 %v7678_v31  ;;  %v8035_v25 = vadd.f32 %v9650_v48, %v1707_v54  ;;  %v7717_v31 = vcombine.low %v1684_v13, %v1688_v14  ;;  %v8285_v48 = vld [vmem:[%s10093_s21 + $0x80] sm:$0xff]   ;;  %v8310_v13 = vld [vmem:[%s10093_s21 + $0x78] sm:$0xff]   ;;  %v8034_v14 = vadd.f32 %v9646_v43, %v1703_v9 }
 0x42f   : > { %4927 = vmatprep.subr.bf16.mxu1 %v7680_v32  ;;  %v7719_v32 = vcombine.low %v1685_v16, %v1689_v17  ;;  %v4949_v34 = vmax.f32 %v8033_v23, 0.0  ;;  %v8313_v17 = vld [vmem:[%s10093_s21 + $0xb8] sm:$0xff]   ;;  %v8314_v43 = vld [vmem:[%s10093_s21 + $0x140] sm:$0xff]   ;;  %v8318_v23 = vld [vmem:[%s10093_s21 + $0x148] sm:$0xff]   ;;  %v1715_v9 = vrot.slane %v9652_v10, %v9587_v7 }
 0x430   : > { %v4951_v61 = vmax.f32 %v8035_v25, 0.0  ;;  %v4950_v54 = vmax.f32 %v8034_v14, 0.0 }
 0x431   : > { %4764 = vmatpush1.bf16.msra.mxu0 %v7677_v35  ;;  %v8286_v35 = vld [vmem:[%s10093_s21 + $0x48] sm:$0xff]  }
 0x432   : > { %4928 = vmatpush1.bf16.msra.mxu1 %v7679_v46  ;;  %4765 = vmatprep.subr.bf16.mxu0 %v7686_v36  ;;  %v4957_v46 = vpack.c.bf16 %v4949_v34, %v4949_v34  ;;  %v8287_v36 = vld [vmem:[%s10093_s21 + $0xc8] sm:$0xff]   ;;  %v4958_v25 = vpack.c.bf16 %v4950_v54, %v4950_v54  ;;  %v8324_v34 = vld [vmem:[%s10093_s21 + $0x1d0] sm:$0xff]  }
 0x433   : > { %4929 = vmatprep.subr.bf16.mxu1 %v7688_v20  ;;  %v4959_v20 = vpack.c.bf16 %v4951_v61, %v4951_v61  ;;  %v8323_v61 = vld [vmem:[%s10093_s21 + $0x110] sm:$0xff]  }
 0x435   : > { %4766 = vmatpush1.bf16.msra.mxu0 %v7685_v44  ;;  %v8293_v44 = vld [vmem:[%s10093_s21 + $0x90] sm:$0xff]  }
 0x436   : > { %4930 = vmatpush1.bf16.msra.mxu1 %v7687_v62  ;;  %4767 = vmatprep.subr.bf16.mxu0 %v7694_v49  ;;  %v8294_v62 = vld [vmem:[%s10093_s21 + $0x58] sm:$0xff]  }
 0x437   : > { %4931 = vmatprep.subr.bf16.mxu1 %v7696_v50  ;;  %v8295_v49 = vld [vmem:[%s10093_s21 + $0xd8] sm:$0xff]  }
 0x438   : > { %v8296_v50 = vld [vmem:[%s10093_s21 + $0x18] sm:$0xff]  }
 0x439   : > { %4768 = vmatpush1.bf16.msra.mxu0 %v7693_v1  ;;  %v8301_v1 = vld [vmem:[%s10093_s21 + $0xa0] sm:$0xff]  }
 0x43a   : > { %4932 = vmatpush1.bf16.msra.mxu1 %v7695_v2  ;;  %4769 = vmatprep.subr.bf16.mxu0 %v7702_v3  ;;  %v8302_v2 = vld [vmem:[%s10093_s21 + $0x68] sm:$0xff]  }
 0x43b   : > { %4933 = vmatprep.subr.bf16.mxu1 %v7704_v60  ;;  %v8303_v3 = vld [vmem:[%s10093_s21 + $0xe8] sm:$0xff]  }
 0x43c   : > { %v8304_v60 = vld [vmem:[%s10093_s21 + $0x28] sm:$0xff]  }
 0x43d   : > { %4770 = vmatpush1.bf16.msra.mxu0 %v7701_v11  ;;  %v8307_v11 = vld [vmem:[%s10093_s21 + $0xf0] sm:$0xff]  }
 0x43e   : > { %4934 = vmatpush1.bf16.msra.mxu1 %v7703_v51  ;;  %4771 = vmatprep.subr.bf16.mxu0 %v7710_v42  ;;  %v8308_v51 = vld [vmem:[%s10093_s21 + $0x30] sm:$0xff]   ;;  %v8032_v42 = vadd.f32 %v9644_v40, %v1695_v5  ;;  %v8312_v40 = vld [vmem:[%s10093_s21 + $0x38] sm:$0xff]  }
 0x43f   : > { %4935 = vmatprep.subr.bf16.mxu1 %v7712_v12  ;;  %v8309_v12 = vld [vmem:[%s10093_s21 + $0xb0] sm:$0xff]  }
 0x440   : > { %v4948_v16 = vmax.f32 %v8032_v42, 0.0 }
 0x441   : > { %4772 = vmatpush1.bf16.msra.mxu0 %v7709_v18  ;;  %v8316_v18 = vld [vmem:[%s10093_s21 + $0x1c0] sm:$0xff]  }
 0x442   : > { %4936 = vmatpush1.bf16.msra.mxu1 %v7711_v19  ;;  %4773 = vmatprep.subr.bf16.mxu0 %v7718_v21  ;;  %v8315_v19 = vld [vmem:[%s10093_s21 + $0x100] sm:$0xff]   ;;  %v4956_v21 = vpack.c.bf16 %v4948_v16, %v4948_v16 }
 0x443   : > { %4937 = vmatprep.subr.bf16.mxu1 %v7720_v22  ;;  %v8317_v22 = vld [vmem:[%s10093_s21 + $0x180] sm:$0xff]  }
 0x445   : > { %4774 = vmatpush1.bf16.msra.mxu0 %v7717_v31  ;;  %v8320_v31 = vld [vmem:[%s10093_s21 + $0x1c8] sm:$0xff]  }
 0x446   : > { %4938 = vmatpush1.bf16.msra.mxu1 %v7719_v32  ;;  %7920 = vmatprep.subr.bf16.mxu0 %v8282_v33  ;;  %v8319_v32 = vld [vmem:[%s10093_s21 + $0x108] sm:$0xff]  }
 0x447   : > { %7942 = vmatprep.subr.bf16.mxu1 %v8283_v28  ;;  %v8321_v33 = vld [vmem:[%s10093_s21 + $0x188] sm:$0xff]   ;;  %v8322_v28 = vld [vmem:[%s10093_s21 + $0x150] sm:$0xff]  }
 0x448   : > { %4776 = vmatmul.mubr.bf16.vlgmr.msra.gmra.mrb[16].mxu0 %v9626_v38 }
 0x449   : > { %4940 = vmatmul.mubr.bf16.vlgmr.msra.gmra.mrb[16].mxu1 %v9626_v38  ;;  %7921 = vmatpush3.bf16.msra.mxu0 %v8284_v45  ;;  %v8291_v38 = vld [vmem:[%s10093_s21 + $0xd0] sm:$0xff]  }
 0x44a   : > { %5515 = vmatprep.mubr.bf16.mxu0 %v4957_v46  ;;  %7943 = vmatpush3.bf16.msra.mxu1 %v8285_v48  ;;  %v8325_v45 = vld [vmem:[%s10093_s21 + $0x190] sm:$0xff]   ;;  %v8326_v48 = vld [vmem:[%s10093_s21 + $0x158] sm:$0xff]  }
 0x44b   : > { %5555 = vmatprep.mubr.bf16.mxu1 %v4959_v20  ;;  %7922 = vmatprep.subr.bf16.mxu0 %v8286_v35  ;;  %v8328_v35 = vld [vmem:[%s10093_s21 + $0x1d8] sm:$0xff]   ;;  %v8330_v20 = vld [vmem:[%s10093_s21 + $0x160] sm:$0xff]  }
 0x44c   : > { %7944 = vmatprep.subr.bf16.mxu1 %v8287_v36  ;;  %v8327_v46 = vld [vmem:[%s10093_s21 + $0x118] sm:$0xff]  }
 0x44d   : > { %7923 = vmatpush3.bf16.msra.mxu0 %v8288_v37  ;;  %v8329_v36 = vld [vmem:[%s10093_s21 + $0x198] sm:$0xff]   ;;  %v8332_v37 = vld [vmem:[%s10093_s21 + $0x1e0] sm:$0xff]  }
 0x44e   : > { %7945 = vmatpush3.bf16.msra.mxu1 %v8289_v39  ;;  %7924 = vmatprep.subr.bf16.mxu0 %v8290_v57  ;;  %v8331_v39 = vld [vmem:[%s10093_s21 + $0x120] sm:$0xff]  }
 0x44f   : > { %7946 = vmatprep.subr.bf16.mxu1 %v8291_v38  ;;  %v8333_v57 = vld [vmem:[%s10093_s21 + $0x1a0] sm:$0xff]   ;;  %v8334_v38 = vld [vmem:[%s10093_s21 + $0x168] sm:$0xff]  }
 0x451   : > { %7925 = vmatpush3.bf16.msra.mxu0 %v8292_v24  ;;  %v8336_v24 = vld [vmem:[%s10093_s21 + $0x1e8] sm:$0xff]  }
 0x452   : > { %7947 = vmatpush3.bf16.msra.mxu1 %v8293_v44  ;;  %7926 = vmatprep.subr.bf16.mxu0 %v8294_v62  ;;  %v8335_v44 = vld [vmem:[%s10093_s21 + $0x128] sm:$0xff]  }
 0x453   : > { %7948 = vmatprep.subr.bf16.mxu1 %v8295_v49  ;;  %v8337_v62 = vld [vmem:[%s10093_s21 + $0x1a8] sm:$0xff]   ;;  %v8338_v49 = vld [vmem:[%s10093_s21 + $0x170] sm:$0xff]  }
 0x455   : > { %7927 = vmatpush3.bf16.msra.mxu0 %v8296_v50  ;;  %v8339_v50 = vld [vmem:[%s10093_s21 + $0x130] sm:$0xff]  }
 0x456   : > { %7949 = vmatpush3.bf16.msra.mxu1 %v8297_v53  ;;  %7928 = vmatprep.subr.bf16.mxu0 %v8298_v56  ;;  %v8340_v53 = vld [vmem:[%s10093_s21 + $0x1f0] sm:$0xff]  }
 0x457   : > { %7950 = vmatprep.subr.bf16.mxu1 %v8299_v59  ;;  %v8341_v56 = vld [vmem:[%s10093_s21 + $0x1b0] sm:$0xff]   ;;  %v8342_v59 = vld [vmem:[%s10093_s21 + $0x178] sm:$0xff]  }
 0x459   : > { %7929 = vmatpush3.bf16.msra.mxu0 %v8300_v63  ;;  %v8343_v63 = vld [vmem:[%s10093_s21 + $0x138] sm:$0xff]  }
 0x45a   : > { %7951 = vmatpush3.bf16.msra.mxu1 %v8301_v1  ;;  %7930 = vmatprep.subr.bf16.mxu0 %v8302_v2  ;;  %v8344_v1 = vld [vmem:[%s10093_s21 + $0x1f8] sm:$0xff]  }
 0x45b   : > { %7952 = vmatprep.subr.bf16.mxu1 %v8303_v3  ;;  %v8345_v2 = vld [vmem:[%s10093_s21 + $0x1b8] sm:$0xff]  }
 0x45c   : > { %v8348_v3 = vld [vmem:[#allocation10 + $0x4] ss:$8 sps:$4 sm:$0xff]  }
 0x45d   : > { %7931 = vmatpush3.bf16.msra.mxu0 %v8304_v60  ;;  %v9860_v60 = vld [vmem:[#allocation4 + $0x8] sm:$0xf] }
 0x45e   : > { %7953 = vmatpush3.bf16.msra.mxu1 %v8305_v6  ;;  %7932 = vmatprep.subr.bf16.mxu0 %v8306_v8  ;;  %v829_v5 = vrot.slane %v9860_v60, %v9546_v29  ;;  %v1711_v6 = vrot.slane %v9652_v10, %v9604_v52  ;;  %v1719_v8 = vrot.slane %v9652_v10, %v816_v55 }
 0x45f   : > { %7954 = vmatprep.subr.bf16.mxu1 %v8307_v11  ;;  %v1723_v11 = vrot.slane %v9652_v10, %v820_v4  ;;  %v8346_v10 = vld [vmem:[#allocation10] ss:$8 sps:$4 sm:$0xff]  }
 0x460   : > { %v1115_v42 = vadd.f32 %v9581_v47, %v829_v5 }
 0x461   : > { %7933 = vmatpush3.bf16.msra.mxu0 %v8308_v51 }
 0x462   : > { %7955 = vmatpush3.bf16.msra.mxu1 %v8309_v12  ;;  %7934 = vmatprep.subr.bf16.mxu0 %v8310_v13  ;;  %v1169_v26 = vmax.f32 %v1115_v42, 0.0  ;;  %v8376_v42 = vld [vmem:[#allocation10 + $0xa0] ss:$8 sps:$4 sm:$0xff]  }
 0x463   : > { %7956 = vmatprep.subr.bf16.mxu1 %v8311_v15 }
 0x465   : > { %7935 = vmatpush3.bf16.msra.mxu0 %v8312_v40 }
 0x466   : > { %7957 = vmatpush3.bf16.msra.mxu1 %v8313_v17  ;;  %7964 = vmatprep.subr.bf16.mxu0 %v8314_v43 }
 0x467   : > { %7986 = vmatprep.subr.bf16.mxu1 %v8316_v18 }
 0x468   : > { %5516 = vmatmul.mubr.bf16.vlgmr.msra.gmra.mrb[20].mxu0 %v4956_v21 }
 0x469   : > { %5556 = vmatmul.mubr.bf16.vlgmr.msra.gmra.mrb[20].mxu1 %v4958_v25  ;;  %7965 = vmatpush3.bf16.msra.mxu0 %v8315_v19 }
 0x46a   : > { %7987 = vmatpush3.bf16.msra.mxu1 %v8317_v22  ;;  %7966 = vmatprep.subr.bf16.mxu0 %v8318_v23 }
 0x46b   : > { %7988 = vmatprep.subr.bf16.mxu1 %v8320_v31  ;;  %v8351_v31 = vld [vmem:[#allocation10 + $0x14] ss:$8 sps:$4 sm:$0xff]  }
 0x46d   : > { %7967 = vmatpush3.bf16.msra.mxu0 %v8319_v32 }
 0x46e   : > { %7989 = vmatpush3.bf16.msra.mxu1 %v8321_v33  ;;  %7968 = vmatprep.subr.bf16.mxu0 %v8322_v28  ;;  %v5644_v33 = vpack.c.bf16 %v1169_v26, %v1169_v26  ;;  %v8349_v28 = vld [vmem:[#allocation10 + $0x10] ss:$8 sps:$4 sm:$0xff]   ;;  %v8396_v26 = vld [vmem:[#allocation13 + $0x4] ss:$24 sps:$4 sm:$0xff]  }
 0x46f   : > { %7990 = vmatprep.subr.bf16.mxu1 %v8324_v34  ;;  %v8354_v34 = vld [vmem:[#allocation10 + $0x24] ss:$8 sps:$4 sm:$0xff]  }
 0x471   : > { %7969 = vmatpush3.bf16.msra.mxu0 %v8323_v61  ;;  %v8352_v61 = vld [vmem:[#allocation10 + $0x20] ss:$8 sps:$4 sm:$0xff]  }
 0x472   : > { %7991 = vmatpush3.bf16.msra.mxu1 %v8325_v45  ;;  %7970 = vmatprep.subr.bf16.mxu0 %v8326_v48  ;;  %v8357_v45 = vld [vmem:[#allocation10 + $0x34] ss:$8 sps:$4 sm:$0xff]   ;;  %v8355_v48 = vld [vmem:[#allocation10 + $0x30] ss:$8 sps:$4 sm:$0xff]  }
 0x473   : > { %7992 = vmatprep.subr.bf16.mxu1 %v8328_v35  ;;  %v8360_v35 = vld [vmem:[#allocation10 + $0x44] ss:$8 sps:$4 sm:$0xff]  }
 0x475   : > { %7971 = vmatpush3.bf16.msra.mxu0 %v8327_v46  ;;  %v8358_v46 = vld [vmem:[#allocation10 + $0x40] ss:$8 sps:$4 sm:$0xff]  }
 0x476   : > { %7993 = vmatpush3.bf16.msra.mxu1 %v8329_v36  ;;  %7972 = vmatprep.subr.bf16.mxu0 %v8330_v20  ;;  %v8363_v36 = vld [vmem:[#allocation10 + $0x54] ss:$8 sps:$4 sm:$0xff]   ;;  %v8361_v20 = vld [vmem:[#allocation10 + $0x50] ss:$8 sps:$4 sm:$0xff]  }
 0x477   : > { %7994 = vmatprep.subr.bf16.mxu1 %v8332_v37  ;;  %v8366_v37 = vld [vmem:[#allocation10 + $0x64] ss:$8 sps:$4 sm:$0xff]  }
 0x479   : > { %7973 = vmatpush3.bf16.msra.mxu0 %v8331_v39  ;;  %v8364_v39 = vld [vmem:[#allocation10 + $0x60] ss:$8 sps:$4 sm:$0xff]  }
 0x47a   : > { %7995 = vmatpush3.bf16.msra.mxu1 %v8333_v57  ;;  %7974 = vmatprep.subr.bf16.mxu0 %v8334_v38  ;;  %v8369_v57 = vld [vmem:[#allocation10 + $0x74] ss:$8 sps:$4 sm:$0xff]  }
 0x47b   : > { %7996 = vmatprep.subr.bf16.mxu1 %v8336_v24 }
 0x47d   : > { %7975 = vmatpush3.bf16.msra.mxu0 %v8335_v44  ;;  %v7721_v44 = vld [vmem:[#allocation9] ss:$0 sm:$0xff] }
 0x47e   : > { %7997 = vmatpush3.bf16.msra.mxu1 %v8337_v62  ;;  %7976 = vmatprep.subr.bf16.mxu0 %v8338_v49 }
 0x47f   : > { %7998 = vmatprep.subr.bf16.mxu1 %v8340_v53 }
 0x481   : > { %7977 = vmatpush3.bf16.msra.mxu0 %v8339_v50 }
 0x482   : > { %7999 = vmatpush3.bf16.msra.mxu1 %v8341_v56  ;;  %7978 = vmatprep.subr.bf16.mxu0 %v8342_v59  ;;  %v8367_v56 = vld [vmem:[#allocation10 + $0x70] ss:$8 sps:$4 sm:$0xff]  }
 0x483   : > { %8000 = vmatprep.subr.bf16.mxu1 %v8344_v1 }
 0x485   : > { %7979 = vmatpush3.bf16.msra.mxu0 %v8343_v63 }
 0x486   : > { %8001 = vmatpush3.bf16.msra.mxu1 %v8345_v2  ;;  %5849 = vmatprep.subr.bf16.mxu0 %v8348_v3  ;;  %v8372_v2 = vld [vmem:[#allocation10 + $0x84] ss:$8 sps:$4 sm:$0xff]  }
 0x487   : > { %6001 = vmatprep.subr.bf16.mxu1 %v8396_v26 }
 0x51b   : > { %v4777_v51 = vpop.f32.mrb[16].mxu0 }
 0x51c   : > { %v8036_v12 = vadd.f32 %v4777_v51, %v1711_v6  ;;  %v4941_v13 = vpop.f32.mrb[16].mxu1  ;;  %v4779_v14 = vpop.f32.mrb[17].mxu0  ;;  %v8378_v51 = vld [vmem:[#allocation10 + $0xa4] ss:$8 sps:$4 sm:$0xff]  }
 0x51d   : > { %v8038_v15 = vadd.f32 %v4941_v13, %v1719_v8  ;;  %v8037_v40 = vadd.f32 %v4779_v14, %v1715_v9  ;;  %v4943_v16 = vpop.f32.mrb[17].mxu1  ;;  %v4781_v17 = vpop.f32.mrb[18].mxu0  ;;  %v8370_v8 = vld [vmem:[#allocation10 + $0x80] ss:$8 sps:$4 sm:$0xff]   ;;  %v8375_v9 = vld [vmem:[#allocation10 + $0x94] ss:$8 sps:$4 sm:$0xff]  }
 0x51e   : > { %v4952_v43 = vmax.f32 %v8036_v12, 0.0  ;;  %v8039_v54 = vadd.f32 %v4943_v16, %v1723_v11  ;;  %v4945_v55 = vpop.f32.mrb[18].mxu1  ;;  %v4782_v18 = vpop.f32.mrb[19].mxu0  ;;  %v8373_v11 = vld [vmem:[#allocation10 + $0x90] ss:$8 sps:$4 sm:$0xff]   ;;  %v825_v17 = vrot.slane %v9860_v60, %v9541_v27 }
 0x51f   : > { %v4954_v19 = vmax.f32 %v8038_v15, 0.0  ;;  %v4953_v21 = vmax.f32 %v8037_v40, 0.0  ;;  %v4946_v22 = vpop.f32.mrb[19].mxu1  ;;  %v8381_v12 = vld [vmem:[#allocation10 + $0xb4] ss:$8 sps:$4 sm:$0xff]  }
 0x520   : > { %v4955_v23 = vmax.f32 %v8039_v54, 0.0  ;;  %v4960_v25 = vpack.c.bf16 %v4952_v43, %v4952_v43  ;;  %v8379_v13 = vld [vmem:[#allocation10 + $0xb0] ss:$8 sps:$4 sm:$0xff]   ;;  %v8384_v14 = vld [vmem:[#allocation10 + $0xc4] ss:$8 sps:$4 sm:$0xff]   ;;  %v1113_v55 = vadd.f32 %v9579_v41, %v825_v17 }
 0x521   : > { %v4961_v4 = vpack.c.bf16 %v4953_v21, %v4953_v21  ;;  %v4962_v32 = vpack.c.bf16 %v4954_v19, %v4954_v19  ;;  %v8382_v15 = vld [vmem:[#allocation10 + $0xc0] ss:$8 sps:$4 sm:$0xff]   ;;  %v8387_v40 = vld [vmem:[#allocation10 + $0xd4] ss:$8 sps:$4 sm:$0xff]   ;;  %v8385_v16 = vld [vmem:[#allocation10 + $0xd0] ss:$8 sps:$4 sm:$0xff]  }
 0x522   : > { %v4963_v47 = vpack.c.bf16 %v4955_v23, %v4955_v23  ;;  %v8390_v43 = vld [vmem:[#allocation10 + $0xe4] ss:$8 sps:$4 sm:$0xff]   ;;  %v8388_v54 = vld [vmem:[#allocation10 + $0xe0] ss:$8 sps:$4 sm:$0xff]   ;;  %v8393_v18 = vld [vmem:[#allocation10 + $0xf4] ss:$8 sps:$4 sm:$0xff]  }
 0x523   : > { %5595 = vmatprep.mubr.bf16.mxu0 %v4961_v4  ;;  %v8391_v19 = vld [vmem:[#allocation10 + $0xf0] ss:$8 sps:$4 sm:$0xff]   ;;  %v1168_v21 = vmax.f32 %v1113_v55, 0.0 }
 0x524   : > { %5635 = vmatprep.mubr.bf16.mxu1 %v4963_v47  ;;  %5596 = vmatmul.mubr.bf16.vlgmr.msra.gmra.mrb[24].mxu0 %v4960_v25  ;;  %v8394_v23 = vld [vmem:[#allocation13] ss:$24 sps:$4 sm:$0xff]   ;;  %v8397_v4 = vld [vmem:[#allocation13 + $0x30] ss:$24 sps:$4 sm:$0xff]   ;;  %v8402_v25 = vld [vmem:[#allocation13 + $0xc] ss:$24 sps:$4 sm:$0xff]  }
 0x525   : > { %5636 = vmatmul.mubr.bf16.vlgmr.msra.gmra.mrb[24].mxu1 %v4962_v32  ;;  %5850 = vmatpush1.bf16.msra.mxu0 %v8346_v10  ;;  %v5643_v22 = vpack.c.bf16 %v1168_v21, %v1168_v21  ;;  %v8399_v10 = vld [vmem:[#allocation13 + $0x34] ss:$24 sps:$4 sm:$0xff]  }
 0x526   : > { %5881 = vmatprep.mubr.bf16.mxu0 %v5644_v33  ;;  %5851 = vmatprep.subr.bf16.mxu0 %v8351_v31 }
 0x527   : > { %6033 = vmatprep.mubr.bf16.mxu1 %v9028_v0  ;;  %6002 = vmatpush1.bf16.msra.mxu1 %v8394_v23 }
 0x528   : > { %6003 = vmatprep.subr.bf16.mxu1 %v8399_v10 }
 0x529   : > { %5852 = vmatpush1.bf16.msra.mxu0 %v8349_v28 }
 0x52a   : > { %5853 = vmatprep.subr.bf16.mxu0 %v8354_v34 }
 0x52b   : > { %6004 = vmatpush1.bf16.msra.mxu1 %v8397_v4 }
 0x52c   : > { %6042 = vmatprep.subr.bf16.mxu1 %v8402_v25 }
 0x52d   : > { %5854 = vmatpush1.bf16.msra.mxu0 %v8352_v61 }
 0x52e   : > { %5855 = vmatprep.subr.bf16.mxu0 %v8357_v45 }
 0x531   : > { %5856 = vmatpush1.bf16.msra.mxu0 %v8355_v48 }
 0x532   : > { %5857 = vmatprep.subr.bf16.mxu0 %v8360_v35 }
 0x535   : > { %5858 = vmatpush1.bf16.msra.mxu0 %v8358_v46 }
 0x536   : > { %5859 = vmatprep.subr.bf16.mxu0 %v8363_v36  ;;  %v8400_v36 = vld [vmem:[#allocation13 + $0x8] ss:$24 sps:$4 sm:$0xff]  }
 0x539   : > { %5860 = vmatpush1.bf16.msra.mxu0 %v8361_v20 }
 0x53a   : > { %5861 = vmatprep.subr.bf16.mxu0 %v8366_v37  ;;  %v8405_v37 = vld [vmem:[#allocation13 + $0x3c] ss:$24 sps:$4 sm:$0xff]  }
 0x53b   : > { %v7936_v38 = vpop.f32.mrb[20].mxu0 }
 0x53c   : > { %v7958_v24 = vpop.f32.mrb[20].mxu1  ;;  %v7937_v62 = vpop.f32.mrb[21].mxu0 }
 0x53d   : > { %v7938_v49 = vadd.f32 %v7937_v62, %v7936_v38  ;;  %v7959_v50 = vpop.f32.mrb[21].mxu1  ;;  %5862 = vmatpush1.bf16.msra.mxu0 %v8364_v39  ;;  %v7939_v53 = vpop.f32.mrb[22].mxu0  ;;  %v8403_v39 = vld [vmem:[#allocation13 + $0x38] ss:$24 sps:$4 sm:$0xff]  }
 0x53e   : > { %v7960_v59 = vadd.f32 %v7959_v50, %v7958_v24  ;;  %v7961_v63 = vpop.f32.mrb[22].mxu1  ;;  %v7940_v1 = vpop.f32.mrb[23].mxu0  ;;  %5863 = vmatprep.subr.bf16.mxu0 %v8369_v57  ;;  %v8408_v57 = vld [vmem:[#allocation13 + $0x14] ss:$24 sps:$4 sm:$0xff]   ;;  %v8406_v38 = vld [vmem:[#allocation13 + $0x10] ss:$24 sps:$4 sm:$0xff]  }
 0x53f   : > { %v5518_v3 = vadd.f32 %v7938_v49, %v7721_v44  ;;  %v7962_v5 = vpop.f32.mrb[23].mxu1  ;;  %v8411_v24 = vld [vmem:[#allocation13 + $0x44] ss:$24 sps:$4 sm:$0xff]   ;;  %v8409_v44 = vld [vmem:[#allocation13 + $0x40] ss:$24 sps:$4 sm:$0xff]  }
 0x540   : > { %v8417_v63 = vld [vmem:[#allocation19 + $0x14] ss:$8 sps:$4 sm:$0xff]   ;;  %v8415_v1 = vld [vmem:[#allocation19 + $0x10] ss:$8 sps:$4 sm:$0xff]   ;;  %v5677_v5 = vld [vmem:[#allocation12] sm:$0x3] }
 0x541   : > { %v5558_v6 = vadd.f32 %v7960_v59, %v5518_v3  ;;  %5864 = vmatpush1.bf16.msra.mxu0 %v8367_v56  ;;  %v8412_v56 = vld [vmem:[#allocation19] ss:$8 sps:$4 sm:$0xff]   ;;  %v8414_v59 = vld [vmem:[#allocation19 + $0x4] ss:$8 sps:$4 sm:$0xff]  }
 0x542   : > { %5865 = vmatprep.subr.bf16.mxu0 %v8372_v2  ;;  %v8420_v2 = vld [vmem:[#allocation19 + $0x24] ss:$8 sps:$4 sm:$0xff]   ;;  %v8418_v3 = vld [vmem:[#allocation19 + $0x20] ss:$8 sps:$4 sm:$0xff]  }
 0x545   : > { %5866 = vmatpush1.bf16.msra.mxu0 %v8370_v8  ;;  %v5686_v8 = vrot.slane %v5677_v5, %v9546_v29 }
 0x546   : > { %5867 = vmatprep.subr.bf16.mxu0 %v8375_v9  ;;  %v5905_v9 = vld [vmem:[#allocation15] sm:$0x3f] }
 0x549   : > { %5868 = vmatpush1.bf16.msra.mxu0 %v8373_v11 }
 0x54a   : > { %5869 = vmatprep.subr.bf16.mxu0 %v8378_v51  ;;  %v5910_v51 = vrot.slane %v5905_v9, %v9541_v27 }
 0x54d   : > { %5870 = vmatpush1.bf16.msra.mxu0 %v8376_v42 }
 0x54e   : > { %5871 = vmatprep.subr.bf16.mxu0 %v8381_v12  ;;  %v5914_v12 = vrot.slane %v5905_v9, %v9546_v29 }
 0x551   : > { %5872 = vmatpush1.bf16.msra.mxu0 %v8379_v13 }
 0x552   : > { %5873 = vmatprep.subr.bf16.mxu0 %v8384_v14 }
 0x555   : > { %5874 = vmatpush1.bf16.msra.mxu0 %v8382_v15 }
 0x556   : > { %5875 = vmatprep.subr.bf16.mxu0 %v8387_v40 }
 0x559   : > { %5876 = vmatpush1.bf16.msra.mxu0 %v8385_v16 }
 0x55a   : > { %5877 = vmatprep.subr.bf16.mxu0 %v8390_v43 }
 0x55d   : > { %5878 = vmatpush1.bf16.msra.mxu0 %v8388_v54 }
 0x55e   : > { %5879 = vmatprep.subr.bf16.mxu0 %v8393_v18 }
 0x561   : > { %5880 = vmatpush1.bf16.msra.mxu0 %v8391_v19  ;;  %v5918_v19 = vrot.slane %v5905_v9, %v9584_v58 }
 0x564   : > { %5882 = vmatmul.mubr.bf16.vlgmr.msra.gmra.mrb[28].mxu0 %v5643_v22  ;;  %v5922_v22 = vrot.slane %v5905_v9, %v9549_v30 }
 0x5f7   : > { %v7980_v41 = vpop.f32.mrb[24].mxu0 }
 0x5f8   : > { %v8002_v47 = vpop.f32.mrb[24].mxu1  ;;  %v7981_v31 = vpop.f32.mrb[25].mxu0 }
 0x5f9   : > { %v7982_v32 = vadd.f32 %v7981_v31, %v7980_v41  ;;  %v8003_v33 = vpop.f32.mrb[25].mxu1  ;;  %v7983_v28 = vpop.f32.mrb[26].mxu0 }
 0x5fa   : > { %v8004_v34 = vadd.f32 %v8003_v33, %v8002_v47  ;;  %v8005_v61 = vpop.f32.mrb[26].mxu1  ;;  %v7984_v45 = vpop.f32.mrb[27].mxu0  ;;  %v5930_v28 = vrot.slane %v5905_v9, %v9587_v7  ;;  %v8424_v7 = vld [vmem:[#allocation19 + $0x40] ss:$8 sps:$4 sm:$0xff]  }
 0x5fb   : > { %v5598_v48 = vadd.f32 %v7982_v32, %v5558_v6  ;;  %v8006_v35 = vpop.f32.mrb[27].mxu1  ;;  %v5682_v6 = vrot.slane %v5677_v5, %v9541_v27  ;;  %v5926_v32 = vrot.slane %v5905_v9, %v9604_v52  ;;  %v8421_v52 = vld [vmem:[#allocation19 + $0x30] ss:$8 sps:$4 sm:$0xff]   ;;  %v8447_v5 = vld [vmem:[#allocation19 + $0xb4] ss:$8 sps:$4 sm:$0xff]  }
 0x5fc   : > { %v8448_v9 = vld [vmem:[#allocation19 + $0xc0] ss:$8 sps:$4 sm:$0xff]  }
 0x5fd   : > { %v9879_v46 = vadd.f32 %v8004_v34, %v5598_v48 }
 0x5ff   : > { %v5892_v20 = vpack.c.bf16 %v9879_v46, %v9879_v46 }
 0x601   : > { %7830 = vmatmul.mubr.msk.bf16.vlgmr.msra.gmra.mrb[28].mxu1 %vm5997_vm1, %v5892_v20 }
 0x602   : > { %6043 = vmatpush1.bf16.msra.mxu1 %v8400_v36  ;;  %6074 = vmatprep.mubr.bf16.mxu1 %v9028_v0 }
 0x603   : > { %6044 = vmatprep.subr.bf16.mxu1 %v8405_v37 }
 0x606   : > { %6045 = vmatpush1.bf16.msra.mxu1 %v8403_v39 }
 0x607   : > { %6083 = vmatprep.subr.bf16.mxu1 %v8408_v57  ;;  %v8423_v57 = vld [vmem:[#allocation19 + $0x34] ss:$8 sps:$4 sm:$0xff]  }
 0x609   : > { %7831 = vmatmul.mubr.msk.bf16.vlgmr.msra.gmra.mrb[32].mxu1 %vm5997_vm1, %v5892_v20 }
 0x60a   : > { %6084 = vmatpush1.bf16.msra.mxu1 %v8406_v38  ;;  %6115 = vmatprep.mubr.bf16.mxu1 %v9028_v0  ;;  %v8426_v38 = vld [vmem:[#allocation19 + $0x44] ss:$8 sps:$4 sm:$0xff]  }
 0x60b   : > { %6085 = vmatprep.subr.bf16.mxu1 %v8411_v24  ;;  %v8427_v24 = vld [vmem:[#allocation19 + $0x50] ss:$8 sps:$4 sm:$0xff]  }
 0x60e   : > { %6086 = vmatpush1.bf16.msra.mxu1 %v8409_v44  ;;  %v8429_v44 = vld [vmem:[#allocation19 + $0x54] ss:$8 sps:$4 sm:$0xff]  }
 0x60f   : > { %6362 = vmatprep.subr.bf16.mxu1 %v8414_v59  ;;  %v8436_v59 = vld [vmem:[#allocation19 + $0x80] ss:$8 sps:$4 sm:$0xff]  }
 0x611   : > { %7832 = vmatmul.mubr.msk.bf16.vlgmr.msra.gmra.mrb[36].mxu1 %vm5997_vm1, %v5892_v20 }
 0x612   : > { %6363 = vmatpush1.bf16.msra.mxu1 %v8412_v56  ;;  %v8438_v56 = vld [vmem:[#allocation19 + $0x84] ss:$8 sps:$4 sm:$0xff]  }
 0x613   : > { %6364 = vmatprep.subr.bf16.mxu1 %v8417_v63  ;;  %v8439_v63 = vld [vmem:[#allocation19 + $0x90] ss:$8 sps:$4 sm:$0xff]  }
 0x616   : > { %6365 = vmatpush1.bf16.msra.mxu1 %v8415_v1  ;;  %v8441_v1 = vld [vmem:[#allocation19 + $0x94] ss:$8 sps:$4 sm:$0xff]  }
 0x617   : > { %6366 = vmatprep.subr.bf16.mxu1 %v8420_v2  ;;  %v8444_v2 = vld [vmem:[#allocation19 + $0xa4] ss:$8 sps:$4 sm:$0xff]  }
 0x61a   : > { %6367 = vmatpush1.bf16.msra.mxu1 %v8418_v3  ;;  %v8442_v3 = vld [vmem:[#allocation19 + $0xa0] ss:$8 sps:$4 sm:$0xff]  }
 0x61b   : > { %6368 = vmatprep.subr.bf16.mxu1 %v8423_v57  ;;  %v8498_v57 = vld [vmem:[#allocation21 + $0xc4] ss:$8 sps:$4 sm:$0xff]  }
 0x61e   : > { %6369 = vmatpush1.bf16.msra.mxu1 %v8421_v52  ;;  %v8493_v52 = vld [vmem:[#allocation21 + $0xb0] ss:$8 sps:$4 sm:$0xff]  }
 0x61f   : > { %6370 = vmatprep.subr.bf16.mxu1 %v8426_v38  ;;  %v8496_v38 = vld [vmem:[#allocation21 + $0xc0] ss:$8 sps:$4 sm:$0xff]  }
 0x622   : > { %6371 = vmatpush1.bf16.msra.mxu1 %v8424_v7  ;;  %v8501_v7 = vld [vmem:[#allocation21 + $0xd4] ss:$8 sps:$4 sm:$0xff]  }
 0x623   : > { %6372 = vmatprep.subr.bf16.mxu1 %v8429_v44 }
 0x626   : > { %6373 = vmatpush1.bf16.msra.mxu1 %v8427_v24  ;;  %v8499_v24 = vld [vmem:[#allocation21 + $0xd0] ss:$8 sps:$4 sm:$0xff]  }
 0x637   : > { %v5883_v62 = vpop.f32.mrb[28].mxu0 }
 0x638   : > { %v5885_v49 = vpop.f32.mrb[29].mxu0  ;;  %v5884_v11 = vadd.f32 %v5883_v62, %v5682_v6  ;;  %v8432_v62 = vld [vmem:[#allocation19 + $0x64] ss:$8 sps:$4 sm:$0xff]   ;;  %v8445_v6 = vld [vmem:[#allocation19 + $0xb0] ss:$8 sps:$4 sm:$0xff]  }
 0x639   : > { %v5887_v50 = vpop.f32.mrb[30].mxu0  ;;  %v5886_v42 = vadd.f32 %v5885_v49, %v5686_v8  ;;  %v8430_v49 = vld [vmem:[#allocation19 + $0x60] ss:$8 sps:$4 sm:$0xff]   ;;  %6374 = vmatprep.subr.bf16.mxu1 %v8432_v62  ;;  %v8450_v8 = vld [vmem:[#allocation19 + $0xc4] ss:$8 sps:$4 sm:$0xff]  }
 0x63a   : > { %v5888_v53 = vpop.f32.mrb[31].mxu0  ;;  %v9892_v14 = vmax.f32 %v5884_v11, 0.0  ;;  %6375 = vmatpush1.bf16.msra.mxu1 %v8430_v49  ;;  %v8435_v50 = vld [vmem:[#allocation19 + $0x74] ss:$8 sps:$4 sm:$0xff]  }
 0x63b   : > { %v9896_v16 = vmax.f32 %v5886_v42, 0.0  ;;  %v8433_v53 = vld [vmem:[#allocation19 + $0x70] ss:$8 sps:$4 sm:$0xff]   ;;  %6376 = vmatprep.subr.bf16.mxu1 %v8435_v50  ;;  %v8453_v11 = vld [vmem:[#allocation19 + $0xd4] ss:$8 sps:$4 sm:$0xff]  }
 0x63c   : > { %v8456_v42 = vld [vmem:[#allocation19 + $0xe4] ss:$8 sps:$4 sm:$0xff]  }
 0x63e   : > { %6377 = vmatpush1.bf16.msra.mxu1 %v8433_v53 }
 0x63f   : > { %6378 = vmatprep.subr.bf16.mxu1 %v8438_v56 }
 0x642   : > { %6379 = vmatpush1.bf16.msra.mxu1 %v8436_v59 }
 0x643   : > { %6380 = vmatprep.subr.bf16.mxu1 %v8441_v1 }
 0x646   : > { %6381 = vmatpush1.bf16.msra.mxu1 %v8439_v63 }
 0x647   : > { %6382 = vmatprep.subr.bf16.mxu1 %v8444_v2 }
 0x64a   : > { %6383 = vmatpush1.bf16.msra.mxu1 %v8442_v3 }
 0x64b   : > { %6384 = vmatprep.subr.bf16.mxu1 %v8447_v5 }
 0x64e   : > { %6385 = vmatpush1.bf16.msra.mxu1 %v8445_v6 }
 0x64f   : > { %6386 = vmatprep.subr.bf16.mxu1 %v8450_v8 }
 0x652   : > { %6387 = vmatpush1.bf16.msra.mxu1 %v8448_v9 }
 0x653   : > { %6388 = vmatprep.subr.bf16.mxu1 %v8453_v11 }
 0x6d4   : > { %v6035_v13 = vpop.f32.mrb[28].mxu1 }
 0x6d5   : > { %v9894_v15 = vadd.f32 %v6035_v13, %v5910_v51  ;;  %v6037_v40 = vpop.f32.mrb[29].mxu1  ;;  %v8451_v51 = vld [vmem:[#allocation19 + $0xd0] ss:$8 sps:$4 sm:$0xff]   ;;  %v8459_v13 = vld [vmem:[#allocation19 + $0xf4] ss:$8 sps:$4 sm:$0xff]  }
 0x6d6   : > { %v9898_v17 = vadd.f32 %v6037_v40, %v5914_v12  ;;  %v6039_v43 = vpop.f32.mrb[30].mxu1  ;;  %6389 = vmatpush1.bf16.msra.mxu1 %v8451_v51  ;;  %v8454_v12 = vld [vmem:[#allocation19 + $0xe0] ss:$8 sps:$4 sm:$0xff]   ;;  %v8457_v40 = vld [vmem:[#allocation19 + $0xf0] ss:$8 sps:$4 sm:$0xff]  }
 0x6d7   : > { %v6040_v54 = vpop.f32.mrb[31].mxu1  ;;  %v6124_v55 = vmul.f32 %v9894_v15, %v9892_v14  ;;  %6390 = vmatprep.subr.bf16.mxu1 %v8456_v42  ;;  %v8460_v43 = vld [vmem:[#allocation21] ss:$8 sps:$4 sm:$0xff]  }
 0x6d8   : > { %v6125_v18 = vmul.f32 %v9898_v17, %v9896_v16  ;;  %v8462_v54 = vld [vmem:[#allocation21 + $0x4] ss:$8 sps:$4 sm:$0xff]  }
 0x6d9   : > { %6613 = vmatprep.subr.bf16.mxu0 %v8462_v54 }
 0x6da   : > { %v6126_v21 = vadd.f32 %v6125_v18, %v6124_v55  ;;  %6391 = vmatpush1.bf16.msra.mxu1 %v8454_v12  ;;  %v8465_v55 = vld [vmem:[#allocation21 + $0x14] ss:$8 sps:$4 sm:$0xff]   ;;  %6614 = vmatpush1.bf16.msra.mxu0 %v8460_v43  ;;  %v8463_v18 = vld [vmem:[#allocation21 + $0x10] ss:$8 sps:$4 sm:$0xff]  }
 0x6db   : > { %6392 = vmatprep.subr.bf16.mxu1 %v8459_v13  ;;  %6615 = vmatprep.subr.bf16.mxu0 %v8465_v55 }
 0x6dc   : > { %v6076_v26 = vpop.f32.mrb[32].mxu1  ;;  %6127 = vadd.xlane.f32.xlu0 %v6126_v21  ;;  %v8466_v21 = vld [vmem:[#allocation21 + $0x20] ss:$8 sps:$4 sm:$0xff]  }
 0x6dd   : > { %v9906_v23 = vadd.f32 %v6076_v26, %v5918_v19  ;;  %v6078_v4 = vpop.f32.mrb[33].mxu1  ;;  %v8468_v19 = vld [vmem:[#allocation21 + $0x24] ss:$8 sps:$4 sm:$0xff]   ;;  %v8469_v26 = vld [vmem:[#allocation21 + $0x30] ss:$8 sps:$4 sm:$0xff]  }
 0x6de   : > { %v9908_v10 = vadd.f32 %v6078_v4, %v5922_v22  ;;  %v6080_v25 = vpop.f32.mrb[34].mxu1  ;;  %6393 = vmatpush1.bf16.msra.mxu1 %v8457_v40  ;;  %6616 = vmatpush1.bf16.msra.mxu0 %v8463_v18  ;;  %v8471_v22 = vld [vmem:[#allocation21 + $0x34] ss:$8 sps:$4 sm:$0xff]   ;;  %v8474_v4 = vld [vmem:[#allocation21 + $0x44] ss:$8 sps:$4 sm:$0xff]  }
 0x6df   : > { %v6130_v41 = vmul.f32 %v9906_v23, %v9892_v14  ;;  %v6081_v47 = vpop.f32.mrb[35].mxu1  ;;  %6617 = vmatprep.subr.bf16.mxu0 %v8468_v19  ;;  %v8472_v25 = vld [vmem:[#allocation21 + $0x40] ss:$8 sps:$4 sm:$0xff]  }
 0x6e0   : > { %v6131_v31 = vmul.f32 %v9908_v10, %v9896_v16  ;;  %v8475_v47 = vld [vmem:[#allocation21 + $0x50] ss:$8 sps:$4 sm:$0xff]  }
 0x6e2   : > { %v6132_v33 = vadd.f32 %v6131_v31, %v6130_v41  ;;  %6618 = vmatpush1.bf16.msra.mxu0 %v8466_v21  ;;  %v8477_v41 = vld [vmem:[#allocation21 + $0x54] ss:$8 sps:$4 sm:$0xff]   ;;  %v8480_v31 = vld [vmem:[#allocation21 + $0x64] ss:$8 sps:$4 sm:$0xff]  }
 0x6e3   : > { %6619 = vmatprep.subr.bf16.mxu0 %v8471_v22 }
 0x6e4   : > { %v6117_v34 = vpop.f32.mrb[36].mxu1  ;;  %6133 = vadd.xlane.f32.xlu0 %v6132_v33  ;;  %v8483_v33 = vld [vmem:[#allocation21 + $0x74] ss:$8 sps:$4 sm:$0xff]  }
 0x6e5   : > { %v9916_v61 = vadd.f32 %v6117_v34, %v5926_v32  ;;  %v6119_v45 = vpop.f32.mrb[37].mxu1  ;;  %v8478_v32 = vld [vmem:[#allocation21 + $0x60] ss:$8 sps:$4 sm:$0xff]   ;;  %v8486_v34 = vld [vmem:[#allocation21 + $0x84] ss:$8 sps:$4 sm:$0xff]  }
 0x6e6   : > { %v9918_v48 = vadd.f32 %v6119_v45, %v5930_v28  ;;  %v6121_v35 = vpop.f32.mrb[38].mxu1  ;;  %6620 = vmatpush1.bf16.msra.mxu0 %v8469_v26  ;;  %v8481_v28 = vld [vmem:[#allocation21 + $0x70] ss:$8 sps:$4 sm:$0xff]   ;;  %v8484_v45 = vld [vmem:[#allocation21 + $0x80] ss:$8 sps:$4 sm:$0xff]  }
 0x6e7   : > { %v6122_v36 = vpop.f32.mrb[39].mxu1  ;;  %v6136_v20 = vmul.f32 %v9916_v61, %v9892_v14  ;;  %6621 = vmatprep.subr.bf16.mxu0 %v8474_v4  ;;  %v8489_v35 = vld [vmem:[#allocation21 + $0x94] ss:$8 sps:$4 sm:$0xff]  }
 0x6e8   : > { %v6137_v37 = vmul.f32 %v9918_v48, %v9896_v16  ;;  %v8487_v36 = vld [vmem:[#allocation21 + $0x90] ss:$8 sps:$4 sm:$0xff]  }
 0x6ea   : > { %v6138_v39 = vadd.f32 %v6137_v37, %v6136_v20  ;;  %6622 = vmatpush1.bf16.msra.mxu0 %v8472_v25  ;;  %v8492_v20 = vld [vmem:[#allocation21 + $0xa4] ss:$8 sps:$4 sm:$0xff]   ;;  %v8490_v37 = vld [vmem:[#allocation21 + $0xa0] ss:$8 sps:$4 sm:$0xff]  }
 0x6eb   : > { %6623 = vmatprep.subr.bf16.mxu0 %v8477_v41 }
 0x6ec   : > { %6139 = vadd.xlane.f32.xlu1 %v6138_v39  ;;  %v8495_v39 = vld [vmem:[#allocation21 + $0xb4] ss:$8 sps:$4 sm:$0xff]  }
 0x6ee   : > { %6624 = vmatpush1.bf16.msra.mxu0 %v8475_v47 }
 0x6ef   : > { %6625 = vmatprep.subr.bf16.mxu0 %v8480_v31 }
 0x6f2   : > { %6626 = vmatpush1.bf16.msra.mxu0 %v8478_v32  ;;  %v8510_v32 = vld [vmem:[%s10094_s29 + $0x48] sm:$0xff]  }
 0x6f3   : > { %6627 = vmatprep.subr.bf16.mxu0 %v8483_v33  ;;  %v8511_v33 = vld [vmem:[%s10094_s29 + $0x8] sm:$0xff]  }
 0x6f6   : > { %6628 = vmatpush1.bf16.msra.mxu0 %v8481_v28  ;;  %v8512_v28 = vld [vmem:[%s10094_s29 + $0x50] sm:$0xff]  }
 0x6f7   : > { %6629 = vmatprep.subr.bf16.mxu0 %v8486_v34  ;;  %v8513_v34 = vld [vmem:[%s10094_s29 + $0x10] sm:$0xff]  }
 0x6fa   : > { %6630 = vmatpush1.bf16.msra.mxu0 %v8484_v45  ;;  %v8514_v45 = vld [vmem:[%s10094_s29 + $0x58] sm:$0xff]  }
 0x6fb   : > { %6631 = vmatprep.subr.bf16.mxu0 %v8489_v35  ;;  %v8515_v35 = vld [vmem:[%s10094_s29 + $0x18] sm:$0xff]  }
 0x6fe   : > { %6632 = vmatpush1.bf16.msra.mxu0 %v8487_v36  ;;  %v8516_v36 = vld [vmem:[%s10094_s29 + $0x60] sm:$0xff]  }
 0x6ff   : > { %6633 = vmatprep.subr.bf16.mxu0 %v8492_v20  ;;  %v8517_v20 = vld [vmem:[%s10094_s29 + $0x20] sm:$0xff]  }
 0x702   : > { %6634 = vmatpush1.bf16.msra.mxu0 %v8490_v37  ;;  %v8518_v37 = vld [vmem:[%s10094_s29 + $0x68] sm:$0xff]  }
 0x703   : > { %6635 = vmatprep.subr.bf16.mxu0 %v8495_v39  ;;  %v8519_v39 = vld [vmem:[%s10094_s29 + $0x28] sm:$0xff]  }
 0x706   : > { %6636 = vmatpush1.bf16.msra.mxu0 %v8493_v52  ;;  %v833_v52 = vrot.slane %v9860_v60, %v9584_v58  ;;  %v8522_v58 = vld [vmem:[%s10094_s29 + $0x78] sm:$0xff]  }
 0x707   : > { %6637 = vmatprep.subr.bf16.mxu0 %v8498_v57  ;;  %v837_v57 = vrot.slane %v9860_v60, %v9549_v30  ;;  %v8521_v30 = vld [vmem:[%s10094_s29 + $0x30] sm:$0xff]   ;;  %v8523_v60 = vld [vmem:[%s10094_s29 + $0x38] sm:$0xff]  }
 0x70a   : > { %6638 = vmatpush1.bf16.msra.mxu0 %v8496_v38 }
 0x70b   : > { %6639 = vmatprep.subr.bf16.mxu0 %v8501_v7 }
 0x70e   : > { %6640 = vmatpush1.bf16.msra.mxu0 %v8499_v24 }
 0x769   : > { %v6128_v44 = vpop.xlane.xlu0 %6127 }
 0x76a   : > { %v9926_v50 = vmul.f32 0.0625, %v6128_v44 }
 0x771   : > { %v6134_v62 = vpop.xlane.xlu0 %6133 }
 0x772   : > { %v9924_v49 = vmul.f32 0.0625, %v6134_v62 }
 0x774   : > { %v6142_v56 = vmax.f32 %v9926_v50, %v9924_v49 }
 0x779   : > { %v6140_v53 = vpop.xlane.xlu1 %6139 }
 0x77a   : > { %v9930_v59 = vmul.f32 0.0625, %v6140_v53 }
 0x77c   : > { %v6143_v63 = vmax.f32 %v6142_v56, %v9930_v59 }
 0x77e   : > { %v6144_v1 = vsub.f32 %v9926_v50, %v6143_v63  ;;  %v6147_v2 = vsub.f32 %v9924_v49, %v6143_v63  ;;  %v6150_v3 = vsub.f32 %v9930_v59, %v6143_v63 }
 0x780   : > { %v6145_v5 = vmul.f32 1.442695, %v6144_v1  ;;  %v6148_v6 = vmul.f32 1.442695, %v6147_v2  ;;  %v6151_v8 = vmul.f32 1.442695, %v6150_v3 }
 0x781   : > { %v8520_v3 = vld [vmem:[%s10094_s29 + $0x70] sm:$0xff]  }
 0x782   : > { %8526 = vpow2.f32 %v6145_v5  ;;  %v6834_v5 = vld [vmem:[#allocation16] sm:$0xff] }
 0x783   : > { %8528 = vpow2.f32 %v6148_v6  ;;  %v7915_v6 = vcombine.high %v6834_v5, %v6834_v5 }
 0x784   : > { %8530 = vpow2.f32 %v6151_v8  ;;  %v6441_v8 = vld [vmem:[#allocation22] sm:$0x3] }
 0x78c   : > { %v8527_v9 = vpop.eup %8526 }
 0x78d   : > { %v8529_v11 = vpop.eup %8528  ;;  %v6157_v13 = vmul.f32 %v8527_v9, %v9898_v17  ;;  %v6156_v43 = vmul.f32 %v8527_v9, %v9894_v15  ;;  %v8504_v17 = vld [vmem:[#allocation21 + $0xe4] ss:$8 sps:$4 sm:$0xff]   ;;  %v8507_v15 = vld [vmem:[#allocation21 + $0xf4] ss:$8 sps:$4 sm:$0xff]  }
 0x78e   : > { %v6153_v51 = vadd.f32 %v8529_v11, %v8527_v9  ;;  %v8531_v42 = vpop.eup %8530  ;;  %v6159_v40 = vmul.f32 %v8529_v11, %v9908_v10  ;;  %v6158_v54 = vmul.f32 %v8529_v11, %v9906_v23  ;;  %v8502_v10 = vld [vmem:[#allocation21 + $0xe0] ss:$8 sps:$4 sm:$0xff]   ;;  %6641 = vmatprep.subr.bf16.mxu0 %v8504_v17  ;;  %v8505_v23 = vld [vmem:[#allocation21 + $0xf0] ss:$8 sps:$4 sm:$0xff]   ;;  %v6446_v9 = vrot.slane %v6441_v8, %v9541_v27 }
 0x78f   : > { %v6163_v19 = vmul.f32 %v8531_v42, %v9918_v48  ;;  %v6162_v21 = vmul.f32 %v8531_v42, %v9916_v61  ;;  %6642 = vmatpush1.bf16.msra.mxu0 %v8502_v10  ;;  %v8508_v61 = vld [vmem:[%s10094_s29 + $0x40] sm:$0xff]   ;;  %v6450_v11 = vrot.slane %v6441_v8, %v9546_v29 }
 0x790   : > { %v6154_v12 = vadd.f32 %v8531_v42, %v6153_v51  ;;  %v6161_v55 = vadd.f32 %v6159_v40, %v6157_v13  ;;  %v6160_v18 = vadd.f32 %v6158_v54, %v6156_v43  ;;  %6643 = vmatprep.subr.bf16.mxu0 %v8507_v15  ;;  %v8509_v48 = vld [vmem:[%s10094_s29] sm:$0xff]   ;;  %8008 = vmatprep.subr.bf16.mxu1 %v8508_v61 }
 0x791   : > { %v6835_v15 = vld [vmem:[#allocation18] sm:$0x3] }
 0x792   : > { %8532 = vrcp.f32 %v6154_v12  ;;  %v6165_v22 = vadd.f32 %v6163_v19, %v6161_v55  ;;  %v6164_v26 = vadd.f32 %v6162_v21, %v6160_v18  ;;  %v7914_v21 = vcombine.low %v6834_v5, %v6834_v5 }
 0x793   : > { %6644 = vmatpush1.bf16.msra.mxu0 %v8505_v23  ;;  %v6840_v23 = vrot.slane %v6835_v15, %v9541_v27 }
 0x79c   : > { %v8533_v4 = vpop.eup %8532 }
 0x79d   : > { %v6167_v25 = vmul.f32 %v8533_v4, %v6165_v22  ;;  %v6166_v41 = vmul.f32 %v8533_v4, %v6164_v26  ;;  %v6858_v22 = vsel %vm6856_vm2, %v7914_v21, 0  ;;  %v7897_v4 = vld [vmem:[#allocation24] ss:$0 sm:$0xff] }
 0x79f   : > { %v6169_v47 = vpack.c.bf16 %v6167_v25, %v6167_v25  ;;  %v6168_v31 = vpack.c.bf16 %v6166_v41, %v6166_v41 }
 0x7a1   : > { %6394 = vmatprep.mubr.bf16.mxu1 %v6169_v47 }
 0x7a2   : > { %6395 = vmatmul.mubr.bf16.vlgmr.msra.gmra.mrb[8].mxu1 %v6168_v31 }
 0x7a3   : > { %8009 = vmatpush3.bf16.msra.mxu1 %v8509_v48 }
 0x7a4   : > { %8010 = vmatprep.subr.bf16.mxu1 %v8510_v32 }
 0x7a7   : > { %8011 = vmatpush3.bf16.msra.mxu1 %v8511_v33 }
 0x7a8   : > { %8012 = vmatprep.subr.bf16.mxu1 %v8512_v28 }
 0x7ab   : > { %8013 = vmatpush3.bf16.msra.mxu1 %v8513_v34 }
 0x7ac   : > { %8014 = vmatprep.subr.bf16.mxu1 %v8514_v45 }
 0x7af   : > { %8015 = vmatpush3.bf16.msra.mxu1 %v8515_v35 }
 0x7b0   : > { %8016 = vmatprep.subr.bf16.mxu1 %v8516_v36 }
 0x7b3   : > { %8017 = vmatpush3.bf16.msra.mxu1 %v8517_v20 }
 0x7b4   : > { %8018 = vmatprep.subr.bf16.mxu1 %v8518_v37 }
 0x7b7   : > { %8019 = vmatpush3.bf16.msra.mxu1 %v8519_v39 }
 0x7b8   : > { %8020 = vmatprep.subr.bf16.mxu1 %v8520_v3 }
 0x7bb   : > { %8021 = vmatpush3.bf16.msra.mxu1 %v8521_v30 }
 0x7bc   : > { %8022 = vmatprep.subr.bf16.mxu1 %v8522_v58 }
 0x7bf   : > { %8023 = vmatpush3.bf16.msra.mxu1 %v8523_v60 }
 0x7c0   : > { %7916 = vmatprep.subr.msk.bf16.mxu1 %vm6856_vm2, %v7915_v6 }
 0x875   : > { %v6396_v38 = vpop.f32.mrb[8].mxu1 }
 0x876   : > { %v8030_v7 = vadd.f32 %v6396_v38, %v833_v52  ;;  %v6398_v24 = vpop.f32.mrb[9].mxu1 }
 0x877   : > { %v8031_v44 = vadd.f32 %v6398_v24, %v837_v57  ;;  %v6400_v62 = vpop.f32.mrb[10].mxu1 }
 0x878   : > { %v6405_v53 = vmax.f32 %v8030_v7, 0.0  ;;  %v6401_v56 = vpop.f32.mrb[11].mxu1 }
 0x879   : > { %v6406_v63 = vmax.f32 %v8031_v44, 0.0 }
 0x87a   : > { %v6407_v2 = vpack.c.bf16 %v6405_v53, %v6405_v53 }
 0x87b   : > { %v6408_v1 = vpack.c.bf16 %v6406_v63, %v6406_v63 }
 0x87d   : > { %6645 = vmatprep.mubr.bf16.mxu0 %v6408_v1 }
 0x87e   : > { %6646 = vmatmul.mubr.bf16.vlgmr.msra.gmra.mrb[32].mxu0 %v6407_v2 }
 0x951   : > { %v6647_v51 = vpop.f32.mrb[32].mxu0 }
 0x952   : > { %v6648_v42 = vadd.f32 %v6647_v51, %v6446_v9  ;;  %v6649_v12 = vpop.f32.mrb[33].mxu0 }
 0x953   : > { %v6650_v13 = vadd.f32 %v6649_v12, %v6450_v11  ;;  %v6651_v40 = vpop.f32.mrb[34].mxu0 }
 0x954   : > { %v6654_v43 = vmax.f32 %v6648_v42, 0.0  ;;  %v6652_v54 = vpop.f32.mrb[35].mxu0 }
 0x955   : > { %v6655_v55 = vmax.f32 %v6650_v13, 0.0 }
 0x956   : > { %v6656_v19 = vpack.c.bf16 %v6654_v43, %v6654_v43 }
 0x957   : > { %v6657_v18 = vpack.c.bf16 %v6655_v55, %v6655_v55 }
 0x959   : > { %6825 = vmatprep.mubr.bf16.mxu1 %v6657_v18 }
 0x95a   : > { %6826 = vmatmul.mubr.bf16.vlgmr.msra.gmra.mrb[40].mxu1 %v6656_v19 }
 0x95b   : > { %6895 = vmatprep.mubr.bf16.mxu1 %v9028_v0  ;;  %6864 = vmatpush1.bf16.msra.mxu1 %v6858_v22  ;;  %v6844_v0 = vrot.slane %v6835_v15, %v9546_v29 }
 0xa2d   : > { %v8024_v26 = vpop.f32.mrb[40].mxu1 }
 0xa2e   : > { %v8025_v25 = vpop.f32.mrb[41].mxu1 }
 0xa2f   : > { %v8026_v41 = vadd.f32 %v8025_v25, %v8024_v26  ;;  %v8027_v47 = vpop.f32.mrb[42].mxu1 }
 0xa30   : > { %v8028_v31 = vpop.f32.mrb[43].mxu1 }
 0xa31   : > { %v6828_v17 = vadd.f32 %v8026_v41, %v7897_v4 }
 0xa33   : > { %v6833_v10 = vpack.c.bf16 %v6828_v17, %v6828_v17 }
 0xa35   : > { %7917 = vmatmul.mubr.msk.bf16.vlgmr.msra.gmra.mrb[44].mxu1 %vm6852_vm3, %v6833_v10 }
 0xb08   : > { %v6897_v61 = vpop.f32.mrb[44].mxu1 }
 0xb09   : > { %v6898_v48 = vadd.f32 %v6897_v61, %v6840_v23  ;;  %v6899_v32 = vpop.f32.mrb[45].mxu1 }
 0xb0a   : > { %v6900_v33 = vadd.f32 %v6899_v32, %v6844_v0  ;;  %v6901_v28 = vpop.f32.mrb[46].mxu1 }
 0xb0b   : > { %v6904_v34 = vmul.f32 %v6898_v48, %v9892_v14  ;;  %v6902_v45 = vpop.f32.mrb[47].mxu1 }
 0xb0c   : > { %v6905_v35 = vmul.f32 %v6900_v33, %v9896_v16 }
 0xb0e   : > { %v6906_v36 = vadd.f32 %v6905_v35, %v6904_v34 }
 0xb10   : > { %6907 = vadd.xlane.f32.xlu1 %v6906_v36 }
 0xb9d   : > { %v6908_v20 = vpop.xlane.xlu1 %6907 }
 0xb9e   : > { %v6909_v37 = vmul.f32 0.0625, %v6908_v20 }
 0xba0   : > { %v6910_v39 = vmax.f32 %v6909_v37, %v9926_v50 }
 0xba2   : > { %v6911_v27 = vmax.f32 %v6910_v39, %v9924_v49 }
 0xba4   : > { %v6912_v29 = vmax.f32 %v6911_v27, %v9930_v59 }
 0xba6   : > { %v6913_v52 = vsub.f32 %v6909_v37, %v6912_v29  ;;  %v6916_v57 = vsub.f32 %v9926_v50, %v6912_v29  ;;  %v6919_v38 = vsub.f32 %v9924_v49, %v6912_v29  ;;  %v6922_v14 = vsub.f32 %v9930_v59, %v6912_v29 }
 0xba8   : > { %v6914_v7 = vmul.f32 1.442695, %v6913_v52  ;;  %v6917_v24 = vmul.f32 1.442695, %v6916_v57  ;;  %v6920_v16 = vmul.f32 1.442695, %v6919_v38 }
 0xba9   : > { %v6923_v44 = vmul.f32 1.442695, %v6922_v14 }
 0xbaa   : > { %8534 = vpow2.f32 %v6914_v7 }
 0xbab   : > { %8536 = vpow2.f32 %v6917_v24 }
 0xbac   : > { %8538 = vpow2.f32 %v6920_v16 }
 0xbad   : > { %8540 = vpow2.f32 %v6923_v44 }
 0xbb4   : > { %v8535_v62 = vpop.eup %8534 }
 0xbb5   : > { %v8537_v53 = vpop.eup %8536  ;;  %v6929_v30 = vmul.f32 %v8535_v62, %v6828_v17 }
 0xbb6   : > { %v8539_v56 = vpop.eup %8538  ;;  %v6925_v63 = vadd.f32 %v8537_v53, %v8535_v62  ;;  %v6930_v1 = vmul.f32 %v8537_v53, %v9879_v46 }
 0xbb7   : > { %v6936_v50 = vmul.f32 %v8539_v56, %v9879_v46  ;;  %v8541_v2 = vpop.eup %8540 }
 0xbb8   : > { %6932 = vrot.lane.b32.xlu0 %v6930_v1, %s9029_s19  ;;  %v6926_v49 = vadd.f32 %v8539_v56, %v6925_v63  ;;  %v6942_v3 = vmul.f32 %v8541_v2, %v9879_v46 }
 0xbb9   : > { %6938 = vrot.lane.b32.xlu1 %v6936_v50, %s9030_s2 }
 0xbba   : > { %v6927_v59 = vadd.f32 %v8541_v2, %v6926_v49 }
 0xbbc   : > { %8542 = vrcp.f32 %v6927_v59 }
 0xbbd   : > { %6944 = vrot.lane.b32.xlu1 %v6942_v3, %s9031_s7 }
 0xbc1   : > { %6951 = vrot.lane.b32.xlu1 %v9879_v46, %s9032_s22 }
 0xbc6   : > { %v8543_v11 = vpop.eup %8542 }
 0xc2a   : > { %v6933_v58 = vpop.permute.xlu0 %6932 }
 0xc2b   : > { %v6939_v60 = vpop.permute.xlu1 %6938  ;;  %v6935_v5 = vadd.f32 %v6933_v58, %v6929_v30 }
 0xc2d   : > { %v6941_v6 = vadd.f32 %v6939_v60, %v6935_v5 }
 0xc2f   : > { %v6945_v8 = vpop.permute.xlu1 %6944 }
 0xc30   : > { %v6947_v9 = vadd.f32 %v6945_v8, %v6941_v6 }
 0xc32   : > { %v6948_v51 = vmul.f32 %v8543_v11, %v6947_v9 }
 0xc33   : > { %v6952_v12 = vpop.permute.xlu1 %6951 }
 0xc34   : > { %v6949_v42 = vadd.f32 %v6948_v51, %v6828_v17 }
 0xc36   : > { %v6954_v13 = vsel %vm6852_vm3, %v6949_v42, %v6952_v12 }
 0xc37   : > { %6955 = vst.msk [vmem:[%s770_s1] sm:$0xff] %vm910_vm0, %v6954_v13 }
 0xc38 PF: > { %s10096_s9 = sld [smem:[#allocation33_spill]] }
 0xc3e   : > { %s36_s27 = sadd.s32 1, %s10096_s9  }
 0xc3f   : > { %p33_p0 = scmp.ge.s32.totalorder %s36_s27, 4  }
 0xc41   :  { %35 = sbr.rel (!%p33_p0) target bundleno = 18 (0x12), region = 183 }
 0xc48   :  { %6975 = vsyncpa [#allocation3], 1 }
 0xc49   :  { %6977 = vsyncpa [#allocation3 + $0x1], 1 }
 0xc4a   :  { %6978 = vsyncpa [#allocation5], 1 }
 0xc4b   :  { %6979 = vsyncpa [#allocation8], 1 }
 0xc4c   :  { %6980 = vsyncpa [#allocation11], 1 }
 0xc4d   :  { %6981 = vsyncpa [#allocation14], 1 }
 0xc4e   :  { %6982 = vsyncpa [#allocation17], 1 }
 0xc4f   :  { %6983 = vsyncpa [#allocation20], 1 }
 0xc50   :  { %6984 = vsyncpa [#allocation23], 1 }

</bundles_post_ra>
